<compile_context>
chip_gen: v6e
topology: v6e:2x2x1
jax: 0.10.0
libtpu: 0.0.40
codegen_flags: <defaults>
</compile_context>

<pallas_src>
import jax
import jax.numpy as jnp
from jax.experimental import pallas as pl
from jax.experimental.pallas import tpu as pltpu


def _make_resblock_kernel(H, W, Cin, Cout, stride, has_projection):
    Ho = (H - 1) // stride + 1
    Wo = (W - 1) // stride + 1
    Hp, Wp = H + 2, W + 2

    def rsl(start, size):
        # slice helper supporting the conv stride
        return pl.ds(start, size) if stride == 1 else pl.ds(start, size, stride)

    def body(x_ref, w1_ref, s1_ref, b1_ref, w2_ref, s2_ref, b2_ref,
             ws_ref, ss_ref, bs_ref, out_ref, xpad_ref, h1pad_ref):
        f32 = jnp.float32
        bf16 = jnp.bfloat16

        # ---- in-kernel zero-pad of x (replaces host-side jnp.pad HBM pass).
        # Only the 1-wide border strips are zeroed; the interior is rewritten.
        xpad_ref[0:1, :, :] = jnp.zeros((1, Wp, Cin), f32)
        xpad_ref[Hp - 1:Hp, :, :] = jnp.zeros((1, Wp, Cin), f32)
        xpad_ref[:, 0:1, :] = jnp.zeros((Hp, 1, Cin), f32)
        xpad_ref[:, Wp - 1:Wp, :] = jnp.zeros((Hp, 1, Cin), f32)
        xpad_ref[1:H + 1, 1:W + 1, :] = x_ref[0].astype(f32)

        # ---- conv1: im2col -> single fat-K MXU matmul (Ho*Wo, 9*Cin)@(9*Cin, Cout)
        taps1 = [xpad_ref[rsl(dh, Ho), rsl(dw, Wo), :]
                 for dh in range(3) for dw in range(3)]
        p1 = jnp.concatenate(taps1, axis=-1).reshape(Ho * Wo, 9 * Cin)
        acc1 = jnp.dot(p1.astype(bf16), w1_ref[...],
                       preferred_element_type=f32)
        h1 = jnp.maximum(acc1 * s1_ref[0] + b1_ref[0], 0.0)      # bn1 + relu

        # ---- zero-pad h1 (border strips only) for the second 3x3 conv
        h1pad_ref[0:1, :, :] = jnp.zeros((1, Wo + 2, Cout), f32)
        h1pad_ref[Ho + 1:Ho + 2, :, :] = jnp.zeros((1, Wo + 2, Cout), f32)
        h1pad_ref[:, 0:1, :] = jnp.zeros((Ho + 2, 1, Cout), f32)
        h1pad_ref[:, Wo + 1:Wo + 2, :] = jnp.zeros((Ho + 2, 1, Cout), f32)
        h1pad_ref[1:Ho + 1, 1:Wo + 1, :] = h1.reshape(Ho, Wo, Cout)

        # ---- conv2: im2col -> single matmul (Ho*Wo, 9*Cout) @ (9*Cout, Cout)
        taps2 = [h1pad_ref[dh:dh + Ho, dw:dw + Wo, :]
                 for dh in range(3) for dw in range(3)]
        p2 = jnp.concatenate(taps2, axis=-1).reshape(Ho * Wo, 9 * Cout)
        acc2 = jnp.dot(p2.astype(bf16), w2_ref[...],
                       preferred_element_type=f32)
        acc2 = acc2 * s2_ref[0] + b2_ref[0]                      # bn2

        # ---- shortcut (read from the already-resident padded x scratch)
        xs = xpad_ref[rsl(1, Ho), rsl(1, Wo), :].reshape(Ho * Wo, Cin)
        if has_projection:
            sc = jnp.dot(xs.astype(bf16), ws_ref[...],
                         preferred_element_type=f32)
            sc = sc * ss_ref[0] + bs_ref[0]
        else:
            # identity shortcut: no matmul, no affine (specialized at build time)
            sc = xs

        out = jnp.maximum(acc2 + sc, 0.0)                        # final relu
        out_ref[...] = out.reshape(1, Ho, Wo, Cout).astype(out_ref.dtype)

    if has_projection:
        kernel = body
    else:
        def kernel(x_ref, w1_ref, s1_ref, b1_ref, w2_ref, s2_ref, b2_ref,
                   out_ref, xpad_ref, h1pad_ref):
            body(x_ref, w1_ref, s1_ref, b1_ref, w2_ref, s2_ref, b2_ref,
                 None, None, None, out_ref, xpad_ref, h1pad_ref)

    return kernel, Ho, Wo


def residual_block_forward(x_nchw, params, stride=1, eps=1e-5):
    N, Cin, H, W = x_nchw.shape
    Cout = params["w1"].shape[0]
    has_projection = (stride != 1) or (Cin != Cout)

    # NCHW -> NHWC boundary transpose; activations downcast to bf16 for the
    # matmuls (accumulation stays f32 inside the kernel).
    x = jnp.transpose(x_nchw, (0, 2, 3, 1)).astype(jnp.bfloat16)

    def fold_bn(g, b, m, v):
        s = g / jnp.sqrt(v + eps)
        return (s.reshape(1, Cout).astype(jnp.float32),
                (b - m * s).reshape(1, Cout).astype(jnp.float32))

    # torch OIHW -> (kh*kw*I, O), matching the in-kernel im2col tap order.
    w1 = jnp.transpose(params["w1"], (2, 3, 1, 0)).reshape(9 * Cin, Cout)
    w2 = jnp.transpose(params["w2"], (2, 3, 1, 0)).reshape(9 * Cout, Cout)
    w1 = w1.astype(jnp.bfloat16)
    w2 = w2.astype(jnp.bfloat16)
    s1, b1 = fold_bn(params["g1"], params["b1"], params["m1"], params["v1"])
    s2, b2 = fold_bn(params["g2"], params["b2"], params["m2"], params["v2"])

    kernel, Ho, Wo = _make_resblock_kernel(H, W, Cin, Cout, stride,
                                           has_projection)

    full = lambda n: (0, 0)
    in_specs = [
        pl.BlockSpec((1, H, W, Cin), lambda n: (n, 0, 0, 0)),
        pl.BlockSpec((9 * Cin, Cout), full),
        pl.BlockSpec((1, Cout), full),
        pl.BlockSpec((1, Cout), full),
        pl.BlockSpec((9 * Cout, Cout), full),
        pl.BlockSpec((1, Cout), full),
        pl.BlockSpec((1, Cout), full),
    ]
    args = [x, w1, s1, b1, w2, s2, b2]
    if has_projection:
        ws = jnp.transpose(params["ws"][:, :, 0, 0], (1, 0)).astype(jnp.bfloat16)
        ss, bs = fold_bn(params["gs"], params["bs"], params["ms"], params["vs"])
        in_specs += [pl.BlockSpec((Cin, Cout), full),
                     pl.BlockSpec((1, Cout), full),
                     pl.BlockSpec((1, Cout), full)]
        args += [ws, ss, bs]

    grid_spec = pltpu.PrefetchScalarGridSpec(
        num_scalar_prefetch=0,
        grid=(N,),
        in_specs=in_specs,
        out_specs=pl.BlockSpec((1, Ho, Wo, Cout), lambda n: (n, 0, 0, 0)),
        scratch_shapes=[pltpu.VMEM((H + 2, W + 2, Cin), jnp.float32),
                        pltpu.VMEM((Ho + 2, Wo + 2, Cout), jnp.float32)],
    )

    out_nhwc = pl.pallas_call(
        kernel,
        out_shape=jax.ShapeDtypeStruct((N, Ho, Wo, Cout), jnp.float32),
        grid_spec=grid_spec,
        compiler_params=pltpu.CompilerParams(
            dimension_semantics=("parallel",)),
    )(*args)

    return jnp.transpose(out_nhwc, (0, 3, 1, 2))                 # back to NCHW


# ---------------------- deterministic parameter init ----------------------
def init_params(key, in_channels, out_channels, stride):
    keys = jax.random.split(key, 6)

    def conv_w(k, o, i, kh, kw):
        fan_in = i * kh * kw
        return jax.random.normal(k, (o, i, kh, kw), jnp.float32) / jnp.sqrt(fan_in)

    def bn_p(k):
        k1, k2, k3, k4 = jax.random.split(k, 4)
        g = 1.0 + 0.1 * jax.random.normal(k1, (out_channels,), jnp.float32)
        b = 0.1 * jax.random.normal(k2, (out_channels,), jnp.float32)
        m = 0.1 * jax.random.normal(k3, (out_channels,), jnp.float32)
        v = 1.0 + 0.1 * jnp.abs(jax.random.normal(k4, (out_channels,), jnp.float32))
        return g, b, m, v

    p = {}
    p["w1"] = conv_w(keys[0], out_channels, in_channels, 3, 3)
    p["g1"], p["b1"], p["m1"], p["v1"] = bn_p(keys[1])
    p["w2"] = conv_w(keys[2], out_channels, out_channels, 3, 3)
    p["g2"], p["b2"], p["m2"], p["v2"] = bn_p(keys[3])
    if stride != 1 or in_channels != out_channels:
        p["ws"] = conv_w(keys[4], out_channels, in_channels, 1, 1)
        p["gs"], p["bs"], p["ms"], p["vs"] = bn_p(keys[5])
    return p


# ------------------------- pure-JAX reference -----------------------------
def reference_forward(x, p, stride, eps=1e-5):
    dn = ("NCHW", "OIHW", "NCHW")

    def conv(x, w, s, pad):
        return jax.lax.conv_general_dilated(
            x, w, (s, s), ((pad, pad), (pad, pad)), dimension_numbers=dn)

    def bn(x, g, b, m, v):
        shp = (1, -1, 1, 1)
        return ((x - m.reshape(shp)) / jnp.sqrt(v.reshape(shp) + eps)
                * g.reshape(shp) + b.reshape(shp))

    out = jax.nn.relu(bn(conv(x, p["w1"], stride, 1),
                         p["g1"], p["b1"], p["m1"], p["v1"]))
    out = bn(conv(out, p["w2"], 1, 1), p["g2"], p["b2"], p["m2"], p["v2"])
    if "ws" in p:
        sc = bn(conv(x, p["ws"], stride, 0), p["gs"], p["bs"], p["ms"], p["vs"])
    else:
        sc = x
    return jax.nn.relu(out + sc)


if __name__ == "__main__":
    key = jax.random.PRNGKey(0)
    kx1, kp1, kx2, kp2 = jax.random.split(key, 4)

    # --- config 1: projection shortcut (Cin != Cout) ---
    N, Cin, H, W = 2, 4, 16, 16
    Cout, stride = 8, 1
    x1 = jax.random.normal(kx1, (N, Cin, H, W), jnp.float32)
    p1 = init_params(kp1, Cin, Cout, stride)
    out1 = jax.block_until_ready(residual_block_forward(x1, p1, stride=stride))
    ref1 = reference_forward(x1, p1, stride)
    assert out1.shape == ref1.shape, (out1.shape, ref1.shape)
    if not bool(jnp.allclose(out1, ref1, atol=1e-2, rtol=1e-2)):
        raise AssertionError(
            f"projection mismatch: max abs err = "
            f"{float(jnp.max(jnp.abs(out1 - ref1)))}")

    # --- config 2: identity shortcut (stride=1, Cin == Cout) exercises the
    #     specialized no-projection path ---
    x2 = jax.random.normal(kx2, (2, 8, 16, 16), jnp.float32)
    p2 = init_params(kp2, 8, 8, 1)
    out2 = jax.block_until_ready(residual_block_forward(x2, p2, stride=1))
    ref2 = reference_forward(x2, p2, 1)
    assert out2.shape == ref2.shape, (out2.shape, ref2.shape)
    if not bool(jnp.allclose(out2, ref2, atol=1e-2, rtol=1e-2)):
        raise AssertionError(
            f"identity mismatch: max abs err = "
            f"{float(jnp.max(jnp.abs(out2 - ref2)))}")

    print("KERNEL_OK")
</pallas_src>

<mosaic_0001>
module attributes {stable_mosaic.version = 11 : i64} {
  func.func @body(%arg0: i32, %arg1: memref<1x16x16x4xbf16, #tpu.memory_space<vmem>>, %arg2: memref<36x8xbf16, #tpu.memory_space<vmem>>, %arg3: memref<1x8xf32, #tpu.memory_space<vmem>>, %arg4: memref<1x8xf32, #tpu.memory_space<vmem>>, %arg5: memref<72x8xbf16, #tpu.memory_space<vmem>>, %arg6: memref<1x8xf32, #tpu.memory_space<vmem>>, %arg7: memref<1x8xf32, #tpu.memory_space<vmem>>, %arg8: memref<4x8xbf16, #tpu.memory_space<vmem>>, %arg9: memref<1x8xf32, #tpu.memory_space<vmem>>, %arg10: memref<1x8xf32, #tpu.memory_space<vmem>>, %arg11: memref<1x16x16x8xf32, #tpu.memory_space<vmem>>, %arg12: memref<18x18x4xf32, #tpu.memory_space<vmem>>, %arg13: memref<18x18x8xf32, #tpu.memory_space<vmem>>) attributes {dimension_semantics = [#tpu.dimension_semantics<parallel>], iteration_bounds = array<i64: 2>, scalar_prefetch = 0 : i64, scratch_operands = 2 : i64, tpu.core_type = #tpu.core_type<tc>, window_params = [{transform_indices = @transform_0, window_bounds = array<i64: 1, 16, 16, 4>}, {pipeline_mode = #tpu.pipeline_mode<synchronous>, transform_indices = @transform_1, window_bounds = array<i64: 36, 8>}, {pipeline_mode = #tpu.pipeline_mode<synchronous>, transform_indices = @transform_2, window_bounds = array<i64: 1, 8>}, {pipeline_mode = #tpu.pipeline_mode<synchronous>, transform_indices = @transform_3, window_bounds = array<i64: 1, 8>}, {pipeline_mode = #tpu.pipeline_mode<synchronous>, transform_indices = @transform_4, window_bounds = array<i64: 72, 8>}, {pipeline_mode = #tpu.pipeline_mode<synchronous>, transform_indices = @transform_5, window_bounds = array<i64: 1, 8>}, {pipeline_mode = #tpu.pipeline_mode<synchronous>, transform_indices = @transform_6, window_bounds = array<i64: 1, 8>}, {pipeline_mode = #tpu.pipeline_mode<synchronous>, transform_indices = @transform_7, window_bounds = array<i64: 4, 8>}, {pipeline_mode = #tpu.pipeline_mode<synchronous>, transform_indices = @transform_8, window_bounds = array<i64: 1, 8>}, {pipeline_mode = #tpu.pipeline_mode<synchronous>, transform_indices = @transform_9, window_bounds = array<i64: 1, 8>}, {transform_indices = @transform_10, window_bounds = array<i64: 1, 16, 16, 8>}]} {
    %cst = arith.constant 0.000000e+00 : f32
    %0 = vector.broadcast %cst : f32 to vector<1x18x4xf32>
    %c0 = arith.constant 0 : index
    %c0_0 = arith.constant 0 : index
    %c0_1 = arith.constant 0 : index
    %1 = vector.load %arg12[%c0, %c0_0, %c0_1] : memref<18x18x4xf32, #tpu.memory_space<vmem>>, vector<1x18x4xf32>
    tpu.vector_store %arg12[%c0, %c0_0, %c0_1], %0 {strides = array<i32>} : memref<18x18x4xf32, #tpu.memory_space<vmem>>, vector<1x18x4xf32>,
    %cst_2 = arith.constant 0.000000e+00 : f32
    %2 = vector.broadcast %cst_2 : f32 to vector<1x18x4xf32>
    %c17 = arith.constant 17 : index
    %c0_3 = arith.constant 0 : index
    %c0_4 = arith.constant 0 : index
    %3 = vector.load %arg12[%c17, %c0_3, %c0_4] : memref<18x18x4xf32, #tpu.memory_space<vmem>>, vector<1x18x4xf32>
    tpu.vector_store %arg12[%c17, %c0_3, %c0_4], %2 {strides = array<i32>} : memref<18x18x4xf32, #tpu.memory_space<vmem>>, vector<1x18x4xf32>,
    %cst_5 = arith.constant 0.000000e+00 : f32
    %4 = vector.broadcast %cst_5 : f32 to vector<18x1x4xf32>
    %c0_6 = arith.constant 0 : index
    %c0_7 = arith.constant 0 : index
    %c0_8 = arith.constant 0 : index
    %5 = vector.load %arg12[%c0_6, %c0_7, %c0_8] : memref<18x18x4xf32, #tpu.memory_space<vmem>>, vector<18x1x4xf32>
    tpu.vector_store %arg12[%c0_6, %c0_7, %c0_8], %4 {strides = array<i32>} : memref<18x18x4xf32, #tpu.memory_space<vmem>>, vector<18x1x4xf32>,
    %cst_9 = arith.constant 0.000000e+00 : f32
    %6 = vector.broadcast %cst_9 : f32 to vector<18x1x4xf32>
    %c0_10 = arith.constant 0 : index
    %c17_11 = arith.constant 17 : index
    %c0_12 = arith.constant 0 : index
    %7 = vector.load %arg12[%c0_10, %c17_11, %c0_12] : memref<18x18x4xf32, #tpu.memory_space<vmem>>, vector<18x1x4xf32>
    tpu.vector_store %arg12[%c0_10, %c17_11, %c0_12], %6 {strides = array<i32>} : memref<18x18x4xf32, #tpu.memory_space<vmem>>, vector<18x1x4xf32>,
    %c0_13 = arith.constant 0 : index
    %c0_14 = arith.constant 0 : index
    %c0_15 = arith.constant 0 : index
    %c0_16 = arith.constant 0 : index
    %8 = vector.load %arg1[%c0_13, %c0_14, %c0_15, %c0_16] : memref<1x16x16x4xbf16, #tpu.memory_space<vmem>>, vector<1x16x16x4xbf16>
    %9 = vector.shape_cast %8 : vector<1x16x16x4xbf16> to vector<16x16x4xbf16>
    %10 = arith.extf %9 : vector<16x16x4xbf16> to vector<16x16x4xf32>
    %c1 = arith.constant 1 : index
    %c1_17 = arith.constant 1 : index
    %c0_18 = arith.constant 0 : index
    %11 = vector.load %arg12[%c1, %c1_17, %c0_18] : memref<18x18x4xf32, #tpu.memory_space<vmem>>, vector<16x16x4xf32>
    tpu.vector_store %arg12[%c1, %c1_17, %c0_18], %10 {strides = array<i32>} : memref<18x18x4xf32, #tpu.memory_space<vmem>>, vector<16x16x4xf32>,
    %c0_19 = arith.constant 0 : index
    %c0_20 = arith.constant 0 : index
    %c0_21 = arith.constant 0 : index
    %12 = vector.load %arg12[%c0_19, %c0_20, %c0_21] : memref<18x18x4xf32, #tpu.memory_space<vmem>>, vector<16x16x4xf32>
    %c0_22 = arith.constant 0 : index
    %c1_23 = arith.constant 1 : index
    %c0_24 = arith.constant 0 : index
    %13 = vector.load %arg12[%c0_22, %c1_23, %c0_24] : memref<18x18x4xf32, #tpu.memory_space<vmem>>, vector<16x16x4xf32>
    %c0_25 = arith.constant 0 : index
    %c2 = arith.constant 2 : index
    %c0_26 = arith.constant 0 : index
    %14 = vector.load %arg12[%c0_25, %c2, %c0_26] : memref<18x18x4xf32, #tpu.memory_space<vmem>>, vector<16x16x4xf32>
    %c1_27 = arith.constant 1 : index
    %c0_28 = arith.constant 0 : index
    %c0_29 = arith.constant 0 : index
    %15 = vector.load %arg12[%c1_27, %c0_28, %c0_29] : memref<18x18x4xf32, #tpu.memory_space<vmem>>, vector<16x16x4xf32>
    %c1_30 = arith.constant 1 : index
    %c1_31 = arith.constant 1 : index
    %c0_32 = arith.constant 0 : index
    %16 = vector.load %arg12[%c1_30, %c1_31, %c0_32] : memref<18x18x4xf32, #tpu.memory_space<vmem>>, vector<16x16x4xf32>
    %c1_33 = arith.constant 1 : index
    %c2_34 = arith.constant 2 : index
    %c0_35 = arith.constant 0 : index
    %17 = vector.load %arg12[%c1_33, %c2_34, %c0_35] : memref<18x18x4xf32, #tpu.memory_space<vmem>>, vector<16x16x4xf32>
    %c2_36 = arith.constant 2 : index
    %c0_37 = arith.constant 0 : index
    %c0_38 = arith.constant 0 : index
    %18 = vector.load %arg12[%c2_36, %c0_37, %c0_38] : memref<18x18x4xf32, #tpu.memory_space<vmem>>, vector<16x16x4xf32>
    %c2_39 = arith.constant 2 : index
    %c1_40 = arith.constant 1 : index
    %c0_41 = arith.constant 0 : index
    %19 = vector.load %arg12[%c2_39, %c1_40, %c0_41] : memref<18x18x4xf32, #tpu.memory_space<vmem>>, vector<16x16x4xf32>
    %c2_42 = arith.constant 2 : index
    %c2_43 = arith.constant 2 : index
    %c0_44 = arith.constant 0 : index
    %20 = vector.load %arg12[%c2_42, %c2_43, %c0_44] : memref<18x18x4xf32, #tpu.memory_space<vmem>>, vector<16x16x4xf32>
    %21 = tpu.concatenate %12, %13, %14, %15, %16, %17, %18, %19, %20 in 2 : vector<16x16x4xf32>, vector<16x16x4xf32>, vector<16x16x4xf32>, vector<16x16x4xf32>, vector<16x16x4xf32>, vector<16x16x4xf32>, vector<16x16x4xf32>, vector<16x16x4xf32>, vector<16x16x4xf32> -> vector<16x16x36xf32>
    %22 = vector.shape_cast %21 : vector<16x16x36xf32> to vector<256x36xf32>
    %23 = arith.truncf %22 : vector<256x36xf32> to vector<256x36xbf16>
    %c0_45 = arith.constant 0 : index
    %c0_46 = arith.constant 0 : index
    %24 = vector.load %arg2[%c0_45, %c0_46] : memref<36x8xbf16, #tpu.memory_space<vmem>>, vector<36x8xbf16>
    %cst_47 = arith.constant dense<0.000000e+00> : vector<256x8xf32>
    %25 = tpu.matmul %23, %24, %cst_47 {dimension_numbers = #tpu.dot_dimension_numbers<[1], [0], [0], [1], [0, 0, 1, 1], [], []>} : vector<256x36xbf16>, vector<36x8xbf16>, vector<256x8xf32> -> vector<256x8xf32>
    %c0_48 = arith.constant 0 : index
    %c0_49 = arith.constant 0 : index
    %26 = vector.load %arg3[%c0_48, %c0_49] : memref<1x8xf32, #tpu.memory_space<vmem>>, vector<1x8xf32>
    %27 = vector.shape_cast %26 : vector<1x8xf32> to vector<8xf32>
    %28 = vector.shape_cast %27 : vector<8xf32> to vector<1x8xf32>
    %29 = vector.broadcast %28 : vector<1x8xf32> to vector<256x8xf32>
    %30 = arith.mulf %25, %29 : vector<256x8xf32>
    %c0_50 = arith.constant 0 : index
    %c0_51 = arith.constant 0 : index
    %31 = vector.load %arg4[%c0_50, %c0_51] : memref<1x8xf32, #tpu.memory_space<vmem>>, vector<1x8xf32>
    %32 = vector.shape_cast %31 : vector<1x8xf32> to vector<8xf32>
    %33 = vector.shape_cast %32 : vector<8xf32> to vector<1x8xf32>
    %34 = vector.broadcast %33 : vector<1x8xf32> to vector<256x8xf32>
    %35 = arith.addf %30, %34 : vector<256x8xf32>
    %cst_52 = arith.constant 0.000000e+00 : f32
    %36 = vector.broadcast %cst_52 : f32 to vector<256x8xf32>
    %37 = arith.maximumf %35, %36 : vector<256x8xf32>
    %cst_53 = arith.constant 0.000000e+00 : f32
    %38 = vector.broadcast %cst_53 : f32 to vector<1x18x8xf32>
    %c0_54 = arith.constant 0 : index
    %c0_55 = arith.constant 0 : index
    %c0_56 = arith.constant 0 : index
    %39 = vector.load %arg13[%c0_54, %c0_55, %c0_56] : memref<18x18x8xf32, #tpu.memory_space<vmem>>, vector<1x18x8xf32>
    tpu.vector_store %arg13[%c0_54, %c0_55, %c0_56], %38 {strides = array<i32>} : memref<18x18x8xf32, #tpu.memory_space<vmem>>, vector<1x18x8xf32>,
    %cst_57 = arith.constant 0.000000e+00 : f32
    %40 = vector.broadcast %cst_57 : f32 to vector<1x18x8xf32>
    %c17_58 = arith.constant 17 : index
    %c0_59 = arith.constant 0 : index
    %c0_60 = arith.constant 0 : index
    %41 = vector.load %arg13[%c17_58, %c0_59, %c0_60] : memref<18x18x8xf32, #tpu.memory_space<vmem>>, vector<1x18x8xf32>
    tpu.vector_store %arg13[%c17_58, %c0_59, %c0_60], %40 {strides = array<i32>} : memref<18x18x8xf32, #tpu.memory_space<vmem>>, vector<1x18x8xf32>,
    %cst_61 = arith.constant 0.000000e+00 : f32
    %42 = vector.broadcast %cst_61 : f32 to vector<18x1x8xf32>
    %c0_62 = arith.constant 0 : index
    %c0_63 = arith.constant 0 : index
    %c0_64 = arith.constant 0 : index
    %43 = vector.load %arg13[%c0_62, %c0_63, %c0_64] : memref<18x18x8xf32, #tpu.memory_space<vmem>>, vector<18x1x8xf32>
    tpu.vector_store %arg13[%c0_62, %c0_63, %c0_64], %42 {strides = array<i32>} : memref<18x18x8xf32, #tpu.memory_space<vmem>>, vector<18x1x8xf32>,
    %cst_65 = arith.constant 0.000000e+00 : f32
    %44 = vector.broadcast %cst_65 : f32 to vector<18x1x8xf32>
    %c0_66 = arith.constant 0 : index
    %c17_67 = arith.constant 17 : index
    %c0_68 = arith.constant 0 : index
    %45 = vector.load %arg13[%c0_66, %c17_67, %c0_68] : memref<18x18x8xf32, #tpu.memory_space<vmem>>, vector<18x1x8xf32>
    tpu.vector_store %arg13[%c0_66, %c17_67, %c0_68], %44 {strides = array<i32>} : memref<18x18x8xf32, #tpu.memory_space<vmem>>, vector<18x1x8xf32>,
    %46 = vector.shape_cast %37 : vector<256x8xf32> to vector<16x16x8xf32>
    %c1_69 = arith.constant 1 : index
    %c1_70 = arith.constant 1 : index
    %c0_71 = arith.constant 0 : index
    %47 = vector.load %arg13[%c1_69, %c1_70, %c0_71] : memref<18x18x8xf32, #tpu.memory_space<vmem>>, vector<16x16x8xf32>
    tpu.vector_store %arg13[%c1_69, %c1_70, %c0_71], %46 {strides = array<i32>} : memref<18x18x8xf32, #tpu.memory_space<vmem>>, vector<16x16x8xf32>,
    %c0_72 = arith.constant 0 : index
    %c0_73 = arith.constant 0 : index
    %c0_74 = arith.constant 0 : index
    %48 = vector.load %arg13[%c0_72, %c0_73, %c0_74] : memref<18x18x8xf32, #tpu.memory_space<vmem>>, vector<16x16x8xf32>
    %c0_75 = arith.constant 0 : index
    %c1_76 = arith.constant 1 : index
    %c0_77 = arith.constant 0 : index
    %49 = vector.load %arg13[%c0_75, %c1_76, %c0_77] : memref<18x18x8xf32, #tpu.memory_space<vmem>>, vector<16x16x8xf32>
    %c0_78 = arith.constant 0 : index
    %c2_79 = arith.constant 2 : index
    %c0_80 = arith.constant 0 : index
    %50 = vector.load %arg13[%c0_78, %c2_79, %c0_80] : memref<18x18x8xf32, #tpu.memory_space<vmem>>, vector<16x16x8xf32>
    %c1_81 = arith.constant 1 : index
    %c0_82 = arith.constant 0 : index
    %c0_83 = arith.constant 0 : index
    %51 = vector.load %arg13[%c1_81, %c0_82, %c0_83] : memref<18x18x8xf32, #tpu.memory_space<vmem>>, vector<16x16x8xf32>
    %c1_84 = arith.constant 1 : index
    %c1_85 = arith.constant 1 : index
    %c0_86 = arith.constant 0 : index
    %52 = vector.load %arg13[%c1_84, %c1_85, %c0_86] : memref<18x18x8xf32, #tpu.memory_space<vmem>>, vector<16x16x8xf32>
    %c1_87 = arith.constant 1 : index
    %c2_88 = arith.constant 2 : index
    %c0_89 = arith.constant 0 : index
    %53 = vector.load %arg13[%c1_87, %c2_88, %c0_89] : memref<18x18x8xf32, #tpu.memory_space<vmem>>, vector<16x16x8xf32>
    %c2_90 = arith.constant 2 : index
    %c0_91 = arith.constant 0 : index
    %c0_92 = arith.constant 0 : index
    %54 = vector.load %arg13[%c2_90, %c0_91, %c0_92] : memref<18x18x8xf32, #tpu.memory_space<vmem>>, vector<16x16x8xf32>
    %c2_93 = arith.constant 2 : index
    %c1_94 = arith.constant 1 : index
    %c0_95 = arith.constant 0 : index
    %55 = vector.load %arg13[%c2_93, %c1_94, %c0_95] : memref<18x18x8xf32, #tpu.memory_space<vmem>>, vector<16x16x8xf32>
    %c2_96 = arith.constant 2 : index
    %c2_97 = arith.constant 2 : index
    %c0_98 = arith.constant 0 : index
    %56 = vector.load %arg13[%c2_96, %c2_97, %c0_98] : memref<18x18x8xf32, #tpu.memory_space<vmem>>, vector<16x16x8xf32>
    %57 = tpu.concatenate %48, %49, %50, %51, %52, %53, %54, %55, %56 in 2 : vector<16x16x8xf32>, vector<16x16x8xf32>, vector<16x16x8xf32>, vector<16x16x8xf32>, vector<16x16x8xf32>, vector<16x16x8xf32>, vector<16x16x8xf32>, vector<16x16x8xf32>, vector<16x16x8xf32> -> vector<16x16x72xf32>
    %58 = vector.shape_cast %57 : vector<16x16x72xf32> to vector<256x72xf32>
    %59 = arith.truncf %58 : vector<256x72xf32> to vector<256x72xbf16>
    %c0_99 = arith.constant 0 : index
    %c0_100 = arith.constant 0 : index
    %60 = vector.load %arg5[%c0_99, %c0_100] : memref<72x8xbf16, #tpu.memory_space<vmem>>, vector<72x8xbf16>
    %cst_101 = arith.constant dense<0.000000e+00> : vector<256x8xf32>
    %61 = tpu.matmul %59, %60, %cst_101 {dimension_numbers = #tpu.dot_dimension_numbers<[1], [0], [0], [1], [0, 0, 1, 1], [], []>} : vector<256x72xbf16>, vector<72x8xbf16>, vector<256x8xf32> -> vector<256x8xf32>
    %c0_102 = arith.constant 0 : index
    %c0_103 = arith.constant 0 : index
    %62 = vector.load %arg6[%c0_102, %c0_103] : memref<1x8xf32, #tpu.memory_space<vmem>>, vector<1x8xf32>
    %63 = vector.shape_cast %62 : vector<1x8xf32> to vector<8xf32>
    %64 = vector.shape_cast %63 : vector<8xf32> to vector<1x8xf32>
    %65 = vector.broadcast %64 : vector<1x8xf32> to vector<256x8xf32>
    %66 = arith.mulf %61, %65 : vector<256x8xf32>
    %c0_104 = arith.constant 0 : index
    %c0_105 = arith.constant 0 : index
    %67 = vector.load %arg7[%c0_104, %c0_105] : memref<1x8xf32, #tpu.memory_space<vmem>>, vector<1x8xf32>
    %68 = vector.shape_cast %67 : vector<1x8xf32> to vector<8xf32>
    %69 = vector.shape_cast %68 : vector<8xf32> to vector<1x8xf32>
    %70 = vector.broadcast %69 : vector<1x8xf32> to vector<256x8xf32>
    %71 = arith.addf %66, %70 : vector<256x8xf32>
    %c1_106 = arith.constant 1 : index
    %c1_107 = arith.constant 1 : index
    %c0_108 = arith.constant 0 : index
    %72 = vector.load %arg12[%c1_106, %c1_107, %c0_108] : memref<18x18x4xf32, #tpu.memory_space<vmem>>, vector<16x16x4xf32>
    %73 = vector.shape_cast %72 : vector<16x16x4xf32> to vector<256x4xf32>
    %74 = arith.truncf %73 : vector<256x4xf32> to vector<256x4xbf16>
    %c0_109 = arith.constant 0 : index
    %c0_110 = arith.constant 0 : index
    %75 = vector.load %arg8[%c0_109, %c0_110] : memref<4x8xbf16, #tpu.memory_space<vmem>>, vector<4x8xbf16>
    %cst_111 = arith.constant dense<0.000000e+00> : vector<256x8xf32>
    %76 = tpu.matmul %74, %75, %cst_111 {dimension_numbers = #tpu.dot_dimension_numbers<[1], [0], [0], [1], [0, 0, 1, 1], [], []>} : vector<256x4xbf16>, vector<4x8xbf16>, vector<256x8xf32> -> vector<256x8xf32>
    %c0_112 = arith.constant 0 : index
    %c0_113 = arith.constant 0 : index
    %77 = vector.load %arg9[%c0_112, %c0_113] : memref<1x8xf32, #tpu.memory_space<vmem>>, vector<1x8xf32>
    %78 = vector.shape_cast %77 : vector<1x8xf32> to vector<8xf32>
    %79 = vector.shape_cast %78 : vector<8xf32> to vector<1x8xf32>
    %80 = vector.broadcast %79 : vector<1x8xf32> to vector<256x8xf32>
    %81 = arith.mulf %76, %80 : vector<256x8xf32>
    %c0_114 = arith.constant 0 : index
    %c0_115 = arith.constant 0 : index
    %82 = vector.load %arg10[%c0_114, %c0_115] : memref<1x8xf32, #tpu.memory_space<vmem>>, vector<1x8xf32>
    %83 = vector.shape_cast %82 : vector<1x8xf32> to vector<8xf32>
    %84 = vector.shape_cast %83 : vector<8xf32> to vector<1x8xf32>
    %85 = vector.broadcast %84 : vector<1x8xf32> to vector<256x8xf32>
    %86 = arith.addf %81, %85 : vector<256x8xf32>
    %87 = arith.addf %71, %86 : vector<256x8xf32>
    %cst_116 = arith.constant 0.000000e+00 : f32
    %88 = vector.broadcast %cst_116 : f32 to vector<256x8xf32>
    %89 = arith.maximumf %87, %88 : vector<256x8xf32>
    %90 = vector.shape_cast %89 : vector<256x8xf32> to vector<1x16x16x8xf32>
    %c0_117 = arith.constant 0 : index
    %c0_118 = arith.constant 0 : index
    %c0_119 = arith.constant 0 : index
    %c0_120 = arith.constant 0 : index
    %91 = vector.load %arg11[%c0_117, %c0_118, %c0_119, %c0_120] : memref<1x16x16x8xf32, #tpu.memory_space<vmem>>, vector<1x16x16x8xf32>
    tpu.vector_store %arg11[%c0_117, %c0_118, %c0_119, %c0_120], %90 {strides = array<i32>} : memref<1x16x16x8xf32, #tpu.memory_space<vmem>>, vector<1x16x16x8xf32>,
    return
  }
  func.func @transform_0(%arg0: i32) -> (i32, i32, i32, i32) {
    %c0_i32 = arith.constant 0 : i32
    %c0_i32_0 = arith.constant 0 : i32
    %c0_i32_1 = arith.constant 0 : i32
    %c0_i32_2 = arith.constant 0 : i32
    return %arg0, %c0_i32, %c0_i32_0, %c0_i32_1 : i32, i32, i32, i32
  }
  func.func @transform_1(%arg0: i32) -> (i32, i32) {
    %c0_i32 = arith.constant 0 : i32
    %c0_i32_0 = arith.constant 0 : i32
    %c0_i32_1 = arith.constant 0 : i32
    return %c0_i32, %c0_i32_0 : i32, i32
  }
  func.func @transform_2(%arg0: i32) -> (i32, i32) {
    %c0_i32 = arith.constant 0 : i32
    %c0_i32_0 = arith.constant 0 : i32
    %c0_i32_1 = arith.constant 0 : i32
    return %c0_i32, %c0_i32_0 : i32, i32
  }
  func.func @transform_3(%arg0: i32) -> (i32, i32) {
    %c0_i32 = arith.constant 0 : i32
    %c0_i32_0 = arith.constant 0 : i32
    %c0_i32_1 = arith.constant 0 : i32
    return %c0_i32, %c0_i32_0 : i32, i32
  }
  func.func @transform_4(%arg0: i32) -> (i32, i32) {
    %c0_i32 = arith.constant 0 : i32
    %c0_i32_0 = arith.constant 0 : i32
    %c0_i32_1 = arith.constant 0 : i32
    return %c0_i32, %c0_i32_0 : i32, i32
  }
  func.func @transform_5(%arg0: i32) -> (i32, i32) {
    %c0_i32 = arith.constant 0 : i32
    %c0_i32_0 = arith.constant 0 : i32
    %c0_i32_1 = arith.constant 0 : i32
    return %c0_i32, %c0_i32_0 : i32, i32
  }
  func.func @transform_6(%arg0: i32) -> (i32, i32) {
    %c0_i32 = arith.constant 0 : i32
    %c0_i32_0 = arith.constant 0 : i32
    %c0_i32_1 = arith.constant 0 : i32
    return %c0_i32, %c0_i32_0 : i32, i32
  }
  func.func @transform_7(%arg0: i32) -> (i32, i32) {
    %c0_i32 = arith.constant 0 : i32
    %c0_i32_0 = arith.constant 0 : i32
    %c0_i32_1 = arith.constant 0 : i32
    return %c0_i32, %c0_i32_0 : i32, i32
  }
  func.func @transform_8(%arg0: i32) -> (i32, i32) {
    %c0_i32 = arith.constant 0 : i32
    %c0_i32_0 = arith.constant 0 : i32
    %c0_i32_1 = arith.constant 0 : i32
    return %c0_i32, %c0_i32_0 : i32, i32
  }
  func.func @transform_9(%arg0: i32) -> (i32, i32) {
    %c0_i32 = arith.constant 0 : i32
    %c0_i32_0 = arith.constant 0 : i32
    %c0_i32_1 = arith.constant 0 : i32
    return %c0_i32, %c0_i32_0 : i32, i32
  }
  func.func @transform_10(%arg0: i32) -> (i32, i32, i32, i32) {
    %c0_i32 = arith.constant 0 : i32
    %c0_i32_0 = arith.constant 0 : i32
    %c0_i32_1 = arith.constant 0 : i32
    %c0_i32_2 = arith.constant 0 : i32
    return %arg0, %c0_i32, %c0_i32_0, %c0_i32_1 : i32, i32, i32, i32
  }
}

</mosaic_0001>

<bundles_post_ra>
// kernel: tpu_custom_call.1
= control target key start
LH: loop header
LB: loop body
LE: loop exit
PB: predicated region body
PF: predicated region fallthrough
CT: control target
= control target key end

     0   :  { %s6654_s13 = smov 0   ;;  %s9663_s0 = inlined_call_operand.vmem [shape: bf16[2,16,16,4], index: 0, kind: input, shape index: {}]   ;;  %s9664_s1 = inlined_call_operand.vmem [shape: bf16[36,8], index: 1, kind: input, shape index: {}]   ;;  %s9665_s2 = inlined_call_operand.vmem [shape: f32[1,8], index: 2, kind: input, shape index: {}]   ;;  %s9666_s3 = inlined_call_operand.vmem [shape: f32[1,8], index: 3, kind: input, shape index: {}]   ;;  %s9667_s4 = inlined_call_operand.vmem [shape: bf16[72,8], index: 4, kind: input, shape index: {}]   ;;  %s9668_s5 = inlined_call_operand.vmem [shape: f32[1,8], index: 5, kind: input, shape index: {}]   ;;  %s9669_s6 = inlined_call_operand.vmem [shape: f32[1,8], index: 6, kind: input, shape index: {}]   ;;  %s9670_s7 = inlined_call_operand.vmem [shape: bf16[4,8], index: 7, kind: input, shape index: {}]   ;;  %s9671_s8 = inlined_call_operand.vmem [shape: f32[1,8], index: 8, kind: input, shape index: {}]   ;;  %s9672_s9 = inlined_call_operand.vmem [shape: f32[1,8], index: 9, kind: input, shape index: {}]   ;;  %s9673_s10 = inlined_call_operand.vmem [shape: f32[2,16,16,8], index: 10, kind: output, shape index: {}]  }
   0x1 LB: > { %s4925_s14 = sadd.s32 4294967295, %s6584_s13   ;;  %p4929_p0 = scmp.ge.s32.totalorder %s6584_s13, 1  ;;  %s6584_s13 = sphi %s6654_s13, %s20_s13  }
   0x2   : > { %p312_p1 = scmp.lt.s32.totalorder %s6584_s13, 3 }
   0x4   : > { %p313_p2 = pnand %p4929_p0, %p312_p1 }
   0x6   : > { %316 = sbr.rel (%p313_p2) target bundleno = 1173 (0x495), region = 60 }
   0xb   : > { %vm361_vm0 = vcmask 31744   ;;  %vm364_vm1 = vcmask 25600   ;;  %vm370_vm2 = vcmask 24576   ;;  %p6664_p3 = scmp.lt.s32.totalorder %s4925_s14, 1  ;;  %v9674_v0 = vmov 0.0   ;;  %s6587_s20 = smov 4  }
   0xc   : > { %362 = vst.msk [vmem:[#allocation2] sm:$0xff] %vm361_vm0, %v9674_v0  ;;  %363 = vst.msk [vmem:[#allocation2 + $0x8] sm:$0xff] %vm361_vm0, %v9674_v0  ;;  %vm1849_vm3 = vcmask 64512   ;;  %s6588_s21 = smov 8   ;;  %s6589_s22 = smov 12   ;;  %vm2165_vm4 = vcmask 1041408  }
   0xd   : > { %365 = vst.msk [vmem:[#allocation2 + $0x10] sm:$0x3] %vm364_vm1, %v9674_v0  ;;  %369 = vst.msk [vmem:[#allocation2 + $0x1a8] sm:$0x3] %vm364_vm1, %v9674_v0  ;;  %s9901_s14 = smov (!%p6664_p3, %s4925_s14), 1  ;;  %s6590_s23 = smov 16  }
   0xe   : > { %367 = vst.msk [vmem:[#allocation2 + $0x198] sm:$0xff] %vm361_vm0, %v9674_v0  ;;  %368 = vst.msk [vmem:[#allocation2 + $0x1a0] sm:$0xff] %vm361_vm0, %v9674_v0  ;;  %s4998_s16 = sshll.u32 %s9901_s14, 7  ;;  %s6591_s24 = smov 20   ;;  %vm1882_vm5 = vcmask 97280   ;;  %vm1915_vm6 = vcmask 130048  }
   0xf   : > { %372 = vst.msk [vmem:[#allocation2 + $0x18] sm:$0x1] %vm370_vm2, %v9674_v0  ;;  %373 = vst.msk [vmem:[#allocation2 + $0x30] sm:$0x1] %vm370_vm2, %v9674_v0  ;;  %s6760_s19 = scalar_lea.vmem %s9663_s0, %s4998_s16  ;;  %s6592_s25 = smov 24   ;;  %vm1948_vm7 = vcmask 162816  }
  0x10   : > { %374 = vst.msk [vmem:[#allocation2 + $0x48] sm:$0x1] %vm370_vm2, %v9674_v0  ;;  %375 = vst.msk [vmem:[#allocation2 + $0x60] sm:$0x1] %vm370_vm2, %v9674_v0  ;;  %v5064_v1 = vld [vmem:[%s6760_s19 + $0x8] sm:$0xff]   ;;  %v5001_v2 = vld [vmem:[%s6760_s19] sm:$0xff]  }
  0x11   : > { %376 = vst.msk [vmem:[#allocation2 + $0x78] sm:$0x1] %vm370_vm2, %v9674_v0  ;;  %377 = vst.msk [vmem:[#allocation2 + $0x90] sm:$0x1] %vm370_vm2, %v9674_v0  ;;  %v5065_v3 = vld [vmem:[%s6760_s19 + $0x10] sm:$0xff]   ;;  %v5006_v4 = vunpack.c.l.bf16 %v5064_v1  ;;  %v5007_v5 = vunpack.c.h.bf16 %v5064_v1  ;;  %v5002_v6 = vunpack.c.l.bf16 %v5001_v2  ;;  %v5003_v7 = vunpack.c.h.bf16 %v5001_v2  ;;  %v5066_v8 = vld [vmem:[%s6760_s19 + $0x18] sm:$0xff]  }
  0x12   : > { %378 = vst.msk [vmem:[#allocation2 + $0xa8] sm:$0x1] %vm370_vm2, %v9674_v0  ;;  %379 = vst.msk [vmem:[#allocation2 + $0xc0] sm:$0x1] %vm370_vm2, %v9674_v0  ;;  %v5067_v9 = vld [vmem:[%s6760_s19 + $0x20] sm:$0xff]   ;;  %v5068_v10 = vld [vmem:[%s6760_s19 + $0x28] sm:$0xff]   ;;  %v5010_v13 = vunpack.c.l.bf16 %v5065_v3  ;;  %v5011_v14 = vunpack.c.h.bf16 %v5065_v3  ;;  %v5014_v15 = vunpack.c.l.bf16 %v5066_v8  ;;  %v5015_v16 = vunpack.c.h.bf16 %v5066_v8 }
  0x13   : > { %380 = vst.msk [vmem:[#allocation2 + $0xd8] sm:$0x1] %vm370_vm2, %v9674_v0  ;;  %381 = vst.msk [vmem:[#allocation2 + $0xf0] sm:$0x1] %vm370_vm2, %v9674_v0  ;;  %v536_v11 = vld [vmem:[#allocation2 + $0x1] sm:$0xff]  ;;  %v5069_v17 = vld [vmem:[%s6760_s19 + $0x30] sm:$0xff]   ;;  %v5018_v19 = vunpack.c.l.bf16 %v5067_v9  ;;  %v5019_v20 = vunpack.c.h.bf16 %v5067_v9  ;;  %v5022_v21 = vunpack.c.l.bf16 %v5068_v10  ;;  %v5023_v25 = vunpack.c.h.bf16 %v5068_v10 }
  0x14   : > { %382 = vst.msk [vmem:[#allocation2 + $0x108] sm:$0x1] %vm370_vm2, %v9674_v0  ;;  %383 = vst.msk [vmem:[#allocation2 + $0x120] sm:$0x1] %vm370_vm2, %v9674_v0  ;;  %v537_v12 = vld [vmem:[#allocation2 + $0x9] sm:$0xff]  ;;  %v5070_v22 = vld [vmem:[%s6760_s19 + $0x38] sm:$0xff]   ;;  %v5026_v26 = vunpack.c.l.bf16 %v5069_v17  ;;  %v5027_v27 = vunpack.c.h.bf16 %v5069_v17 }
  0x15   : > { %384 = vst.msk [vmem:[#allocation2 + $0x138] sm:$0x1] %vm370_vm2, %v9674_v0  ;;  %385 = vst.msk [vmem:[#allocation2 + $0x150] sm:$0x1] %vm370_vm2, %v9674_v0  ;;  %v5281_v18 = vpack.i.bf16 %v537_v12, %v536_v11  ;;  %v5071_v23 = vld [vmem:[%s6760_s19 + $0x40] sm:$0xff]   ;;  %v5072_v24 = vld [vmem:[%s6760_s19 + $0x48] sm:$0xff]   ;;  %v5030_v28 = vunpack.c.l.bf16 %v5070_v22  ;;  %v5031_v32 = vunpack.c.h.bf16 %v5070_v22 }
  0x16   : > { %386 = vst.msk [vmem:[#allocation2 + $0x168] sm:$0x1] %vm370_vm2, %v9674_v0  ;;  %387 = vst.msk [vmem:[#allocation2 + $0x180] sm:$0x1] %vm370_vm2, %v9674_v0  ;;  %v5073_v29 = vld [vmem:[%s6760_s19 + $0x50] sm:$0xff]   ;;  %v5074_v30 = vld [vmem:[%s6760_s19 + $0x58] sm:$0xff]   ;;  %v5034_v33 = vunpack.c.l.bf16 %v5071_v23  ;;  %v5035_v34 = vunpack.c.h.bf16 %v5071_v23  ;;  %v5038_v35 = vunpack.c.l.bf16 %v5072_v24  ;;  %v5039_v38 = vunpack.c.h.bf16 %v5072_v24 }
  0x17   : > { %390 = vst.msk [vmem:[#allocation2 + $0x29] sm:$0x1] %vm370_vm2, %v9674_v0  ;;  %391 = vst.msk [vmem:[#allocation2 + $0x41] sm:$0x1] %vm370_vm2, %v9674_v0  ;;  %v5075_v31 = vld [vmem:[%s6760_s19 + $0x60] sm:$0xff]   ;;  %5282 = vrot.lane.b32.xlu0 %v5281_v18, %s6587_s20  ;;  %v5076_v36 = vld [vmem:[%s6760_s19 + $0x68] sm:$0xff]   ;;  %v5042_v39 = vunpack.c.l.bf16 %v5073_v29  ;;  %v5043_v40 = vunpack.c.h.bf16 %v5073_v29  ;;  %v5046_v41 = vunpack.c.l.bf16 %v5074_v30  ;;  %v5047_v43 = vunpack.c.h.bf16 %v5074_v30 }
  0x18   : > { %392 = vst.msk [vmem:[#allocation2 + $0x59] sm:$0x1] %vm370_vm2, %v9674_v0  ;;  %393 = vst.msk [vmem:[#allocation2 + $0x71] sm:$0x1] %vm370_vm2, %v9674_v0  ;;  %v5077_v37 = vld [vmem:[%s6760_s19 + $0x70] sm:$0xff]   ;;  %v5078_v42 = vld [vmem:[%s6760_s19 + $0x78] sm:$0xff]   ;;  %v5050_v44 = vunpack.c.l.bf16 %v5075_v31  ;;  %v5051_v45 = vunpack.c.h.bf16 %v5075_v31  ;;  %v5054_v46 = vunpack.c.l.bf16 %v5076_v36  ;;  %v5055_v47 = vunpack.c.h.bf16 %v5076_v36 }
  0x19   : > { %394 = vst.msk [vmem:[#allocation2 + $0x89] sm:$0x1] %vm370_vm2, %v9674_v0  ;;  %395 = vst.msk [vmem:[#allocation2 + $0xa1] sm:$0x1] %vm370_vm2, %v9674_v0  ;;  %v5058_v48 = vunpack.c.l.bf16 %v5077_v37  ;;  %v5059_v49 = vunpack.c.h.bf16 %v5077_v37  ;;  %v5062_v50 = vunpack.c.l.bf16 %v5078_v42  ;;  %v5063_v51 = vunpack.c.h.bf16 %v5078_v42  ;;  %s6593_s28 = smov 28   ;;  %s6594_s15 = smov 32  }
  0x1a   : > { %396 = vst.msk [vmem:[#allocation2 + $0xb9] sm:$0x1] %vm370_vm2, %v9674_v0  ;;  %397 = vst.msk [vmem:[#allocation2 + $0xd1] sm:$0x1] %vm370_vm2, %v9674_v0  ;;  %vm1981_vm8 = vcmask 195584   ;;  %vm2014_vm9 = vcmask 228352  }
  0x1b   : > { %398 = vst.msk [vmem:[#allocation2 + $0xe9] sm:$0x1] %vm370_vm2, %v9674_v0  ;;  %399 = vst.msk [vmem:[#allocation2 + $0x101] sm:$0x1] %vm370_vm2, %v9674_v0  ;;  %vm2047_vm10 = vcmask 261120   ;;  %vm2116_vm11 = vcmask 293888  }
  0x1c   : > { %400 = vst.msk [vmem:[#allocation2 + $0x119] sm:$0x1] %vm370_vm2, %v9674_v0  ;;  %401 = vst.msk [vmem:[#allocation2 + $0x131] sm:$0x1] %vm370_vm2, %v9674_v0  ;;  %vm2442_vm12 = vcmask 58368   ;;  %vm2448_vm13 = vcmask 57344  }
  0x1d   : > { %402 = vst.msk [vmem:[#allocation2 + $0x149] sm:$0x1] %vm370_vm2, %v9674_v0  ;;  %403 = vst.msk [vmem:[#allocation2 + $0x161] sm:$0x1] %vm370_vm2, %v9674_v0  ;;  %s6598_s26 = smov 64   ;;  %vm4192_vm14 = vcmask 1043456  }
  0x1e   : > { %404 = vst.msk [vmem:[#allocation2 + $0x179] sm:$0x1] %vm370_vm2, %v9674_v0  ;;  %405 = vst.msk [vmem:[#allocation2 + $0x191] sm:$0x1] %vm370_vm2, %v9674_v0  ;;  %vm3959_vm15 = vcmask 326656   ;;  %vm3992_vm1 = vcmask 392192  }
  0x1f   : > { %389 = vst.msk [vmem:[#allocation2 + $0x11] sm:$0x1] %vm370_vm2, %v9674_v0  ;;  %406 = vst.msk [vmem:[#allocation2 + $0x1a9] sm:$0x1] %vm370_vm2, %v9674_v0  ;;  %s4999_s29 = sshll.u32 %s9901_s14, 8 }
  0x20   : > { %371 = vst.msk [vmem:[#allocation2] sm:$0x1] %vm370_vm2, %v9674_v0  ;;  %388 = vst.msk [vmem:[#allocation2 + $0x198] sm:$0x1] %vm370_vm2, %v9674_v0  ;;  %vm4025_vm2 = vcmask 457728   ;;  %s9478_s12 = scalar_lea.vmem %s9673_s10, %s4999_s29 }
  0x21   : > { %474 = vst.msk [vmem:[#allocation2 + $0x31] sm:$0xff] %vm361_vm0, %v5006_v4  ;;  %475 = vst.msk [vmem:[#allocation2 + $0x39] sm:$0xff] %vm361_vm0, %v5007_v5 }
  0x22   : > { %472 = vst.msk [vmem:[#allocation2 + $0x19] sm:$0xff] %vm361_vm0, %v5002_v6  ;;  %473 = vst.msk [vmem:[#allocation2 + $0x21] sm:$0xff] %vm361_vm0, %v5003_v7 }
  0x23   : > { %476 = vst.msk [vmem:[#allocation2 + $0x49] sm:$0xff] %vm361_vm0, %v5010_v13  ;;  %477 = vst.msk [vmem:[#allocation2 + $0x51] sm:$0xff] %vm361_vm0, %v5011_v14 }
  0x24   : > { %478 = vst.msk [vmem:[#allocation2 + $0x61] sm:$0xff] %vm361_vm0, %v5014_v15  ;;  %479 = vst.msk [vmem:[#allocation2 + $0x69] sm:$0xff] %vm361_vm0, %v5015_v16 }
  0x25   : > { %480 = vst.msk [vmem:[#allocation2 + $0x79] sm:$0xff] %vm361_vm0, %v5018_v19  ;;  %481 = vst.msk [vmem:[#allocation2 + $0x81] sm:$0xff] %vm361_vm0, %v5019_v20 }
  0x26   : > { %482 = vst.msk [vmem:[#allocation2 + $0x91] sm:$0xff] %vm361_vm0, %v5022_v21  ;;  %483 = vst.msk [vmem:[#allocation2 + $0x99] sm:$0xff] %vm361_vm0, %v5023_v25 }
  0x27   : > { %484 = vst.msk [vmem:[#allocation2 + $0xa9] sm:$0xff] %vm361_vm0, %v5026_v26  ;;  %485 = vst.msk [vmem:[#allocation2 + $0xb1] sm:$0xff] %vm361_vm0, %v5027_v27 }
  0x28   : > { %486 = vst.msk [vmem:[#allocation2 + $0xc1] sm:$0xff] %vm361_vm0, %v5030_v28  ;;  %487 = vst.msk [vmem:[#allocation2 + $0xc9] sm:$0xff] %vm361_vm0, %v5031_v32  ;;  %v540_v52 = vld [vmem:[#allocation2 + $0x31] sm:$0xff]  ;;  %v541_v53 = vld [vmem:[#allocation2 + $0x39] sm:$0xff] }
  0x29   : > { %488 = vst.msk [vmem:[#allocation2 + $0xd9] sm:$0xff] %vm361_vm0, %v5034_v33  ;;  %489 = vst.msk [vmem:[#allocation2 + $0xe1] sm:$0xff] %vm361_vm0, %v5035_v34  ;;  %v538_v54 = vld [vmem:[#allocation2 + $0x19] sm:$0xff]  ;;  %v6809_v55 = vpack.i.bf16 %v541_v53, %v540_v52  ;;  %v539_v56 = vld [vmem:[#allocation2 + $0x21] sm:$0xff] }
  0x2a   : > { %490 = vst.msk [vmem:[#allocation2 + $0xf1] sm:$0xff] %vm361_vm0, %v5038_v35  ;;  %491 = vst.msk [vmem:[#allocation2 + $0xf9] sm:$0xff] %vm361_vm0, %v5039_v38  ;;  %v542_v57 = vld [vmem:[#allocation2 + $0x49] sm:$0xff]  ;;  %v543_v58 = vld [vmem:[#allocation2 + $0x51] sm:$0xff]  ;;  %v6813_v59 = vpack.i.bf16 %v539_v56, %v538_v54 }
  0x2b   : > { %492 = vst.msk [vmem:[#allocation2 + $0x109] sm:$0xff] %vm361_vm0, %v5042_v39  ;;  %493 = vst.msk [vmem:[#allocation2 + $0x111] sm:$0xff] %vm361_vm0, %v5043_v40  ;;  %v544_v60 = vld [vmem:[#allocation2 + $0x61] sm:$0xff]  ;;  %v545_v61 = vld [vmem:[#allocation2 + $0x69] sm:$0xff]  ;;  %5292 = vrot.lane.b32.xlu1 %v6809_v55, %s6587_s20  ;;  %v6817_v62 = vpack.i.bf16 %v543_v58, %v542_v57 }
  0x2c   : > { %494 = vst.msk [vmem:[#allocation2 + $0x121] sm:$0xff] %vm361_vm0, %v5046_v41  ;;  %495 = vst.msk [vmem:[#allocation2 + $0x129] sm:$0xff] %vm361_vm0, %v5047_v43  ;;  %5287 = vrot.lane.b32.xlu0 %v6813_v59, %s6587_s20  ;;  %v6821_v63 = vpack.i.bf16 %v545_v61, %v544_v60  ;;  %v546_v1 = vld [vmem:[#allocation2 + $0x79] sm:$0xff]  ;;  %v547_v2 = vld [vmem:[#allocation2 + $0x81] sm:$0xff] }
  0x2d   : > { %496 = vst.msk [vmem:[#allocation2 + $0x139] sm:$0xff] %vm361_vm0, %v5050_v44  ;;  %497 = vst.msk [vmem:[#allocation2 + $0x141] sm:$0xff] %vm361_vm0, %v5051_v45  ;;  %v548_v3 = vld [vmem:[#allocation2 + $0x91] sm:$0xff]  ;;  %v549_v4 = vld [vmem:[#allocation2 + $0x99] sm:$0xff]  ;;  %v6825_v5 = vpack.i.bf16 %v547_v2, %v546_v1 }
  0x2e   : > { %498 = vst.msk [vmem:[#allocation2 + $0x151] sm:$0xff] %vm361_vm0, %v5054_v46  ;;  %499 = vst.msk [vmem:[#allocation2 + $0x159] sm:$0xff] %vm361_vm0, %v5055_v47  ;;  %v6829_v6 = vpack.i.bf16 %v549_v4, %v548_v3  ;;  %v550_v7 = vld [vmem:[#allocation2 + $0xa9] sm:$0xff]  ;;  %v551_v8 = vld [vmem:[#allocation2 + $0xb1] sm:$0xff] }
  0x2f   : > { %500 = vst.msk [vmem:[#allocation2 + $0x169] sm:$0xff] %vm361_vm0, %v5058_v48  ;;  %501 = vst.msk [vmem:[#allocation2 + $0x171] sm:$0xff] %vm361_vm0, %v5059_v49  ;;  %5297 = vrot.lane.b32.xlu1 %v6817_v62, %s6587_s20  ;;  %v552_v9 = vld [vmem:[#allocation2 + $0xc1] sm:$0xff]  ;;  %v553_v10 = vld [vmem:[#allocation2 + $0xc9] sm:$0xff]  ;;  %v6833_v11 = vpack.i.bf16 %v551_v8, %v550_v7 }
  0x30   : > { %502 = vst.msk [vmem:[#allocation2 + $0x181] sm:$0xff] %vm361_vm0, %v5062_v50  ;;  %503 = vst.msk [vmem:[#allocation2 + $0x189] sm:$0xff] %vm361_vm0, %v5063_v51  ;;  %5302 = vrot.lane.b32.xlu0 %v6821_v63, %s6587_s20  ;;  %v6837_v12 = vpack.i.bf16 %v553_v10, %v552_v9  ;;  %v554_v13 = vld [vmem:[#allocation2 + $0xd9] sm:$0xff]  ;;  %v555_v14 = vld [vmem:[#allocation2 + $0xe1] sm:$0xff] }
  0x31   : > { %v556_v15 = vld [vmem:[#allocation2 + $0xf1] sm:$0xff]  ;;  %v557_v16 = vld [vmem:[#allocation2 + $0xf9] sm:$0xff]  ;;  %v6841_v17 = vpack.i.bf16 %v555_v14, %v554_v13  ;;  %2440 = vst.msk [vmem:[#allocation3] sm:$0xff] %vm1849_vm3, %v9674_v0  ;;  %2441 = vst.msk [vmem:[#allocation3 + $0x8] sm:$0xff] %vm1849_vm3, %v9674_v0 }
  0x32   : > { %v6845_v18 = vpack.i.bf16 %v557_v16, %v556_v15  ;;  %v558_v19 = vld [vmem:[#allocation2 + $0x109] sm:$0xff]  ;;  %v559_v20 = vld [vmem:[#allocation2 + $0x111] sm:$0xff]  ;;  %2445 = vst.msk [vmem:[#allocation3 + $0x198] sm:$0xff] %vm1849_vm3, %v9674_v0  ;;  %2446 = vst.msk [vmem:[#allocation3 + $0x1a0] sm:$0xff] %vm1849_vm3, %v9674_v0 }
  0x33   : > { %5307 = vrot.lane.b32.xlu1 %v6825_v5, %s6587_s20  ;;  %v560_v21 = vld [vmem:[#allocation2 + $0x121] sm:$0xff]  ;;  %v561_v22 = vld [vmem:[#allocation2 + $0x129] sm:$0xff]  ;;  %v6849_v23 = vpack.i.bf16 %v559_v20, %v558_v19  ;;  %v572_v39 = vld [vmem:[#allocation2 + $0x32] sm:$0xff] }
  0x34   : > { %5312 = vrot.lane.b32.xlu0 %v6829_v6, %s6587_s20  ;;  %v6853_v24 = vpack.i.bf16 %v561_v22, %v560_v21  ;;  %v562_v25 = vld [vmem:[#allocation2 + $0x139] sm:$0xff]  ;;  %v563_v26 = vld [vmem:[#allocation2 + $0x141] sm:$0xff]  ;;  %v569_v34 = vld [vmem:[#allocation2 + $0xa] sm:$0xff] }
  0x35   : > { %v564_v27 = vld [vmem:[#allocation2 + $0x151] sm:$0xff]  ;;  %v565_v28 = vld [vmem:[#allocation2 + $0x159] sm:$0xff]  ;;  %v6865_v29 = vpack.i.bf16 %v563_v26, %v562_v25  ;;  %v568_v33 = vld [vmem:[#allocation2 + $0x2] sm:$0xff] }
  0x36   : > { %v6869_v30 = vpack.i.bf16 %v565_v28, %v564_v27  ;;  %v566_v31 = vld [vmem:[#allocation2 + $0x169] sm:$0xff]  ;;  %v567_v32 = vld [vmem:[#allocation2 + $0x171] sm:$0xff]  ;;  %v5361_v36 = vpack.i.bf16 %v569_v34, %v568_v33  ;;  %v570_v37 = vld [vmem:[#allocation2 + $0x1a] sm:$0xff] }
  0x37   : > { %5317 = vrot.lane.b32.xlu1 %v6833_v11, %s6587_s20  ;;  %v6873_v35 = vpack.i.bf16 %v567_v32, %v566_v31  ;;  %v571_v38 = vld [vmem:[#allocation2 + $0x22] sm:$0xff]  ;;  %v573_v40 = vld [vmem:[#allocation2 + $0x3a] sm:$0xff]  ;;  %v574_v43 = vld [vmem:[#allocation2 + $0x4a] sm:$0xff] }
  0x38   : > { %5322 = vrot.lane.b32.xlu0 %v6837_v12, %s6587_s20  ;;  %v6879_v41 = vpack.i.bf16 %v571_v38, %v570_v37  ;;  %v6882_v42 = vpack.i.bf16 %v573_v40, %v572_v39  ;;  %v575_v44 = vld [vmem:[#allocation2 + $0x52] sm:$0xff]  ;;  %v576_v45 = vld [vmem:[#allocation2 + $0x62] sm:$0xff]  ;;  %v577_v46 = vld [vmem:[#allocation2 + $0x6a] sm:$0xff] }
  0x39   : > { %v6886_v47 = vpack.i.bf16 %v575_v44, %v574_v43  ;;  %v6890_v48 = vpack.i.bf16 %v577_v46, %v576_v45  ;;  %v578_v49 = vld [vmem:[#allocation2 + $0x7a] sm:$0xff]  ;;  %v579_v50 = vld [vmem:[#allocation2 + $0x82] sm:$0xff]  ;;  %v580_v51 = vld [vmem:[#allocation2 + $0x92] sm:$0xff] }
  0x3a   : > { %v581_v52 = vld [vmem:[#allocation2 + $0x9a] sm:$0xff]  ;;  %v6894_v53 = vpack.i.bf16 %v579_v50, %v578_v49  ;;  %v582_v56 = vld [vmem:[#allocation2 + $0xaa] sm:$0xff]  ;;  %v583_v57 = vld [vmem:[#allocation2 + $0xb2] sm:$0xff] }
  0x3b   : > { %5327 = vrot.lane.b32.xlu1 %v6841_v17, %s6587_s20  ;;  %v6898_v54 = vpack.i.bf16 %v581_v52, %v580_v51  ;;  %v584_v58 = vld [vmem:[#allocation2 + $0xc2] sm:$0xff]  ;;  %v585_v60 = vld [vmem:[#allocation2 + $0xca] sm:$0xff]  ;;  %v6902_v61 = vpack.i.bf16 %v583_v57, %v582_v56  ;;  %v586_v2 = vld [vmem:[#allocation2 + $0xda] sm:$0xff] }
  0x3c   : > { %5332 = vrot.lane.b32.xlu0 %v6845_v18, %s6587_s20  ;;  %v6906_v1 = vpack.i.bf16 %v585_v60, %v584_v58  ;;  %v587_v3 = vld [vmem:[#allocation2 + $0xe2] sm:$0xff]  ;;  %v588_v4 = vld [vmem:[#allocation2 + $0xf2] sm:$0xff]  ;;  %v589_v7 = vld [vmem:[#allocation2 + $0xfa] sm:$0xff] }
  0x3d   : > { %v6910_v8 = vpack.i.bf16 %v587_v3, %v586_v2  ;;  %v6914_v9 = vpack.i.bf16 %v589_v7, %v588_v4  ;;  %v590_v10 = vld [vmem:[#allocation2 + $0x10a] sm:$0xff]  ;;  %v591_v13 = vld [vmem:[#allocation2 + $0x112] sm:$0xff]  ;;  %v592_v14 = vld [vmem:[#allocation2 + $0x122] sm:$0xff] }
  0x3e   : > { %v593_v15 = vld [vmem:[#allocation2 + $0x12a] sm:$0xff]  ;;  %v6918_v16 = vpack.i.bf16 %v591_v13, %v590_v10  ;;  %v594_v20 = vld [vmem:[#allocation2 + $0x13a] sm:$0xff]  ;;  %v595_v21 = vld [vmem:[#allocation2 + $0x142] sm:$0xff] }
  0x3f   : > { %5337 = vrot.lane.b32.xlu1 %v6849_v23, %s6587_s20  ;;  %v6922_v19 = vpack.i.bf16 %v593_v15, %v592_v14  ;;  %v596_v22 = vld [vmem:[#allocation2 + $0x152] sm:$0xff]  ;;  %v597_v25 = vld [vmem:[#allocation2 + $0x15a] sm:$0xff]  ;;  %v6926_v26 = vpack.i.bf16 %v595_v21, %v594_v20  ;;  %v598_v28 = vld [vmem:[#allocation2 + $0x16a] sm:$0xff] }
  0x40   : > { %5342 = vrot.lane.b32.xlu0 %v6853_v24, %s6587_s20  ;;  %v6930_v27 = vpack.i.bf16 %v597_v25, %v596_v22  ;;  %v599_v31 = vld [vmem:[#allocation2 + $0x172] sm:$0xff]  ;;  %v6934_v33 = vld [vmem:[#allocation2 + $0x20] sm:$0xff]  ;;  %v6948_v39 = vld [vmem:[#allocation2 + $0x48] sm:$0xff] }
  0x41   : > { %v6932_v32 = vld [vmem:[#allocation2 + $0x18] sm:$0xff]  ;;  %v6938_v34 = vpack.i.bf16 %v599_v31, %v598_v28  ;;  %v6944_v37 = vld [vmem:[#allocation2 + $0x30] sm:$0xff]  ;;  %v6963_v45 = vld [vmem:[#allocation2 + $0x60] sm:$0xff] }
  0x42   : > { %v6946_v38 = vld [vmem:[#allocation2 + $0x38] sm:$0xff]  ;;  %v6950_v40 = vld [vmem:[#allocation2 + $0x50] sm:$0xff]  ;;  %v6965_v46 = vld [vmem:[#allocation2 + $0x68] sm:$0xff] }
  0x43   : > { %5347 = vrot.lane.b32.xlu1 %v6865_v29, %s6587_s20  ;;  %v6956_v43 = vpack.i.bf16 %v6946_v38, %v6944_v37  ;;  %v6961_v44 = vpack.i.bf16 %v6950_v40, %v6948_v39  ;;  %v6967_v49 = vld [vmem:[#allocation2 + $0x78] sm:$0xff]  ;;  %v6969_v50 = vld [vmem:[#allocation2 + $0x80] sm:$0xff]  ;;  %v6975_v51 = vpack.i.bf16 %v6965_v46, %v6963_v45  ;;  %v6983_v56 = vld [vmem:[#allocation2 + $0x90] sm:$0xff] }
  0x44   : > { %5352 = vrot.lane.b32.xlu0 %v6869_v30, %s6587_s20  ;;  %v6981_v52 = vpack.i.bf16 %v6969_v50, %v6967_v49  ;;  %v6985_v57 = vld [vmem:[#allocation2 + $0x98] sm:$0xff]  ;;  %v6987_v58 = vld [vmem:[#allocation2 + $0xa8] sm:$0xff]  ;;  %v6989_v60 = vld [vmem:[#allocation2 + $0xb0] sm:$0xff] }
  0x45   : > { %9747 = vst [vmem:[#allocation4_spill] sm:$0xff] %v6987_v58  ;;  %v6995_v2 = vpack.i.bf16 %v6985_v57, %v6983_v56  ;;  %v7001_v3 = vpack.i.bf16 %v6989_v60, %v6987_v58  ;;  %v7003_v4 = vld [vmem:[#allocation2 + $0xc0] sm:$0xff]  ;;  %v7005_v7 = vld [vmem:[#allocation2 + $0xc8] sm:$0xff]  ;;  %v7007_v10 = vld [vmem:[#allocation2 + $0xd8] sm:$0xff] }
  0x46   : > { %9748 = vst [vmem:[#allocation5_spill] sm:$0xff] %v7003_v4  ;;  %9749 = vst [vmem:[#allocation6_spill] sm:$0xff] %v7005_v7  ;;  %v7009_v13 = vld [vmem:[#allocation2 + $0xe0] sm:$0xff]  ;;  %v7015_v14 = vpack.i.bf16 %v7005_v7, %v7003_v4  ;;  %v7023_v20 = vld [vmem:[#allocation2 + $0xf0] sm:$0xff] }
  0x47   : > { %5357 = vrot.lane.b32.xlu1 %v6873_v35, %s6587_s20  ;;  %9750 = vst [vmem:[#allocation7_spill] sm:$0xff] %v7007_v10  ;;  %9751 = vst [vmem:[#allocation8_spill] sm:$0xff] %v7009_v13  ;;  %v7021_v15 = vpack.i.bf16 %v7009_v13, %v7007_v10  ;;  %v7025_v21 = vld [vmem:[#allocation2 + $0xf8] sm:$0xff]  ;;  %v7027_v22 = vld [vmem:[#allocation2 + $0x108] sm:$0xff]  ;;  %s6595_s20 = smov 40  }
  0x48   : > { %5362 = vrot.lane.b32.xlu0 %v5361_v36, %s6588_s21  ;;  %v5441_v36 = vpack.i.bf16 %v6934_v33, %v6932_v32  ;;  %9752 = vst [vmem:[#allocation9_spill] sm:$0xff] %v7023_v20  ;;  %9753 = vst [vmem:[#allocation10_spill] sm:$0xff] %v7025_v21  ;;  %v7029_v25 = vld [vmem:[#allocation2 + $0x110] sm:$0xff]  ;;  %v7035_v28 = vpack.i.bf16 %v7025_v21, %v7023_v20  ;;  %v7045_v0 = vld [vmem:[#allocation2 + $0x128] sm:$0xff] }
  0x49   : > { %9754 = vst [vmem:[#allocation11_spill] sm:$0xff] %v7027_v22  ;;  %9755 = vst [vmem:[#allocation12_spill] sm:$0xff] %v7029_v25  ;;  %v7041_v31 = vpack.i.bf16 %v7029_v25, %v7027_v22  ;;  %v7047_v10 = vld [vmem:[#allocation2 + $0x138] sm:$0xff]  ;;  %v7049_v13 = vld [vmem:[#allocation2 + $0x140] sm:$0xff] }
  0x4a   : > { %9757 = vst [vmem:[#allocation14_spill] sm:$0xff] %v7045_v0  ;;  %9758 = vst [vmem:[#allocation15_spill] sm:$0xff] %v7047_v10  ;;  %v7061_v22 = vpack.i.bf16 %v7049_v13, %v7047_v10  ;;  %v7063_v25 = vld [vmem:[#allocation2 + $0x150] sm:$0xff]  ;;  %v7065_v21 = vld [vmem:[#allocation2 + $0x158] sm:$0xff] }
  0x4b   : > { %5367 = vrot.lane.b32.xlu1 %v6879_v41, %s6588_s21  ;;  %9759 = vst [vmem:[#allocation16_spill] sm:$0xff] %v7049_v13  ;;  %v7067_v4 = vld [vmem:[#allocation2 + $0x168] sm:$0xff]  ;;  %v7069_v7 = vld [vmem:[#allocation2 + $0x170] sm:$0xff]  ;;  %v630_v13 = vld [vmem:[#allocation2 + $0x180] sm:$0xff] }
  0x4c   : > { %5372 = vrot.lane.b32.xlu0 %v6882_v42, %s6588_s21  ;;  %v7081_v10 = vpack.i.bf16 %v7069_v7, %v7067_v4 }
  0x4f   : > { %5377 = vrot.lane.b32.xlu1 %v6886_v47, %s6588_s21 }
  0x50   : > { %5382 = vrot.lane.b32.xlu0 %v6890_v48, %s6588_s21 }
  0x53   : > { %5387 = vrot.lane.b32.xlu1 %v6894_v53, %s6588_s21 }
  0x54   : > { %5392 = vrot.lane.b32.xlu0 %v6898_v54, %s6588_s21 }
  0x57   : > { %5397 = vrot.lane.b32.xlu1 %v6902_v61, %s6588_s21 }
  0x58   : > { %5402 = vrot.lane.b32.xlu0 %v6906_v1, %s6588_s21 }
  0x5b   : > { %5407 = vrot.lane.b32.xlu1 %v6910_v8, %s6588_s21 }
  0x5c   : > { %5412 = vrot.lane.b32.xlu0 %v6914_v9, %s6588_s21 }
  0x5f   : > { %5417 = vrot.lane.b32.xlu1 %v6918_v16, %s6588_s21 }
  0x60   : > { %5422 = vrot.lane.b32.xlu0 %v6922_v19, %s6588_s21 }
  0x63   : > { %5427 = vrot.lane.b32.xlu1 %v6926_v26, %s6588_s21 }
  0x64   : > { %5432 = vrot.lane.b32.xlu0 %v6930_v27, %s6588_s21 }
  0x67   : > { %5437 = vrot.lane.b32.xlu1 %v6938_v34, %s6588_s21 }
  0x68   : > { %5442 = vrot.lane.b32.xlu0 %v5441_v36, %s6589_s22  ;;  %v7043_v36 = vld [vmem:[#allocation2 + $0x120] sm:$0xff] }
  0x69   : > { %9756 = vst [vmem:[#allocation13_spill] sm:$0xff] %v7043_v36  ;;  %v7055_v20 = vpack.i.bf16 %v7045_v0, %v7043_v36  ;;  %v7075_v36 = vpack.i.bf16 %v7065_v21, %v7063_v25  ;;  %v631_v0 = vld [vmem:[#allocation2 + $0x188] sm:$0xff] }
  0x6a   : > { %v7085_v58 = vpack.i.bf16 %v631_v0, %v630_v13 }
  0x6b   : > { %5447 = vrot.lane.b32.xlu1 %v6956_v43, %s6589_s22 }
  0x6c   : > { %5452 = vrot.lane.b32.xlu0 %v6961_v44, %s6589_s22 }
  0x6f   : > { %5457 = vrot.lane.b32.xlu1 %v6975_v51, %s6589_s22 }
  0x70   : > { %5462 = vrot.lane.b32.xlu0 %v6981_v52, %s6589_s22 }
  0x73   : > { %5467 = vrot.lane.b32.xlu1 %v6995_v2, %s6589_s22 }
  0x74   : > { %5472 = vrot.lane.b32.xlu0 %v7001_v3, %s6589_s22 }
  0x77   : > { %5477 = vrot.lane.b32.xlu1 %v7015_v14, %s6589_s22 }
  0x78   : > { %5482 = vrot.lane.b32.xlu0 %v7021_v15, %s6589_s22 }
  0x7b   : > { %5487 = vrot.lane.b32.xlu1 %v7035_v28, %s6589_s22 }
  0x7c   : > { %5492 = vrot.lane.b32.xlu0 %v7041_v31, %s6589_s22 }
  0x7f   : > { %5497 = vrot.lane.b32.xlu1 %v7055_v20, %s6589_s22 }
  0x80   : > { %5502 = vrot.lane.b32.xlu0 %v7061_v22, %s6589_s22 }
  0x83   : > { %5507 = vrot.lane.b32.xlu1 %v7075_v36, %s6589_s22 }
  0x84   : > { %5512 = vrot.lane.b32.xlu0 %v7081_v10, %s6589_s22 }
  0x87   : > { %5517 = vrot.lane.b32.xlu1 %v7085_v58, %s6589_s22  ;;  %s6596_s22 = smov 48  }
  0x88   : > { %5522 = vrot.lane.b32.xlu0 %v6813_v59, %s6590_s23 }
  0x89   : > { %v7109_v0 = vpop.permute.xlu0 %5282 }
  0x8b   : > { %5527 = vrot.lane.b32.xlu1 %v6809_v55, %s6590_s23 }
  0x8c   : > { %5532 = vrot.lane.b32.xlu0 %v6817_v62, %s6590_s23  ;;  %v662_v62 = vld [vmem:[#allocation2 + $0x181] sm:$0xff] }
  0x8f   : > { %5537 = vrot.lane.b32.xlu1 %v6821_v63, %s6590_s23  ;;  %v663_v63 = vld [vmem:[#allocation2 + $0x189] sm:$0xff] }
  0x90   : > { %5542 = vrot.lane.b32.xlu0 %v6825_v5, %s6590_s23 }
  0x93   : > { %5547 = vrot.lane.b32.xlu1 %v6829_v6, %s6590_s23 }
  0x94   : > { %5552 = vrot.lane.b32.xlu0 %v6833_v11, %s6590_s23  ;;  %v5596_v11 = vpack.i.bf16 %v663_v63, %v662_v62 }
  0x97   : > { %5557 = vrot.lane.b32.xlu1 %v6837_v12, %s6590_s23 }
  0x98   : > { %5562 = vrot.lane.b32.xlu0 %v6841_v17, %s6590_s23 }
  0x9b   : > { %5567 = vrot.lane.b32.xlu1 %v6845_v18, %s6590_s23 }
  0x9c   : > { %5572 = vrot.lane.b32.xlu0 %v6849_v23, %s6590_s23 }
  0x9d   : > { %v7115_v55 = vpop.permute.xlu1 %5292 }
  0x9e   : > { %v7117_v59 = vpop.permute.xlu0 %5287 }
  0x9f   : > { %5577 = vrot.lane.b32.xlu1 %v6853_v24, %s6590_s23 }
  0xa0   : > { %5582 = vrot.lane.b32.xlu0 %v6865_v29, %s6590_s23 }
  0xa1   : > { %v7123_v5 = vpop.permute.xlu1 %5297 }
  0xa2   : > { %v7125_v6 = vpop.permute.xlu0 %5302 }
  0xa3   : > { %5587 = vrot.lane.b32.xlu1 %v6869_v30, %s6590_s23 }
  0xa4   : > { %5592 = vrot.lane.b32.xlu0 %v6873_v35, %s6590_s23 }
  0xa5   : > { %v7131_v12 = vpop.permute.xlu1 %5307 }
  0xa6   : > { %v7133_v17 = vpop.permute.xlu0 %5312 }
  0xa7   : > { %5597 = vrot.lane.b32.xlu1 %v5596_v11, %s6590_s23 }
  0xa8   : > { %5602 = vrot.lane.b32.xlu0 %v6879_v41, %s6591_s24 }
  0xa9   : > { %v7138_v18 = vpop.permute.xlu1 %5317 }
  0xaa   : > { %v7140_v23 = vpop.permute.xlu0 %5322 }
  0xab   : > { %5607 = vrot.lane.b32.xlu1 %v6882_v42, %s6591_s24 }
  0xac   : > { %5612 = vrot.lane.b32.xlu0 %v6886_v47, %s6591_s24 }
  0xad   : > { %v7146_v24 = vpop.permute.xlu1 %5327 }
  0xae   : > { %v7148_v29 = vpop.permute.xlu0 %5332 }
  0xaf   : > { %5617 = vrot.lane.b32.xlu1 %v6890_v48, %s6591_s24 }
  0xb0   : > { %5622 = vrot.lane.b32.xlu0 %v6894_v53, %s6591_s24 }
  0xb1   : > { %v7154_v30 = vpop.permute.xlu1 %5337 }
  0xb2   : > { %v7156_v35 = vpop.permute.xlu0 %5342 }
  0xb3   : > { %5627 = vrot.lane.b32.xlu1 %v6898_v54, %s6591_s24 }
  0xb4   : > { %5632 = vrot.lane.b32.xlu0 %v6902_v61, %s6591_s24  ;;  %v694_v61 = vld [vmem:[#allocation2 + $0x182] sm:$0xff] }
  0xb5   : > { %v7162_v41 = vpop.permute.xlu1 %5347 }
  0xb6   : > { %v7164_v42 = vpop.permute.xlu0 %5352 }
  0xb7   : > { %5637 = vrot.lane.b32.xlu1 %v6906_v1, %s6591_s24  ;;  %v695_v1 = vld [vmem:[#allocation2 + $0x18a] sm:$0xff] }
  0xb8   : > { %5642 = vrot.lane.b32.xlu0 %v6910_v8, %s6591_s24 }
  0xb9   : > { %v7170_v47 = vpop.permute.xlu1 %5357 }
  0xba   : > { %v7172_v48 = vpop.permute.xlu0 %5362 }
  0xbb   : > { %5647 = vrot.lane.b32.xlu1 %v6914_v9, %s6591_s24  ;;  %v7192_v9 = vpack.i.bf16 %v695_v1, %v694_v61  ;;  %v729_v61 = vld [vmem:[#allocation2 + $0x31] sm:$0xff]  ;;  %v730_v1 = vld [vmem:[#allocation2 + $0x39] sm:$0xff] }
  0xbc   : > { %5652 = vrot.lane.b32.xlu0 %v6918_v16, %s6591_s24 }
  0xbd   : > { %v7178_v53 = vpop.permute.xlu1 %5367 }
  0xbe   : > { %v7180_v54 = vpop.permute.xlu0 %5372 }
  0xbf   : > { %5657 = vrot.lane.b32.xlu1 %v6922_v19, %s6591_s24 }
  0xc0   : > { %5662 = vrot.lane.b32.xlu0 %v6926_v26, %s6591_s24 }
  0xc1   : > { %v7186_v8 = vpop.permute.xlu1 %5377 }
  0xc2   : > { %v7188_v13 = vpop.permute.xlu0 %5382 }
  0xc3   : > { %5667 = vrot.lane.b32.xlu1 %v6930_v27, %s6591_s24 }
  0xc4   : > { %5672 = vrot.lane.b32.xlu0 %v6938_v34, %s6591_s24 }
  0xc5   : > { %v7196_v16 = vpop.permute.xlu1 %5387 }
  0xc6   : > { %v7198_v19 = vpop.permute.xlu0 %5392 }
  0xc7   : > { %5677 = vrot.lane.b32.xlu1 %v7192_v9, %s6591_s24  ;;  %s6597_s24 = smov 56  }
  0xc8   : > { %5682 = vrot.lane.b32.xlu0 %v6956_v43, %s6592_s25 }
  0xc9   : > { %v7204_v26 = vpop.permute.xlu1 %5397 }
  0xca   : > { %9760 = vst [vmem:[#allocation17_spill] sm:$0xff] %v7204_v26  ;;  %v7206_v62 = vpop.permute.xlu0 %5402 }
  0xcb   : > { %9761 = vst [vmem:[#allocation18_spill] sm:$0xff] %v7206_v62  ;;  %5687 = vrot.lane.b32.xlu1 %v6961_v44, %s6592_s25  ;;  %v5299_v62 = vunpack.i.l.bf16 %v7123_v5 }
  0xcc   : > { %5692 = vrot.lane.b32.xlu0 %v6975_v51, %s6592_s25 }
  0xcd   : > { %v7212_v27 = vpop.permute.xlu1 %5407 }
  0xce   : > { %9762 = vst [vmem:[#allocation19_spill] sm:$0xff] %v7212_v27  ;;  %v7214_v34 = vpop.permute.xlu0 %5412 }
  0xcf   : > { %9763 = vst [vmem:[#allocation20_spill] sm:$0xff] %v7214_v34  ;;  %5697 = vrot.lane.b32.xlu1 %v6981_v52, %s6592_s25  ;;  %v5290_v34 = vunpack.i.h.bf16 %v7117_v59 }
  0xd0   : > { %5702 = vrot.lane.b32.xlu0 %v6995_v2, %s6592_s25 }
  0xd1   : > { %v7220_v43 = vpop.permute.xlu1 %5417 }
  0xd2   : > { %9764 = vst [vmem:[#allocation21_spill] sm:$0xff] %v7220_v43  ;;  %v7222_v63 = vpop.permute.xlu0 %5422 }
  0xd3   : > { %9765 = vst [vmem:[#allocation22_spill] sm:$0xff] %v7222_v63  ;;  %5707 = vrot.lane.b32.xlu1 %v7001_v3, %s6592_s25  ;;  %v504_v63 = vld [vmem:[#allocation2] sm:$0xff] }
  0xd4   : > { %5712 = vrot.lane.b32.xlu0 %v7015_v14, %s6592_s25 }
  0xd5   : > { %v7228_v44 = vpop.permute.xlu1 %5427 }
  0xd6   : > { %9766 = vst [vmem:[#allocation23_spill] sm:$0xff] %v7228_v44  ;;  %v7230_v51 = vpop.permute.xlu0 %5432 }
  0xd7   : > { %9767 = vst [vmem:[#allocation24_spill] sm:$0xff] %v7230_v51  ;;  %5717 = vrot.lane.b32.xlu1 %v7021_v15, %s6592_s25  ;;  %v727_v15 = vld [vmem:[#allocation2 + $0x198] sm:$0xff] }
  0xd8   : > { %5722 = vrot.lane.b32.xlu0 %v7035_v28, %s6592_s25  ;;  %v728_v28 = vld [vmem:[#allocation2 + $0x1a0] sm:$0xff] }
  0xd9   : > { %v7236_v52 = vpop.permute.xlu1 %5437 }
  0xda   : > { %9768 = vst [vmem:[#allocation25_spill] sm:$0xff] %v7236_v52  ;;  %v7238_v2 = vpop.permute.xlu0 %5442  ;;  %v734_v52 = vld [vmem:[#allocation2 + $0x69] sm:$0xff] }
  0xdb   : > { %9769 = vst [vmem:[#allocation26_spill] sm:$0xff] %v7238_v2  ;;  %5727 = vrot.lane.b32.xlu1 %v7041_v31, %s6592_s25 }
  0xdc   : > { %5732 = vrot.lane.b32.xlu0 %v7055_v20, %s6592_s25  ;;  %v5756_v20 = vpack.i.bf16 %v728_v28, %v727_v15  ;;  %v735_v15 = vld [vmem:[#allocation2 + $0x79] sm:$0xff]  ;;  %v736_v28 = vld [vmem:[#allocation2 + $0x81] sm:$0xff] }
  0xdd   : > { %v7244_v3 = vpop.permute.xlu1 %5447 }
  0xde   : > { %9770 = vst [vmem:[#allocation27_spill] sm:$0xff] %v7244_v3  ;;  %v7246_v14 = vpop.permute.xlu0 %5452  ;;  %v732_v3 = vld [vmem:[#allocation2 + $0x51] sm:$0xff] }
  0xdf   : > { %9771 = vst [vmem:[#allocation28_spill] sm:$0xff] %v7246_v14  ;;  %5737 = vrot.lane.b32.xlu1 %v7061_v22, %s6592_s25  ;;  %v5761_v14 = vpack.i.bf16 %v730_v1, %v729_v61  ;;  %v731_v22 = vld [vmem:[#allocation2 + $0x49] sm:$0xff] }
  0xe0   : > { %5742 = vrot.lane.b32.xlu0 %v7075_v36, %s6592_s25  ;;  %v733_v36 = vld [vmem:[#allocation2 + $0x61] sm:$0xff] }
  0xe1   : > { %v7252_v11 = vpop.permute.xlu1 %5457 }
  0xe2   : > { %9772 = vst [vmem:[#allocation29_spill] sm:$0xff] %v7252_v11  ;;  %v7254_v31 = vpop.permute.xlu0 %5462  ;;  %v741_v11 = vld [vmem:[#allocation2 + $0xc1] sm:$0xff] }
  0xe3   : > { %9773 = vst [vmem:[#allocation30_spill] sm:$0xff] %v7254_v31  ;;  %5747 = vrot.lane.b32.xlu1 %v7081_v10, %s6592_s25  ;;  %v6561_v31 = vld [vmem:[%s9664_s1 + $0x10] ss:$0 sps:$4 sm:$0x33]   ;;  %v5766_v10 = vpack.i.bf16 %v732_v3, %v731_v22  ;;  %v6562_v3 = vld [vmem:[%s9664_s1 + $0x8] sm:$0xff]  }
  0xe4   : > { %5752 = vrot.lane.b32.xlu0 %v7085_v58, %s6592_s25  ;;  %v5771_v58 = vpack.i.bf16 %v734_v52, %v733_v36  ;;  %5256 = vmatprep.subr.msk.bf16.mxu0 %vm2165_vm4, %v6561_v31  ;;  %v2167_v61 = vsel %vm2165_vm4, %v6561_v31, 0  ;;  %v5776_v52 = vpack.i.bf16 %v736_v28, %v735_v15  ;;  %v739_v22 = vld [vmem:[#allocation2 + $0xa9] sm:$0xff]  ;;  %v740_v36 = vld [vmem:[#allocation2 + $0xb1] sm:$0xff] }
  0xe5   : > { %v7260_v2 = vpop.permute.xlu1 %5467  ;;  %5137 = vmatpush3.bf16.msra.mxu0 %v2167_v61  ;;  %5257 = vmatprep.subr.msk.bf16.mxu1 %vm2165_vm4, %v6561_v31  ;;  %v742_v31 = vld [vmem:[#allocation2 + $0xc9] sm:$0xff]  ;;  %v761_v28 = vld [vmem:[#allocation2 + $0x32] sm:$0xff] }
  0xe6   : > { %9774 = vst [vmem:[#allocation31_spill] sm:$0xff] %v7260_v2  ;;  %v7262_v51 = vpop.permute.xlu0 %5472  ;;  %v738_v2 = vld [vmem:[#allocation2 + $0x99] sm:$0xff]  ;;  %5253 = vmatpush3.bf16.msra.mxu1 %v2167_v61  ;;  %5138 = vmatprep.subr.bf16.mxu0 %v6562_v3 }
  0xe7   : > { %9775 = vst [vmem:[#allocation32_spill] sm:$0xff] %v7262_v51  ;;  %5757 = vrot.lane.b32.xlu1 %v5756_v20, %s6592_s25  ;;  %v737_v51 = vld [vmem:[#allocation2 + $0x91] sm:$0xff]  ;;  %5251 = vmatprep.subr.bf16.mxu1 %v6562_v3  ;;  %v6563_v61 = vld [vmem:[%s9664_s1] sm:$0xff]  }
  0xe8   : > { %5762 = vrot.lane.b32.xlu0 %v5761_v14, %s6593_s28  ;;  %v5781_v14 = vpack.i.bf16 %v738_v2, %v737_v51  ;;  %v5791_v51 = vpack.i.bf16 %v742_v31, %v741_v11  ;;  %v743_v2 = vld [vmem:[#allocation2 + $0xd9] sm:$0xff]  ;;  %v766_v31 = vld [vmem:[#allocation2 + $0x6a] sm:$0xff] }
  0xe9   : > { %v7271_v1 = vpop.permute.xlu1 %5477  ;;  %5139 = vmatpush3.bf16.msra.mxu0 %v6562_v3  ;;  %v764_v11 = vld [vmem:[#allocation2 + $0x52] sm:$0xff] }
  0xea   : > { %9776 = vst [vmem:[#allocation33_spill] sm:$0xff] %v7271_v1  ;;  %v7274_v20 = vpop.permute.xlu0 %5482  ;;  %5254 = vmatpush3.bf16.msra.mxu1 %v6562_v3  ;;  %5140 = vmatprep.subr.bf16.mxu0 %v6563_v61 }
  0xeb   : > { %9777 = vst [vmem:[#allocation34_spill] sm:$0xff] %v7274_v20  ;;  %5767 = vrot.lane.b32.xlu1 %v5766_v10, %s6593_s28  ;;  %v5786_v10 = vpack.i.bf16 %v740_v36, %v739_v22  ;;  %5252 = vmatprep.subr.bf16.mxu1 %v6563_v61  ;;  %v765_v36 = vld [vmem:[#allocation2 + $0x62] sm:$0xff] }
  0xec   : > { %5772 = vrot.lane.b32.xlu0 %v5771_v58, %s6593_s28  ;;  %v744_v58 = vld [vmem:[#allocation2 + $0xe1] sm:$0xff] }
  0xed   : > { %v7281_v1 = vpop.permute.xlu1 %5487  ;;  %5141 = vmatpush3.bf16.msra.mxu0 %v6563_v61  ;;  %v5796_v3 = vpack.i.bf16 %v744_v58, %v743_v2  ;;  %v768_v2 = vld [vmem:[#allocation2 + $0x82] sm:$0xff] }
  0xee   : > { %9778 = vst [vmem:[#allocation35_spill] sm:$0xff] %v7281_v1  ;;  %v7283_v20 = vpop.permute.xlu0 %5492  ;;  %v762_v1 = vld [vmem:[#allocation2 + $0x3a] sm:$0xff]  ;;  %5255 = vmatpush3.bf16.msra.mxu1 %v6563_v61  ;;  %v5811_v61 = vpack.i.bf16 %v766_v31, %v765_v36  ;;  %v774_v36 = vld [vmem:[#allocation2 + $0xca] sm:$0xff] }
  0xef   : > { %9779 = vst [vmem:[#allocation36_spill] sm:$0xff] %v7283_v20  ;;  %5777 = vrot.lane.b32.xlu1 %v5776_v52, %s6593_s28  ;;  %v5801_v52 = vpack.i.bf16 %v762_v1, %v761_v28  ;;  %v769_v1 = vld [vmem:[#allocation2 + $0x92] sm:$0xff] }
  0xf0   : > { %5782 = vrot.lane.b32.xlu0 %v5781_v14, %s6593_s28  ;;  %v763_v14 = vld [vmem:[#allocation2 + $0x4a] sm:$0xff] }
  0xf1   : > { %v7290_v15 = vpop.permute.xlu1 %5497  ;;  %v5806_v44 = vpack.i.bf16 %v764_v11, %v763_v14  ;;  %v772_v14 = vld [vmem:[#allocation2 + $0xb2] sm:$0xff] }
  0xf2   : > { %9780 = vst [vmem:[#allocation37_spill] sm:$0xff] %v7290_v15  ;;  %v7292_v20 = vpop.permute.xlu0 %5502 }
  0xf3   : > { %9781 = vst [vmem:[#allocation38_spill] sm:$0xff] %v7292_v20  ;;  %5787 = vrot.lane.b32.xlu1 %v5786_v10, %s6593_s28  ;;  %v767_v10 = vld [vmem:[#allocation2 + $0x7a] sm:$0xff] }
  0xf4   : > { %5792 = vrot.lane.b32.xlu0 %v5791_v51, %s6593_s28  ;;  %v770_v51 = vld [vmem:[#allocation2 + $0x9a] sm:$0xff] }
  0xf5   : > { %v7296_v22 = vpop.permute.xlu1 %5507  ;;  %v775_v20 = vld [vmem:[#allocation2 + $0xda] sm:$0xff] }
  0xf6   : > { %9782 = vst [vmem:[#allocation39_spill] sm:$0xff] %v7296_v22  ;;  %v7298_v15 = vpop.permute.xlu0 %5512  ;;  %v5816_v22 = vpack.i.bf16 %v768_v2, %v767_v10  ;;  %v746_v2 = vld [vmem:[#allocation2 + $0xf9] sm:$0xff] }
  0xf7   : > { %9783 = vst [vmem:[#allocation40_spill] sm:$0xff] %v7298_v15  ;;  %5797 = vrot.lane.b32.xlu1 %v5796_v3, %s6593_s28  ;;  %v5821_v15 = vpack.i.bf16 %v770_v51, %v769_v1  ;;  %v771_v3 = vld [vmem:[#allocation2 + $0xaa] sm:$0xff] }
  0xf8   : > { %5802 = vrot.lane.b32.xlu0 %v5801_v52, %s6594_s15  ;;  %v773_v52 = vld [vmem:[#allocation2 + $0xc2] sm:$0xff] }
  0xf9   : > { %v7302_v58 = vpop.permute.xlu1 %5517 }
  0xfa   : > { %9784 = vst [vmem:[#allocation41_spill] sm:$0xff] %v7302_v58  ;;  %v7304_v28 = vpop.permute.xlu0 %5522  ;;  %v5826_v58 = vpack.i.bf16 %v772_v14, %v771_v3  ;;  %v778_v14 = vld [vmem:[#allocation2 + $0xfa] sm:$0xff] }
  0xfb   : > { %9785 = vst [vmem:[#allocation42_spill] sm:$0xff] %v7304_v28  ;;  %5807 = vrot.lane.b32.xlu1 %v5806_v44, %s6594_s15  ;;  %v5831_v28 = vpack.i.bf16 %v774_v36, %v773_v52  ;;  %v776_v44 = vld [vmem:[#allocation2 + $0xe2] sm:$0xff] }
  0xfc   : > { %5812 = vrot.lane.b32.xlu0 %v5811_v61, %s6594_s15  ;;  %v745_v61 = vld [vmem:[#allocation2 + $0xf1] sm:$0xff]  ;;  %v5836_v51 = vpack.i.bf16 %v776_v44, %v775_v20  ;;  %v750_v44 = vld [vmem:[#allocation2 + $0x129] sm:$0xff] }
  0xfd   : > { %v7308_v11 = vpop.permute.xlu1 %5527 }
  0xfe   : > { %9786 = vst [vmem:[#allocation43_spill] sm:$0xff] %v7308_v11  ;;  %v7310_v31 = vpop.permute.xlu0 %5532  ;;  %v747_v11 = vld [vmem:[#allocation2 + $0x109] sm:$0xff] }
  0xff   : > { %9787 = vst [vmem:[#allocation44_spill] sm:$0xff] %v7310_v31  ;;  %5817 = vrot.lane.b32.xlu1 %v5816_v22, %s6594_s15  ;;  %v5841_v31 = vpack.i.bf16 %v746_v2, %v745_v61  ;;  %v748_v22 = vld [vmem:[#allocation2 + $0x111] sm:$0xff] }
 0x100   : > { %5822 = vrot.lane.b32.xlu0 %v5821_v15, %s6594_s15  ;;  %v777_v15 = vld [vmem:[#allocation2 + $0xf2] sm:$0xff]  ;;  %v5846_v36 = vpack.i.bf16 %v748_v22, %v747_v11  ;;  %v782_v22 = vld [vmem:[#allocation2 + $0x12a] sm:$0xff] }
 0x101   : > { %v7314_v10 = vpop.permute.xlu1 %5537 }
 0x102   : > { %9788 = vst [vmem:[#allocation45_spill] sm:$0xff] %v7314_v10  ;;  %v7316_v1 = vpop.permute.xlu0 %5542  ;;  %v779_v10 = vld [vmem:[#allocation2 + $0x10a] sm:$0xff] }
 0x103   : > { %9789 = vst [vmem:[#allocation46_spill] sm:$0xff] %v7316_v1  ;;  %5827 = vrot.lane.b32.xlu1 %v5826_v58, %s6594_s15  ;;  %v5851_v1 = vpack.i.bf16 %v778_v14, %v777_v15  ;;  %v780_v58 = vld [vmem:[#allocation2 + $0x112] sm:$0xff] }
 0x104   : > { %5832 = vrot.lane.b32.xlu0 %v5831_v28, %s6594_s15  ;;  %v749_v28 = vld [vmem:[#allocation2 + $0x121] sm:$0xff]  ;;  %v5856_v2 = vpack.i.bf16 %v780_v58, %v779_v10  ;;  %v754_v58 = vld [vmem:[#allocation2 + $0x159] sm:$0xff] }
 0x105   : > { %v7320_v3 = vpop.permute.xlu1 %5547 }
 0x106   : > { %9790 = vst [vmem:[#allocation47_spill] sm:$0xff] %v7320_v3  ;;  %v7322_v52 = vpop.permute.xlu0 %5552  ;;  %v751_v3 = vld [vmem:[#allocation2 + $0x139] sm:$0xff] }
 0x107   : > { %9791 = vst [vmem:[#allocation48_spill] sm:$0xff] %v7322_v52  ;;  %5837 = vrot.lane.b32.xlu1 %v5836_v51, %s6594_s15  ;;  %v5861_v52 = vpack.i.bf16 %v750_v44, %v749_v28  ;;  %v752_v51 = vld [vmem:[#allocation2 + $0x141] sm:$0xff] }
 0x108   : > { %5842 = vrot.lane.b32.xlu0 %v5841_v31, %s6593_s28  ;;  %v781_v31 = vld [vmem:[#allocation2 + $0x122] sm:$0xff]  ;;  %v5866_v14 = vpack.i.bf16 %v752_v51, %v751_v3  ;;  %v756_v51 = vld [vmem:[#allocation2 + $0x171] sm:$0xff] }
 0x109   : > { %v7326_v20 = vpop.permute.xlu1 %5557  ;;  %v755_v3 = vld [vmem:[#allocation2 + $0x169] sm:$0xff] }
 0x10a   : > { %9792 = vst [vmem:[#allocation49_spill] sm:$0xff] %v7326_v20  ;;  %v7328_v61 = vpop.permute.xlu0 %5562  ;;  %v783_v20 = vld [vmem:[#allocation2 + $0x13a] sm:$0xff] }
 0x10b   : > { %9793 = vst [vmem:[#allocation50_spill] sm:$0xff] %v7328_v61  ;;  %5847 = vrot.lane.b32.xlu1 %v5846_v36, %s6593_s28  ;;  %v5871_v61 = vpack.i.bf16 %v782_v22, %v781_v31  ;;  %v784_v36 = vld [vmem:[#allocation2 + $0x142] sm:$0xff]  ;;  %v5284_v31 = vunpack.i.l.bf16 %v7109_v0 }
 0x10c   : > { %5852 = vrot.lane.b32.xlu0 %v5851_v1, %s6594_s15  ;;  %v753_v1 = vld [vmem:[#allocation2 + $0x151] sm:$0xff]  ;;  %v5876_v44 = vpack.i.bf16 %v784_v36, %v783_v20  ;;  %v5295_v36 = vunpack.i.h.bf16 %v7115_v55 }
 0x10d   : > { %v7332_v11 = vpop.permute.xlu1 %5567  ;;  %v787_v20 = vld [vmem:[#allocation2 + $0x16a] sm:$0xff] }
 0x10e   : > { %9794 = vst [vmem:[#allocation51_spill] sm:$0xff] %v7332_v11  ;;  %v7334_v15 = vpop.permute.xlu0 %5572  ;;  %v5285_v11 = vunpack.i.h.bf16 %v7109_v0  ;;  %v758_v0 = vld [vmem:[#allocation2 + $0x189] sm:$0xff] }
 0x10f   : > { %9795 = vst [vmem:[#allocation52_spill] sm:$0xff] %v7334_v15  ;;  %5857 = vrot.lane.b32.xlu1 %v5856_v2, %s6594_s15  ;;  %v5881_v2 = vpack.i.bf16 %v754_v58, %v753_v1  ;;  %v786_v15 = vld [vmem:[#allocation2 + $0x15a] sm:$0xff]  ;;  %v5886_v1 = vpack.i.bf16 %v756_v51, %v755_v3 }
 0x110   : > { %5862 = vrot.lane.b32.xlu0 %v5861_v52, %s6593_s28  ;;  %v505_v52 = vld [vmem:[#allocation2 + $0x8] sm:$0xff]  ;;  %v759_v3 = vld [vmem:[#allocation2 + $0x199] sm:$0xff] }
 0x111   : > { %v7338_v10 = vpop.permute.xlu1 %5577  ;;  %v757_v58 = vld [vmem:[#allocation2 + $0x181] sm:$0xff] }
 0x112   : > { %9796 = vst [vmem:[#allocation53_spill] sm:$0xff] %v7338_v10  ;;  %v7340_v28 = vpop.permute.xlu0 %5582  ;;  %v785_v10 = vld [vmem:[#allocation2 + $0x152] sm:$0xff]  ;;  %v760_v51 = vld [vmem:[#allocation2 + $0x1a1] sm:$0xff] }
 0x113   : > { %9797 = vst [vmem:[#allocation54_spill] sm:$0xff] %v7340_v28  ;;  %5867 = vrot.lane.b32.xlu1 %v5866_v14, %s6593_s28  ;;  %v5294_v28 = vunpack.i.l.bf16 %v7115_v55  ;;  %v788_v14 = vld [vmem:[#allocation2 + $0x172] sm:$0xff]  ;;  %v5891_v27 = vpack.i.bf16 %v786_v15, %v785_v10  ;;  %v5300_v55 = vunpack.i.h.bf16 %v7123_v5  ;;  %v5304_v15 = vunpack.i.l.bf16 %v7125_v6 }
 0x114   : > { %5872 = vrot.lane.b32.xlu0 %v5871_v61, %s6594_s15  ;;  %v5289_v61 = vunpack.i.l.bf16 %v7117_v59  ;;  %v5305_v59 = vunpack.i.h.bf16 %v7125_v6  ;;  %v7387_v6 = vsel %vm361_vm0, %v6934_v33, %v5290_v34  ;;  %v5320_v33 = vunpack.i.h.bf16 %v7138_v18 }
 0x115   : > { %v7346_v22 = vpop.permute.xlu1 %5587  ;;  %v5319_v34 = vunpack.i.l.bf16 %v7138_v18 }
 0x116   : > { %9798 = vst [vmem:[#allocation55_spill] sm:$0xff] %v7346_v22  ;;  %v7349_v43 = vpop.permute.xlu0 %5592  ;;  %v7355_v22 = vsel %vm361_vm0, %v505_v52, %v5285_v11  ;;  %v7368_v11 = vsel %vm361_vm0, %v6944_v37, %v5294_v28  ;;  %v7380_v5 = vsel %vm361_vm0, %v6932_v32, %v5289_v61  ;;  %v5310_v52 = vunpack.i.h.bf16 %v7131_v12  ;;  %v792_v32 = vld [vmem:[#allocation2 + $0x1a2] sm:$0xff] }
 0x117   : > { %9799 = vst [vmem:[#allocation56_spill] sm:$0xff] %v7349_v43  ;;  %5877 = vrot.lane.b32.xlu1 %v5876_v44, %s6594_s15  ;;  %v7360_v43 = vsel %vm361_vm0, %v504_v63, %v5284_v31  ;;  %v5896_v44 = vpack.i.bf16 %v788_v14, %v787_v20  ;;  %v5901_v63 = vpack.i.bf16 %v758_v0, %v757_v58  ;;  %v5309_v37 = vunpack.i.l.bf16 %v7131_v12  ;;  %v791_v20 = vld [vmem:[#allocation2 + $0x19a] sm:$0xff] }
 0x118   : > { %5882 = vrot.lane.b32.xlu0 %v5881_v2, %s6593_s28  ;;  %v7376_v2 = vsel %vm361_vm0, %v6946_v38, %v5295_v36  ;;  %v5315_v28 = vunpack.i.h.bf16 %v7133_v17  ;;  %v5314_v31 = vunpack.i.l.bf16 %v7133_v17  ;;  %v5906_v38 = vpack.i.bf16 %v760_v51, %v759_v3  ;;  %v9801_v0 = vld [vmem:[#allocation4_spill] sm:$0xff]  ;;  %v9802_v3 = vld [vmem:[#allocation6_spill] sm:$0xff]  ;;  %v9803_v51 = vld [vmem:[#allocation5_spill] sm:$0xff] }
 0x119   : > { %v7364_v26 = vpop.permute.xlu1 %5597  ;;  %v7394_v14 = vsel %vm361_vm0, %v6950_v40, %v5300_v55  ;;  %v7398_v12 = vsel %vm361_vm0, %v6948_v39, %v5299_v62  ;;  %v7406_v17 = vsel %vm361_vm0, %v6965_v46, %v5305_v59  ;;  %v5325_v40 = vunpack.i.h.bf16 %v7140_v23 }
 0x11a   : > { %9800 = vst [vmem:[#allocation57_spill] sm:$0xff] %v7364_v26  ;;  %v7372_v10 = vpop.permute.xlu0 %5602  ;;  %v5324_v61 = vunpack.i.l.bf16 %v7140_v23  ;;  %v7418_v62 = vsel %vm361_vm0, %v6969_v50, %v5310_v52  ;;  %v7422_v18 = vsel %vm361_vm0, %v6967_v49, %v5309_v37  ;;  %v5330_v46 = vunpack.i.h.bf16 %v7146_v24  ;;  %v9804_v52 = vld [vmem:[#allocation8_spill] sm:$0xff] }
 0x11b   : > { %5887 = vrot.lane.b32.xlu1 %v5886_v1, %s6593_s28  ;;  %v7428_v1 = vsel %vm361_vm0, %v6985_v57, %v5315_v28  ;;  %v7432_v23 = vsel %vm361_vm0, %v6983_v56, %v5314_v31  ;;  %v5329_v50 = vunpack.i.l.bf16 %v7146_v24  ;;  %v5335_v58 = vunpack.i.h.bf16 %v7148_v29 }
 0x11c   : > { %5892 = vrot.lane.b32.xlu0 %v5891_v27, %s6594_s15  ;;  %v7410_v27 = vsel %vm361_vm0, %v6963_v45, %v5304_v15  ;;  %v5916_v45 = vpack.i.bf16 %v792_v32, %v791_v20  ;;  %v7439_v49 = vsel %vm361_vm0, %v6989_v60, %v5320_v33  ;;  %v7443_v55 = vsel %vm361_vm0, %v9801_v0, %v5319_v34  ;;  %v9805_v20 = vld [vmem:[#allocation7_spill] sm:$0xff] }
 0x11d   : > { %v7402_v36 = vpop.permute.xlu1 %5607  ;;  %v5334_v57 = vunpack.i.l.bf16 %v7148_v29  ;;  %v7451_v24 = vsel %vm361_vm0, %v9802_v3, %v5325_v40  ;;  %v7455_v59 = vsel %vm361_vm0, %v9803_v51, %v5324_v61  ;;  %v5339_v60 = vunpack.i.l.bf16 %v7154_v30  ;;  %v9809_v0 = vld [vmem:[#allocation11_spill] sm:$0xff]  ;;  %v9810_v3 = vld [vmem:[#allocation14_spill] sm:$0xff] }
 0x11e   : > { %v7414_v39 = vpop.permute.xlu0 %5612  ;;  %v5345_v15 = vunpack.i.h.bf16 %v7156_v35  ;;  %v7463_v29 = vsel %vm361_vm0, %v9804_v52, %v5330_v46  ;;  %v5344_v37 = vunpack.i.l.bf16 %v7156_v35  ;;  %v5350_v28 = vunpack.i.h.bf16 %v7162_v41  ;;  %v9807_v35 = vld [vmem:[#allocation9_spill] sm:$0xff] }
 0x11f   : > { %5897 = vrot.lane.b32.xlu1 %v5896_v44, %s6594_s15  ;;  %v5340_v44 = vunpack.i.h.bf16 %v7154_v30  ;;  %v5349_v31 = vunpack.i.l.bf16 %v7162_v41  ;;  %v7471_v32 = vsel %vm361_vm0, %v9805_v20, %v5329_v50  ;;  %v9806_v30 = vld [vmem:[#allocation10_spill] sm:$0xff]  ;;  %v5355_v34 = vunpack.i.h.bf16 %v7164_v42  ;;  %v9811_v52 = vld [vmem:[#allocation13_spill] sm:$0xff] }
 0x120   : > { %5902 = vrot.lane.b32.xlu0 %v5901_v63, %s6593_s28  ;;  %v7475_v33 = vsel %vm361_vm0, %v9806_v30, %v5335_v58  ;;  %v5354_v40 = vunpack.i.l.bf16 %v7164_v42  ;;  %v7483_v41 = vsel %vm361_vm0, %v9807_v35, %v5334_v57  ;;  %v5360_v46 = vunpack.i.h.bf16 %v7170_v47 }
 0x121   : > { %v7447_v56 = vpop.permute.xlu1 %5617  ;;  %v5359_v50 = vunpack.i.l.bf16 %v7170_v47  ;;  %v7495_v42 = vsel %vm361_vm0, %v9809_v0, %v5339_v60  ;;  %v5365_v57 = vunpack.i.h.bf16 %v7172_v48  ;;  %v5364_v51 = vunpack.i.l.bf16 %v7172_v48  ;;  %v9812_v47 = vld [vmem:[#allocation16_spill] sm:$0xff]  ;;  %v9813_v60 = vld [vmem:[#allocation15_spill] sm:$0xff] }
 0x122   : > { %v7459_v63 = vpop.permute.xlu0 %5622  ;;  %v7507_v20 = vsel %vm361_vm0, %v9811_v52, %v5344_v37  ;;  %v7511_v30 = vsel %vm361_vm0, %v9812_v47, %v5350_v28  ;;  %v7515_v35 = vsel %vm361_vm0, %v9813_v60, %v5349_v31  ;;  %v7521_v48 = vsel %vm361_vm0, %v7065_v21, %v5355_v34 }
 0x123   : > { %5907 = vrot.lane.b32.xlu1 %v5906_v38, %s6593_s28  ;;  %v9808_v38 = vld [vmem:[#allocation12_spill] sm:$0xff]  ;;  %v7525_v37 = vsel %vm361_vm0, %v7063_v25, %v5354_v40  ;;  %v5375_v28 = vunpack.i.h.bf16 %v7180_v54  ;;  %v7531_v31 = vsel %vm361_vm0, %v7069_v7, %v5360_v46  ;;  %v7535_v0 = vsel %vm361_vm0, %v7067_v4, %v5359_v50 }
 0x124   : > { %5912 = vrot.lane.b32.xlu0 %v7192_v9, %s6594_s15  ;;  %v7487_v61 = vsel %vm361_vm0, %v9808_v38, %v5340_v44  ;;  %v7499_v9 = vsel %vm361_vm0, %v9810_v3, %v5345_v15  ;;  %v5369_v15 = vunpack.i.l.bf16 %v7178_v53  ;;  %v5370_v38 = vunpack.i.h.bf16 %v7178_v53 }
 0x125   : > { %v7491_v58 = vpop.permute.xlu1 %5627  ;;  %v5380_v21 = vunpack.i.h.bf16 %v7186_v8  ;;  %v7543_v25 = vsel %vm1849_vm3, %v7355_v22, %v5365_v57  ;;  %v7547_v53 = vsel %vm1849_vm3, %v7360_v43, %v5364_v51  ;;  %v5379_v7 = vunpack.i.l.bf16 %v7186_v8 }
 0x126   : > { %v7503_v44 = vpop.permute.xlu0 %5632  ;;  %v5384_v40 = vunpack.i.l.bf16 %v7188_v13  ;;  %v5385_v46 = vunpack.i.h.bf16 %v7188_v13  ;;  %v5390_v50 = vunpack.i.h.bf16 %v7196_v16  ;;  %v5389_v22 = vunpack.i.l.bf16 %v7196_v16  ;;  %v9814_v16 = vld [vmem:[#allocation17_spill] sm:$0xff] }
 0x127   : > { %5917 = vrot.lane.b32.xlu1 %v5916_v45, %s6594_s15  ;;  %v5374_v45 = vunpack.i.l.bf16 %v7180_v54  ;;  %v7555_v54 = vsel %vm1849_vm3, %v7380_v5, %v5369_v15  ;;  %v7562_v43 = vsel %vm1849_vm3, %v7387_v6, %v5370_v38  ;;  %v7566_v8 = vsel %vm1849_vm3, %v7376_v2, %v5375_v28 }
 0x128   : > { %v5395_v3 = vunpack.i.h.bf16 %v7198_v19  ;;  %v5394_v57 = vunpack.i.l.bf16 %v7198_v19  ;;  %v7576_v13 = vsel %vm1849_vm3, %v7394_v14, %v5380_v21  ;;  %v5400_v51 = vunpack.i.h.bf16 %v9814_v16 }
 0x129   : > { %v7539_v34 = vpop.permute.xlu1 %5637  ;;  %v7572_v5 = vsel %vm1849_vm3, %v7368_v11, %v5374_v45  ;;  %v5399_v6 = vunpack.i.l.bf16 %v9814_v16  ;;  %v7584_v2 = vsel %vm1849_vm3, %v7398_v12, %v5379_v7  ;;  %v7588_v19 = vsel %vm1849_vm3, %v7410_v27, %v5384_v40  ;;  %v9815_v11 = vld [vmem:[#allocation18_spill] sm:$0xff]  ;;  %v9816_v27 = vld [vmem:[#allocation19_spill] sm:$0xff]  ;;  %v9817_v7 = vld [vmem:[#allocation20_spill] sm:$0xff] }
 0x12a   : > { %v7551_v4 = vpop.permute.xlu0 %5642  ;;  %v5405_v47 = vunpack.i.h.bf16 %v9815_v11  ;;  %v5404_v60 = vunpack.i.l.bf16 %v9815_v11  ;;  %v7596_v15 = vsel %vm1849_vm3, %v7406_v17, %v5385_v46  ;;  %v7600_v38 = vsel %vm1849_vm3, %v7418_v62, %v5390_v50  ;;  %v9820_v11 = vld [vmem:[#allocation23_spill] sm:$0xff] }
 0x12b   : > { %v7604_v12 = vsel %vm1849_vm3, %v7422_v18, %v5389_v22  ;;  %v5410_v28 = vunpack.i.h.bf16 %v9816_v27  ;;  %v7609_v45 = vsel %vm1849_vm3, %v7432_v23, %v5394_v57  ;;  %v7613_v21 = vsel %vm1849_vm3, %v7428_v1, %v5395_v3  ;;  %v9818_v23 = vld [vmem:[#allocation21_spill] sm:$0xff]  ;;  %v9819_v57 = vld [vmem:[#allocation22_spill] sm:$0xff] }
 0x12c   : > { %v5409_v17 = vunpack.i.l.bf16 %v9816_v27  ;;  %v5414_v62 = vunpack.i.l.bf16 %v9817_v7  ;;  %v7619_v40 = vsel %vm1849_vm3, %v7439_v49, %v5400_v51  ;;  %v7623_v18 = vsel %vm1849_vm3, %v7443_v55, %v5399_v6 }
 0x12d   : > { %v7580_v52 = vpop.permute.xlu1 %5647  ;;  %v5415_v46 = vunpack.i.h.bf16 %v9817_v7  ;;  %v5420_v50 = vunpack.i.h.bf16 %v9818_v23  ;;  %v7631_v1 = vsel %vm1849_vm3, %v7455_v59, %v5404_v60  ;;  %v7635_v3 = vsel %vm1849_vm3, %v7451_v24, %v5405_v47  ;;  %v9821_v60 = vld [vmem:[#allocation24_spill] sm:$0xff] }
 0x12e   : > { %v7592_v14 = vpop.permute.xlu0 %5652  ;;  %v5419_v49 = vunpack.i.l.bf16 %v9818_v23  ;;  %v5424_v16 = vunpack.i.l.bf16 %v9819_v57  ;;  %v7643_v51 = vsel %vm1849_vm3, %v7463_v29, %v5410_v28  ;;  %v5425_v6 = vunpack.i.h.bf16 %v9819_v57  ;;  %v9822_v57 = vld [vmem:[#allocation25_spill] sm:$0xff] }
 0x12f   : > { %v5430_v27 = vunpack.i.h.bf16 %v9820_v11  ;;  %v5429_v59 = vunpack.i.l.bf16 %v9820_v11  ;;  %v7650_v24 = vsel %vm1849_vm3, %v7471_v32, %v5409_v17  ;;  %v7654_v47 = vsel %vm1849_vm3, %v7483_v41, %v5414_v62 }
 0x130   : > { %v5435_v7 = vunpack.i.h.bf16 %v9821_v60  ;;  %v5434_v23 = vunpack.i.l.bf16 %v9821_v60  ;;  %v7660_v29 = vsel %vm1849_vm3, %v7475_v33, %v5415_v46  ;;  %v7664_v28 = vsel %vm1849_vm3, %v7487_v61, %v5420_v50  ;;  %v9824_v33 = vld [vmem:[#allocation26_spill] sm:$0xff] }
 0x131   : > { %v7627_v22 = vpop.permute.xlu1 %5657  ;;  %v5440_v11 = vunpack.i.h.bf16 %v9822_v57  ;;  %v5439_v32 = vunpack.i.l.bf16 %v9822_v57  ;;  %v7672_v41 = vsel %vm1849_vm3, %v7495_v42, %v5419_v49  ;;  %v7676_v62 = vsel %vm1849_vm3, %v7507_v20, %v5424_v16  ;;  %v9826_v20 = vld [vmem:[#allocation27_spill] sm:$0xff] }
 0x132   : > { %v7639_v55 = vpop.permute.xlu0 %5662  ;;  %v5445_v46 = vunpack.i.h.bf16 %v9824_v33  ;;  %v5444_v60 = vunpack.i.l.bf16 %v9824_v33  ;;  %v7684_v50 = vsel %vm1849_vm3, %v7499_v9, %v5425_v6  ;;  %v7688_v57 = vsel %vm1849_vm3, %v7511_v30, %v5430_v27  ;;  %v9827_v6 = vld [vmem:[#allocation28_spill] sm:$0xff] }
 0x133   : > { %v7692_v42 = vsel %vm1849_vm3, %v7515_v35, %v5429_v59  ;;  %v5449_v49 = vunpack.i.l.bf16 %v9826_v20  ;;  %v7697_v16 = vsel %vm1849_vm3, %v7525_v37, %v5434_v23  ;;  %v7701_v33 = vsel %vm1849_vm3, %v7521_v48, %v5435_v7  ;;  %v9828_v37 = vld [vmem:[#allocation29_spill] sm:$0xff] }
 0x134   : > { %v5450_v9 = vunpack.i.h.bf16 %v9826_v20  ;;  %v7707_v30 = vsel %vm1849_vm3, %v7531_v31, %v5440_v11  ;;  %v7711_v35 = vsel %vm1849_vm3, %v7535_v0, %v5439_v32  ;;  %v5455_v27 = vunpack.i.h.bf16 %v9827_v6  ;;  %v9830_v11 = vld [vmem:[#allocation30_spill] sm:$0xff] }
 0x135   : > { %v7668_v17 = vpop.permute.xlu1 %5667  ;;  %v5459_v59 = vunpack.i.l.bf16 %v9828_v37  ;;  %v7719_v48 = vsel %vm1882_vm5, %v7547_v53, %v5444_v60  ;;  %v7723_v7 = vsel %vm1882_vm5, %v7543_v25, %v5445_v46  ;;  %v5460_v31 = vunpack.i.h.bf16 %v9828_v37  ;;  %v9833_v60 = vld [vmem:[#allocation32_spill] sm:$0xff] }
 0x136   : > { %9823 = vst [vmem:[#allocation4_spill] sm:$0xff] %v7668_v17  ;;  %v7680_v61 = vpop.permute.xlu0 %5672  ;;  %v5464_v20 = vunpack.i.l.bf16 %v9830_v11  ;;  %v7731_v32 = vsel %vm1882_vm5, %v7555_v54, %v5449_v49  ;;  %v7738_v25 = vsel %vm1882_vm5, %v7562_v43, %v5450_v9  ;;  %v5475_v37 = vunpack.i.h.bf16 %v9833_v60 }
 0x137   : > { %9825 = vst [vmem:[#allocation6_spill] sm:$0xff] %v7680_v61  ;;  %v5454_v61 = vunpack.i.l.bf16 %v9827_v6  ;;  %v5465_v6 = vunpack.i.h.bf16 %v9830_v11  ;;  %v7748_v54 = vsel %vm1882_vm5, %v7566_v8, %v5455_v27  ;;  %v7752_v49 = vsel %vm1882_vm5, %v7584_v2, %v5459_v59  ;;  %v9836_v8 = vld [vmem:[#allocation34_spill] sm:$0xff] }
 0x138   : > { %v5485_v27 = vunpack.i.h.bf16 %v9836_v8 }
 0x139   : > { %v7715_v23 = vpop.permute.xlu1 %5677  ;;  %v7742_v46 = vsel %vm1882_vm5, %v7572_v5, %v5454_v61  ;;  %v7760_v5 = vsel %vm1882_vm5, %v7576_v13, %v5460_v31  ;;  %v7764_v61 = vsel %vm1882_vm5, %v7588_v19, %v5464_v20  ;;  %v7772_v59 = vsel %vm1882_vm5, %v7596_v15, %v5465_v6  ;;  %v9838_v19 = vld [vmem:[#allocation35_spill] sm:$0xff]  ;;  %v9839_v6 = vld [vmem:[#allocation36_spill] sm:$0xff] }
 0x13a   : > { %9829 = vst [vmem:[#allocation5_spill] sm:$0xff] %v7715_v23  ;;  %v7727_v0 = vpop.permute.xlu0 %5682  ;;  %v9832_v23 = vld [vmem:[#allocation31_spill] sm:$0xff]  ;;  %v5489_v31 = vunpack.i.l.bf16 %v9838_v19  ;;  %v5490_v15 = vunpack.i.h.bf16 %v9838_v19 }
 0x13b   : > { %9831 = vst [vmem:[#allocation8_spill] sm:$0xff] %v7727_v0  ;;  %v5470_v17 = vunpack.i.h.bf16 %v9832_v23  ;;  %v5469_v53 = vunpack.i.l.bf16 %v9832_v23  ;;  %v5474_v0 = vunpack.i.l.bf16 %v9833_v60  ;;  %v9834_v23 = vld [vmem:[#allocation33_spill] sm:$0xff]  ;;  %v5484_v60 = vunpack.i.l.bf16 %v9836_v8 }
 0x13c   : > { %v5480_v11 = vunpack.i.h.bf16 %v9834_v23  ;;  %v5479_v43 = vunpack.i.l.bf16 %v9834_v23  ;;  %v7789_v8 = vsel %vm1882_vm5, %v7613_v21, %v5475_v37  ;;  %v7811_v37 = vsel %vm1882_vm5, %v7635_v3, %v5485_v27 }
 0x13d   : > { %v7756_v9 = vpop.permute.xlu1 %5687  ;;  %v7776_v23 = vsel %vm1882_vm5, %v7604_v12, %v5469_v53  ;;  %v7780_v13 = vsel %vm1882_vm5, %v7600_v38, %v5470_v17  ;;  %v7785_v20 = vsel %vm1882_vm5, %v7609_v45, %v5474_v0  ;;  %v5494_v12 = vunpack.i.l.bf16 %v9839_v6  ;;  %v9840_v45 = vld [vmem:[#allocation37_spill] sm:$0xff] }
 0x13e   : > { %9835 = vst [vmem:[#allocation7_spill] sm:$0xff] %v7756_v9  ;;  %v7768_v2 = vpop.permute.xlu0 %5692  ;;  %v7795_v53 = vsel %vm1882_vm5, %v7623_v18, %v5479_v43  ;;  %v7799_v38 = vsel %vm1882_vm5, %v7619_v40, %v5480_v11  ;;  %v5495_v17 = vunpack.i.h.bf16 %v9839_v6  ;;  %v5499_v0 = vunpack.i.l.bf16 %v9840_v45  ;;  %v9842_v43 = vld [vmem:[#allocation38_spill] sm:$0xff] }
 0x13f   : > { %9837 = vst [vmem:[#allocation10_spill] sm:$0xff] %v7768_v2  ;;  %v7807_v21 = vsel %vm1882_vm5, %v7631_v1, %v5484_v60  ;;  %v5500_v18 = vunpack.i.h.bf16 %v9840_v45  ;;  %v5504_v19 = vunpack.i.l.bf16 %v9842_v43  ;;  %v7819_v11 = vsel %vm1882_vm5, %v7650_v24, %v5489_v31  ;;  %v9845_v60 = vld [vmem:[#allocation40_spill] sm:$0xff] }
 0x140   : > { %v5505_v6 = vunpack.i.h.bf16 %v9842_v43  ;;  %v7826_v3 = vsel %vm1882_vm5, %v7643_v51, %v5490_v15  ;;  %v7830_v27 = vsel %vm1882_vm5, %v7654_v47, %v5494_v12  ;;  %v5515_v45 = vunpack.i.h.bf16 %v9845_v60 }
 0x141   : > { %v7803_v2 = vpop.permute.xlu1 %5697  ;;  %v7836_v24 = vsel %vm1882_vm5, %v7660_v29, %v5495_v17  ;;  %v7840_v31 = vsel %vm1882_vm5, %v7672_v41, %v5499_v0  ;;  %v7848_v47 = vsel %vm1882_vm5, %v7664_v28, %v5500_v18  ;;  %v7852_v12 = vsel %vm1882_vm5, %v7676_v62, %v5504_v19  ;;  %v9847_v29 = vld [vmem:[#allocation42_spill] sm:$0xff]  ;;  %v9849_v62 = vld [vmem:[#allocation43_spill] sm:$0xff] }
 0x142   : > { %9841 = vst [vmem:[#allocation9_spill] sm:$0xff] %v7803_v2  ;;  %v7815_v40 = vpop.permute.xlu0 %5702  ;;  %v9844_v2 = vld [vmem:[#allocation39_spill] sm:$0xff]  ;;  %v5525_v17 = vunpack.i.h.bf16 %v9847_v29  ;;  %v7860_v0 = vsel %vm1882_vm5, %v7684_v50, %v5505_v6  ;;  %v5529_v18 = vunpack.i.l.bf16 %v9849_v62  ;;  %v5530_v50 = vunpack.i.h.bf16 %v9849_v62  ;;  %v9850_v6 = vld [vmem:[#allocation44_spill] sm:$0xff] }
 0x143   : > { %9843 = vst [vmem:[#allocation12_spill] sm:$0xff] %v7815_v40  ;;  %v5510_v9 = vunpack.i.h.bf16 %v9844_v2  ;;  %v5509_v1 = vunpack.i.l.bf16 %v9844_v2  ;;  %v5514_v40 = vunpack.i.l.bf16 %v9845_v60  ;;  %v9846_v2 = vld [vmem:[#allocation41_spill] sm:$0xff]  ;;  %v5524_v60 = vunpack.i.l.bf16 %v9847_v29 }
 0x144   : > { %v5520_v43 = vunpack.i.h.bf16 %v9846_v2  ;;  %v5519_v51 = vunpack.i.l.bf16 %v9846_v2  ;;  %v7877_v29 = vsel %vm1882_vm5, %v7701_v33, %v5515_v45  ;;  %v7899_v45 = vsel %vm1915_vm6, %v7723_v7, %v5525_v17 }
 0x145   : > { %v7844_v15 = vpop.permute.xlu1 %5707  ;;  %v7864_v2 = vsel %vm1882_vm5, %v7692_v42, %v5509_v1  ;;  %v7868_v28 = vsel %vm1882_vm5, %v7688_v57, %v5510_v9  ;;  %v7873_v19 = vsel %vm1882_vm5, %v7697_v16, %v5514_v40  ;;  %v5535_v9 = vunpack.i.h.bf16 %v9850_v6  ;;  %v9853_v16 = vld [vmem:[#allocation45_spill] sm:$0xff] }
 0x146   : > { %v7856_v41 = vpop.permute.xlu0 %5712  ;;  %v7883_v42 = vsel %vm1882_vm5, %v7711_v35, %v5519_v51  ;;  %v7887_v57 = vsel %vm1882_vm5, %v7707_v30, %v5520_v43  ;;  %v5539_v40 = vunpack.i.l.bf16 %v9853_v16  ;;  %v7895_v33 = vsel %vm1915_vm6, %v7719_v48, %v5524_v60  ;;  %v9854_v51 = vld [vmem:[#allocation46_spill] sm:$0xff]  ;;  %v9857_v60 = vld [vmem:[#allocation48_spill] sm:$0xff] }
 0x147   : > { %9848 = vst [vmem:[#allocation11_spill] sm:$0xff] %v7856_v41  ;;  %v5534_v41 = vunpack.i.l.bf16 %v9850_v6  ;;  %9851 = vst [vmem:[#allocation14_spill] sm:$0xff] %v7883_v42  ;;  %v5540_v35 = vunpack.i.h.bf16 %v9853_v16  ;;  %v5544_v62 = vunpack.i.l.bf16 %v9854_v51  ;;  %v7907_v43 = vsel %vm1915_vm6, %v7731_v32, %v5529_v18 }
 0x148   : > { %9852 = vst [vmem:[#allocation13_spill] sm:$0xff] %v7887_v57  ;;  %v5545_v6 = vunpack.i.h.bf16 %v9854_v51  ;;  %v9856_v57 = vld [vmem:[#allocation47_spill] sm:$0xff]  ;;  %v7914_v7 = vsel %vm1915_vm6, %v7738_v25, %v5530_v50  ;;  %v5555_v16 = vunpack.i.h.bf16 %v9857_v60  ;;  %v7924_v32 = vsel %vm1915_vm6, %v7748_v54, %v5535_v9  ;;  %v9860_v54 = vld [vmem:[#allocation50_spill] sm:$0xff] }
 0x149   : > { %v7891_v1 = vpop.permute.xlu1 %5717  ;;  %v5550_v42 = vunpack.i.h.bf16 %v9856_v57  ;;  %v5549_v48 = vunpack.i.l.bf16 %v9856_v57  ;;  %v7918_v17 = vsel %vm1915_vm6, %v7742_v46, %v5534_v41  ;;  %v7928_v18 = vsel %vm1915_vm6, %v7752_v49, %v5539_v40  ;;  %v9858_v57 = vld [vmem:[#allocation49_spill] sm:$0xff] }
 0x14a   : > { %v7903_v30 = vpop.permute.xlu0 %5722  ;;  %v5560_v51 = vunpack.i.h.bf16 %v9858_v57  ;;  %v5559_v25 = vunpack.i.l.bf16 %v9858_v57  ;;  %v7936_v46 = vsel %vm1915_vm6, %v7760_v5, %v5540_v35  ;;  %v7940_v41 = vsel %vm1915_vm6, %v7764_v61, %v5544_v62  ;;  %v9862_v61 = vld [vmem:[#allocation51_spill] sm:$0xff] }
 0x14b   : > { %9855 = vst [vmem:[#allocation16_spill] sm:$0xff] %v7903_v30  ;;  %v5554_v30 = vunpack.i.l.bf16 %v9857_v60  ;;  %v5565_v9 = vunpack.i.h.bf16 %v9860_v54  ;;  %v5564_v60 = vunpack.i.l.bf16 %v9860_v54  ;;  %v7948_v40 = vsel %vm1915_vm6, %v7772_v59, %v5545_v6  ;;  %v9863_v6 = vld [vmem:[#allocation52_spill] sm:$0xff] }
 0x14c   : > { %v7952_v57 = vsel %vm1915_vm6, %v7776_v23, %v5549_v48  ;;  %v7956_v5 = vsel %vm1915_vm6, %v7780_v13, %v5550_v42  ;;  %v5569_v35 = vunpack.i.l.bf16 %v9862_v61  ;;  %v7965_v54 = vsel %vm1915_vm6, %v7789_v8, %v5555_v16 }
 0x14d   : > { %v7932_v50 = vpop.permute.xlu1 %5727  ;;  %v7961_v62 = vsel %vm1915_vm6, %v7785_v20, %v5554_v30  ;;  %v5570_v59 = vunpack.i.h.bf16 %v9862_v61  ;;  %v7971_v23 = vsel %vm1915_vm6, %v7795_v53, %v5559_v25  ;;  %v7975_v13 = vsel %vm1915_vm6, %v7799_v38, %v5560_v51  ;;  %v9864_v20 = vld [vmem:[#allocation53_spill] sm:$0xff]  ;;  %v9866_v25 = vld [vmem:[#allocation54_spill] sm:$0xff] }
 0x14e   : > { %9859 = vst [vmem:[#allocation15_spill] sm:$0xff] %v7932_v50  ;;  %v7944_v49 = vpop.permute.xlu0 %5732  ;;  %v5575_v42 = vunpack.i.h.bf16 %v9863_v6  ;;  %v5579_v30 = vunpack.i.l.bf16 %v9864_v20  ;;  %v7983_v8 = vsel %vm1915_vm6, %v7807_v21, %v5564_v60  ;;  %v7987_v16 = vsel %vm1915_vm6, %v7811_v37, %v5565_v9  ;;  %v9869_v60 = vld [vmem:[#allocation56_spill] sm:$0xff] }
 0x14f   : > { %9861 = vst [vmem:[#allocation17_spill] sm:$0xff] %v7944_v49  ;;  %v5574_v49 = vunpack.i.l.bf16 %v9863_v6  ;;  %v5580_v53 = vunpack.i.h.bf16 %v9864_v20  ;;  %v5584_v61 = vunpack.i.l.bf16 %v9866_v25  ;;  %v7995_v51 = vsel %vm1915_vm6, %v7819_v11, %v5569_v35 }
 0x150   : > { %v5585_v6 = vunpack.i.h.bf16 %v9866_v25  ;;  %v8002_v37 = vsel %vm1915_vm6, %v7826_v3, %v5570_v59  ;;  %v5595_v20 = vunpack.i.h.bf16 %v9869_v60  ;;  %v8012_v11 = vsel %vm1915_vm6, %v7836_v24, %v5575_v42 }
 0x151   : > { %v7979_v48 = vpop.permute.xlu1 %5737  ;;  %v8006_v9 = vsel %vm1915_vm6, %v7830_v27, %v5574_v49  ;;  %v8016_v35 = vsel %vm1915_vm6, %v7840_v31, %v5579_v30  ;;  %v5604_v3 = vunpack.i.l.bf16 %v7372_v10  ;;  %v8024_v27 = vsel %vm1915_vm6, %v7848_v47, %v5580_v53 }
 0x152   : > { %9865 = vst [vmem:[#allocation18_spill] sm:$0xff] %v7979_v48  ;;  %v7991_v38 = vpop.permute.xlu0 %5742  ;;  %v9868_v48 = vld [vmem:[#allocation55_spill] sm:$0xff]  ;;  %v8028_v49 = vsel %vm1915_vm6, %v7852_v12, %v5584_v61  ;;  %v5610_v24 = vunpack.i.h.bf16 %v7402_v36  ;;  %v5609_v42 = vunpack.i.l.bf16 %v7402_v36  ;;  %v8036_v30 = vsel %vm1915_vm6, %v7860_v0, %v5585_v6 }
 0x153   : > { %9867 = vst [vmem:[#allocation19_spill] sm:$0xff] %v7991_v38  ;;  %v5590_v50 = vunpack.i.h.bf16 %v9868_v48  ;;  %v5589_v21 = vunpack.i.l.bf16 %v9868_v48  ;;  %v5594_v38 = vunpack.i.l.bf16 %v9869_v60  ;;  %v5605_v48 = vunpack.i.h.bf16 %v7372_v10 }
 0x154   : > { %v5614_v12 = vunpack.i.l.bf16 %v7414_v39  ;;  %v8053_v36 = vsel %vm1915_vm6, %v7877_v29, %v5595_v20  ;;  %v5615_v25 = vunpack.i.h.bf16 %v7414_v39  ;;  %v8071_v29 = vsel %vm1948_vm7, %v7907_v43, %v5609_v42 }
 0x155   : > { %v8020_v59 = vpop.permute.xlu1 %5747  ;;  %v8040_v10 = vsel %vm1915_vm6, %v7864_v2, %v5589_v21  ;;  %v8044_v47 = vsel %vm1915_vm6, %v7868_v28, %v5590_v50  ;;  %v8049_v53 = vsel %vm1915_vm6, %v7873_v19, %v5594_v38  ;;  %9870 = vst [vmem:[#allocation20_spill] sm:$0xff] %v8053_v36  ;;  %v8060_v28 = vsel %vm1948_vm7, %v7895_v33, %v5604_v3 }
 0x156   : > { %v8032_v31 = vpop.permute.xlu0 %5752  ;;  %v8064_v50 = vsel %vm1948_vm7, %v7899_v45, %v5605_v48  ;;  %v5619_v19 = vunpack.i.l.bf16 %v7447_v56  ;;  %v8075_v39 = vsel %vm1948_vm7, %v7914_v7, %v5610_v24  ;;  %v5620_v38 = vunpack.i.h.bf16 %v7447_v56 }
 0x157   : > { %v5624_v33 = vunpack.i.l.bf16 %v7459_v63  ;;  %v8083_v45 = vsel %vm1948_vm7, %v7918_v17, %v5614_v12  ;;  %v5625_v21 = vunpack.i.h.bf16 %v7459_v63  ;;  %v5630_v60 = vunpack.i.h.bf16 %v7491_v58 }
 0x158   : > { %v5629_v43 = vunpack.i.l.bf16 %v7491_v58  ;;  %v8090_v7 = vsel %vm1948_vm7, %v7924_v32, %v5615_v25  ;;  %v5635_v56 = vunpack.i.h.bf16 %v7503_v44  ;;  %v5634_v20 = vunpack.i.l.bf16 %v7503_v44 }
 0x159   : > { %v8067_v61 = vpop.permute.xlu1 %5757  ;;  %v5639_v48 = vunpack.i.l.bf16 %v7539_v34  ;;  %v1955_v17 = vsel %vm1948_vm7, %v7928_v18, %v5619_v19  ;;  %v5640_v63 = vunpack.i.h.bf16 %v7539_v34  ;;  %v5645_v3 = vunpack.i.h.bf16 %v7551_v4 }
 0x15a   : > { %9871 = vst [vmem:[#allocation21_spill] sm:$0xff] %v8067_v61  ;;  %v8079_v6 = vpop.permute.xlu0 %5762  ;;  %v5644_v58 = vunpack.i.l.bf16 %v7551_v4  ;;  %v1956_v32 = vsel %vm1948_vm7, %v7936_v46, %v5620_v38  ;;  %v1957_v44 = vsel %vm1948_vm7, %v7940_v41, %v5624_v33  ;;  %v5650_v42 = vunpack.i.h.bf16 %v7580_v52 }
 0x15b   : > { %v5649_v12 = vunpack.i.l.bf16 %v7580_v52  ;;  %v1958_v34 = vsel %vm1948_vm7, %v7948_v40, %v5625_v21  ;;  %v8114_v4 = vsel %vm1948_vm7, %v7952_v57, %v5629_v43  ;;  %v8118_v18 = vsel %vm1948_vm7, %v7956_v5, %v5630_v60  ;;  %v9872_v21 = vld [vmem:[#allocation8_spill] sm:$0xff]  ;;  %v9873_v43 = vld [vmem:[#allocation7_spill] sm:$0xff] }
 0x15c   : > { %v5654_v46 = vunpack.i.l.bf16 %v7592_v14  ;;  %v8123_v41 = vsel %vm1948_vm7, %v7961_v62, %v5634_v20  ;;  %v8127_v52 = vsel %vm1948_vm7, %v7965_v54, %v5635_v56  ;;  %v8131_v40 = vsel %vm1948_vm7, %v7971_v23, %v5639_v48  ;;  %v9874_v48 = vld [vmem:[#allocation10_spill] sm:$0xff] }
 0x15d   : > { %v8100_v24 = vpop.permute.xlu1 %5767  ;;  %v5655_v57 = vunpack.i.h.bf16 %v7592_v14  ;;  %v8136_v5 = vsel %vm1948_vm7, %v7975_v13, %v5640_v63  ;;  %v8140_v19 = vsel %vm1948_vm7, %v7983_v8, %v5644_v58  ;;  %v8144_v62 = vsel %vm1948_vm7, %v7987_v16, %v5645_v3  ;;  %v9875_v58 = vld [vmem:[#allocation9_spill] sm:$0xff] }
 0x15e   : > { %v8108_v25 = vpop.permute.xlu0 %5772  ;;  %v5659_v54 = vunpack.i.l.bf16 %v7627_v22  ;;  %v8151_v14 = vsel %vm1948_vm7, %v7995_v51, %v5649_v12  ;;  %v8155_v23 = vsel %vm1948_vm7, %v8002_v37, %v5650_v42  ;;  %v5660_v13 = vunpack.i.h.bf16 %v7627_v22 }
 0x15f   : > { %v5664_v8 = vunpack.i.l.bf16 %v7639_v55  ;;  %v8163_v16 = vsel %vm1948_vm7, %v8006_v9, %v5654_v46  ;;  %v5685_v60 = vunpack.i.h.bf16 %v9872_v21  ;;  %v5684_v51 = vunpack.i.l.bf16 %v9872_v21  ;;  %v9876_v21 = vld [vmem:[#allocation12_spill] sm:$0xff] }
 0x160   : > { %v5689_v56 = vunpack.i.l.bf16 %v9873_v43  ;;  %v8170_v37 = vsel %vm1948_vm7, %v8012_v11, %v5655_v57  ;;  %v5690_v20 = vunpack.i.h.bf16 %v9873_v43  ;;  %v5694_v63 = vunpack.i.l.bf16 %v9874_v48 }
 0x161   : > { %v8147_v38 = vpop.permute.xlu1 %5777  ;;  %v8177_v9 = vsel %vm1948_vm7, %v8016_v35, %v5659_v54  ;;  %v5695_v3 = vunpack.i.h.bf16 %v9874_v48  ;;  %v5700_v42 = vunpack.i.h.bf16 %v9875_v58  ;;  %v5699_v12 = vunpack.i.l.bf16 %v9875_v58  ;;  %v9877_v48 = vld [vmem:[#allocation4_spill] sm:$0xff] }
 0x162   : > { %v8159_v33 = vpop.permute.xlu0 %5782  ;;  %v8186_v11 = vsel %vm1948_vm7, %v8024_v27, %v5660_v13  ;;  %v8190_v57 = vsel %vm1948_vm7, %v8028_v49, %v5664_v8  ;;  %v5705_v35 = vunpack.i.h.bf16 %v9876_v21  ;;  %v5704_v54 = vunpack.i.l.bf16 %v9876_v21 }
 0x163   : > { %v1984_v58 = vsel %vm1981_vm8, %v8071_v29, %v5689_v56  ;;  %v1982_v2 = vsel %vm1981_vm8, %v8060_v28, %v5684_v51  ;;  %v1983_v27 = vsel %vm1981_vm8, %v8064_v50, %v5685_v60  ;;  %v1985_v49 = vsel %vm1981_vm8, %v8075_v39, %v5690_v20 }
 0x164   : > { %v1986_v13 = vsel %vm1981_vm8, %v8083_v45, %v5694_v63  ;;  %v5765_v8 = vunpack.i.h.bf16 %v8079_v6  ;;  %v5764_v21 = vunpack.i.l.bf16 %v8079_v6  ;;  %v1987_v0 = vsel %vm1981_vm8, %v8090_v7, %v5695_v3  ;;  %v9878_v3 = vld [vmem:[#allocation11_spill] sm:$0xff] }
 0x165   : > { %v8182_v46 = vpop.permute.xlu1 %5787  ;;  %v1988_v29 = vsel %vm1981_vm8, %v1955_v17, %v5699_v12  ;;  %v1989_v28 = vsel %vm1981_vm8, %v1956_v32, %v5700_v42  ;;  %v5769_v51 = vunpack.i.l.bf16 %v8100_v24  ;;  %v1990_v39 = vsel %vm1981_vm8, %v1957_v44, %v5704_v54 }
 0x166   : > { %v8194_v43 = vpop.permute.xlu0 %5792  ;;  %v1991_v60 = vsel %vm1981_vm8, %v1958_v34, %v5705_v35  ;;  %v5710_v45 = vunpack.i.h.bf16 %v7844_v15  ;;  %v5770_v56 = vunpack.i.h.bf16 %v8100_v24  ;;  %v5775_v20 = vunpack.i.h.bf16 %v8108_v25 }
 0x167   : > { %v5774_v7 = vunpack.i.l.bf16 %v8108_v25  ;;  %v5709_v32 = vunpack.i.l.bf16 %v7844_v15  ;;  %v5715_v42 = vunpack.i.h.bf16 %v9878_v3  ;;  %v2015_v12 = vsel %vm2014_vm9, %v1982_v2, %v5764_v21 }
 0x168   : > { %v2016_v44 = vsel %vm2014_vm9, %v1983_v27, %v5765_v8  ;;  %v5714_v34 = vunpack.i.l.bf16 %v9878_v3  ;;  %v2017_v35 = vsel %vm2014_vm9, %v1984_v58, %v5769_v51  ;;  %v2018_v25 = vsel %vm2014_vm9, %v1985_v49, %v5770_v56 }
 0x169   : > { %v8214_v50 = vpop.permute.xlu1 %5797  ;;  %v2019_v36 = vsel %vm2014_vm9, %v1986_v13, %v5774_v7  ;;  %v2020_v2 = vsel %vm2014_vm9, %v1987_v0, %v5775_v20  ;;  %v5780_v21 = vunpack.i.h.bf16 %v8147_v38  ;;  %v5779_v58 = vunpack.i.l.bf16 %v8147_v38 }
 0x16a   : > { %v5803_v6 = vpop.permute.xlu0 %5802  ;;  %v5785_v49 = vunpack.i.h.bf16 %v8159_v33  ;;  %v5784_v20 = vunpack.i.l.bf16 %v8159_v33  ;;  %v1995_v33 = vsel %vm1981_vm8, %v8127_v52, %v5715_v42  ;;  %vm4143_vm5 = vcmask 588800  }
 0x16b   : > { %v5805_v17 = vunpack.i.h.bf16 %v5803_v6  ;;  %v5804_v63 = vunpack.i.l.bf16 %v5803_v6 }
 0x16d   : > { %v5808_v24 = vpop.permute.xlu1 %5807  ;;  %v2048_v54 = vsel %vm2047_vm10, %v2015_v12, %v5804_v63  ;;  %v2049_v22 = vsel %vm2047_vm10, %v2016_v44, %v5805_v17  ;;  %v5719_v12 = vunpack.i.l.bf16 %v7891_v1 }
 0x16e   : > { %v5810_v6 = vunpack.i.h.bf16 %v5808_v24  ;;  %v5809_v26 = vunpack.i.l.bf16 %v5808_v24  ;;  %v5813_v15 = vpop.permute.xlu0 %5812  ;;  %v2080_v61 = vpack.c.bf16 %v2049_v22, %v2048_v54  ;;  %v9879_v24 = vld [vmem:[#allocation16_spill] sm:$0xff] }
 0x16f   : > { %v5815_v27 = vunpack.i.h.bf16 %v5813_v15  ;;  %v5814_v8 = vunpack.i.l.bf16 %v5813_v15  ;;  %v5724_v54 = vunpack.i.l.bf16 %v9879_v24 }
 0x170   : > { %v2050_v51 = vsel %vm2047_vm10, %v2017_v35, %v5809_v26  ;;  %v2051_v17 = vsel %vm2047_vm10, %v2018_v25, %v5810_v6  ;;  %5142 = vmatprep.mubr.msk.bf16.mxu0 %vm2116_vm11, %v2080_v61  ;;  %v1992_v26 = vsel %vm1981_vm8, %v8114_v4, %v5709_v32  ;;  %v1994_v35 = vsel %vm1981_vm8, %v8123_v41, %v5714_v34 }
 0x171   : > { %v2052_v22 = vsel %vm2047_vm10, %v2019_v36, %v5814_v8  ;;  %v2053_v13 = vsel %vm2047_vm10, %v2020_v2, %v5815_v27  ;;  %v5818_v56 = vpop.permute.xlu1 %5817  ;;  %v2081_v0 = vpack.c.bf16 %v2051_v17, %v2050_v51  ;;  %v1993_v36 = vsel %vm1981_vm8, %v8118_v18, %v5710_v45  ;;  %v9880_v2 = vld [vmem:[#allocation15_spill] sm:$0xff] }
 0x172   : > { %v5820_v7 = vunpack.i.h.bf16 %v5818_v56  ;;  %v5819_v63 = vunpack.i.l.bf16 %v5818_v56  ;;  %v5823_v3 = vpop.permute.xlu0 %5822  ;;  %v2082_v38 = vpack.c.bf16 %v2053_v13, %v2052_v22  ;;  %v5720_v4 = vunpack.i.h.bf16 %v7891_v1  ;;  %v9882_v1 = vld [vmem:[#allocation18_spill] sm:$0xff] }
 0x173   : > { %v5825_v61 = vunpack.i.h.bf16 %v5823_v3  ;;  %v5824_v44 = vunpack.i.l.bf16 %v5823_v3  ;;  %5143 = vmatmul.mubr.msk.bf16.vlgmr.msra.gmra.mxu0 %vm2116_vm11, %v2081_v0  ;;  %v5725_v32 = vunpack.i.h.bf16 %v9879_v24  ;;  %v2021_v25 = vsel %vm2014_vm9, %v1988_v29, %v5779_v58 }
 0x174   : > { %5146 = vmatprep.mubr.msk.bf16.mxu0 %vm2116_vm11, %v2082_v38  ;;  %v2022_v6 = vsel %vm2014_vm9, %v1989_v28, %v5780_v21  ;;  %v2023_v18 = vsel %vm2014_vm9, %v1990_v39, %v5784_v20  ;;  %v2024_v41 = vsel %vm2014_vm9, %v1991_v60, %v5785_v49  ;;  %v2054_v45 = vsel %vm2047_vm10, %v2021_v25, %v5819_v63 }
 0x175   : > { %v5828_v15 = vpop.permute.xlu1 %5827  ;;  %v2055_v52 = vsel %vm2047_vm10, %v2022_v6, %v5820_v7  ;;  %v8264_v34 = vsel %vm1981_vm8, %v8131_v40, %v5719_v12  ;;  %v5729_v27 = vunpack.i.l.bf16 %v9880_v2  ;;  %v2056_v29 = vsel %vm2047_vm10, %v2023_v18, %v5824_v44  ;;  %v9881_v7 = vld [vmem:[#allocation17_spill] sm:$0xff] }
 0x176   : > { %v5833_v42 = vpop.permute.xlu0 %5832  ;;  %v2057_v28 = vsel %vm2047_vm10, %v2024_v41, %v5825_v61  ;;  %v5790_v8 = vunpack.i.h.bf16 %v8182_v46  ;;  %v5789_v39 = vunpack.i.l.bf16 %v8182_v46  ;;  %v5795_v60 = vunpack.i.h.bf16 %v8194_v43 }
 0x177   : > { %v1998_v21 = vsel %vm1981_vm8, %v8140_v19, %v5724_v54  ;;  %v5794_v58 = vunpack.i.l.bf16 %v8194_v43  ;;  %v5830_v51 = vunpack.i.h.bf16 %v5828_v15  ;;  %v5829_v40 = vunpack.i.l.bf16 %v5828_v15 }
 0x178   : > { %v2083_v49 = vpack.c.bf16 %v2055_v52, %v2054_v45  ;;  %v5730_v22 = vunpack.i.h.bf16 %v9880_v2  ;;  %v5835_v13 = vunpack.i.h.bf16 %v5833_v42  ;;  %v5834_v56 = vunpack.i.l.bf16 %v5833_v42 }
 0x179   : > { %v8275_v17 = vpop.permute.xlu1 %5837  ;;  %v2084_v20 = vpack.c.bf16 %v2057_v28, %v2056_v29  ;;  %v2000_v46 = vsel %vm1981_vm8, %v8151_v14, %v5729_v27  ;;  %v5735_v63 = vunpack.i.h.bf16 %v9881_v7  ;;  %v5734_v19 = vunpack.i.l.bf16 %v9881_v7 }
 0x17a   : > { %v5843_v0 = vpop.permute.xlu0 %5842  ;;  %v1999_v43 = vsel %vm1981_vm8, %v8144_v62, %v5725_v32  ;;  %v2025_v3 = vsel %vm2014_vm9, %v1992_v26, %v5789_v39  ;;  %v2026_v38 = vsel %vm2014_vm9, %v1993_v36, %v5790_v8  ;;  %v2027_v44 = vsel %vm2014_vm9, %v1994_v35, %v5794_v58 }
 0x17b   : > { %5147 = vmatmul.mubr.msk.bf16.gmra.mxu0 %vm2116_vm11, %v2083_v49  ;;  %v5845_v12 = vunpack.i.h.bf16 %v5843_v0  ;;  %v5844_v61 = vunpack.i.l.bf16 %v5843_v0  ;;  %v2028_v14 = vsel %vm2014_vm9, %v1995_v33, %v5795_v60  ;;  %v2058_v24 = vsel %vm2047_vm10, %v2025_v3, %v5829_v40 }
 0x17c   : > { %5150 = vmatprep.mubr.msk.bf16.mxu0 %vm2116_vm11, %v2084_v20  ;;  %v2059_v54 = vsel %vm2047_vm10, %v2026_v38, %v5830_v51  ;;  %v2001_v62 = vsel %vm1981_vm8, %v8155_v23, %v5730_v22  ;;  %v5800_v26 = vunpack.i.h.bf16 %v8214_v50  ;;  %v2060_v36 = vsel %vm2047_vm10, %v2027_v44, %v5834_v56 }
 0x17d   : > { %v5848_v25 = vpop.permute.xlu1 %5847  ;;  %v2061_v32 = vsel %vm2047_vm10, %v2028_v14, %v5835_v13  ;;  %v5799_v33 = vunpack.i.l.bf16 %v8214_v50  ;;  %v2085_v45 = vpack.c.bf16 %v2059_v54, %v2058_v24  ;;  %v2031_v52 = vsel %vm2014_vm9, %v1998_v21, %v5844_v61 }
 0x17e   : > { %v5853_v6 = vpop.permute.xlu0 %5852  ;;  %v5850_v15 = vunpack.i.h.bf16 %v5848_v25  ;;  %v5849_v18 = vunpack.i.l.bf16 %v5848_v25  ;;  %v2032_v42 = vsel %vm2014_vm9, %v1999_v43, %v5845_v12  ;;  %v5840_v23 = vunpack.i.h.bf16 %v8275_v17 }
 0x17f   : > { %v5855_v35 = vunpack.i.h.bf16 %v5853_v6  ;;  %v5854_v41 = vunpack.i.l.bf16 %v5853_v6  ;;  %v5839_v2 = vunpack.i.l.bf16 %v8275_v17  ;;  %v2086_v51 = vpack.c.bf16 %v2061_v32, %v2060_v36 }
 0x180   : > { %v1997_v50 = vsel %vm1981_vm8, %v8136_v5, %v5720_v4  ;;  %v2002_v21 = vsel %vm1981_vm8, %v8163_v16, %v5734_v19  ;;  %v2033_v40 = vsel %vm2014_vm9, %v2000_v46, %v5849_v18  ;;  %v2034_v17 = vsel %vm2014_vm9, %v2001_v62, %v5850_v15 }
 0x181   : > { %v5858_v27 = vpop.permute.xlu1 %5857  ;;  %v2064_v29 = vsel %vm2047_vm10, %v2031_v52, %v5854_v41  ;;  %v2065_v28 = vsel %vm2047_vm10, %v2032_v42, %v5855_v35  ;;  %v5739_v5 = vunpack.i.l.bf16 %v9882_v1  ;;  %v2029_v16 = vsel %vm2014_vm9, %v8264_v34, %v5799_v33  ;;  %v9883_v34 = vld [vmem:[#allocation19_spill] sm:$0xff] }
 0x182   : > { %v5860_v8 = vunpack.i.h.bf16 %v5858_v27  ;;  %v5859_v39 = vunpack.i.l.bf16 %v5858_v27  ;;  %v5863_v60 = vpop.permute.xlu0 %5862  ;;  %v2088_v58 = vpack.c.bf16 %v2065_v28, %v2064_v29  ;;  %v2030_v4 = vsel %vm2014_vm9, %v1997_v50, %v5800_v26 }
 0x183   : > { %5151 = vmatmul.mubr.msk.bf16.gmra.mxu0 %vm2116_vm11, %v2085_v45  ;;  %v5865_v13 = vunpack.i.h.bf16 %v5863_v60  ;;  %v5864_v56 = vunpack.i.l.bf16 %v5863_v60  ;;  %v2003_v46 = vsel %vm1981_vm8, %v8170_v37, %v5735_v63  ;;  %v5740_v7 = vunpack.i.h.bf16 %v9882_v1 }
 0x184   : > { %v2066_v49 = vsel %vm2047_vm10, %v2033_v40, %v5859_v39  ;;  %v2067_v22 = vsel %vm2047_vm10, %v2034_v17, %v5860_v8  ;;  %5158 = vmatprep.mubr.msk.bf16.mxu1 %vm2116_vm11, %v2088_v58  ;;  %5154 = vmatprep.mubr.msk.bf16.mxu0 %vm2116_vm11, %v2086_v51  ;;  %v2062_v19 = vsel %vm2047_vm10, %v2029_v16, %v5839_v2  ;;  %v5745_v14 = vunpack.i.h.bf16 %v9883_v34 }
 0x185   : > { %v5868_v0 = vpop.permute.xlu1 %5867  ;;  %v2089_v20 = vpack.c.bf16 %v2067_v22, %v2066_v49  ;;  %v2063_v43 = vsel %vm2047_vm10, %v2030_v4, %v5840_v23  ;;  %v5744_v24 = vunpack.i.l.bf16 %v9883_v34  ;;  %v2035_v54 = vsel %vm2014_vm9, %v2002_v21, %v5864_v56  ;;  %v9888_v34 = vld [vmem:[#allocation20_spill] sm:$0xff] }
 0x186   : > { %v5873_v3 = vpop.permute.xlu0 %5872  ;;  %v5870_v38 = vunpack.i.h.bf16 %v5868_v0  ;;  %v5869_v12 = vunpack.i.l.bf16 %v5868_v0  ;;  %v2036_v37 = vsel %vm2014_vm9, %v2003_v46, %v5865_v13  ;;  %v2004_v63 = vsel %vm1981_vm8, %v8177_v9, %v5739_v5 }
 0x187   : > { %v5875_v61 = vunpack.i.h.bf16 %v5873_v3  ;;  %v5874_v44 = vunpack.i.l.bf16 %v5873_v3  ;;  %5159 = vmatmul.mubr.msk.bf16.vlgmr.msra.gmra.mxu1 %vm2116_vm11, %v2089_v20  ;;  %v2087_v36 = vpack.c.bf16 %v2063_v43, %v2062_v19  ;;  %v2005_v32 = vsel %vm1981_vm8, %v8186_v11, %v5740_v7  ;;  %v9887_v19 = vld [vmem:[#allocation5_spill] sm:$0xff] }
 0x188   : > { %v9884_v41 = vunpack.i.h.bf16 %v7639_v55  ;;  %v5670_v9 = vunpack.i.h.bf16 %v9877_v48  ;;  %v2037_v45 = vsel %vm2014_vm9, %v2004_v63, %v5869_v12  ;;  %v2038_v52 = vsel %vm2014_vm9, %v2005_v32, %v5870_v38  ;;  %v9885_v55 = vld [vmem:[#allocation6_spill] sm:$0xff] }
 0x189   : > { %v2068_v25 = vsel %vm2047_vm10, %v2035_v54, %v5874_v44  ;;  %v2069_v62 = vsel %vm2047_vm10, %v2036_v37, %v5875_v61  ;;  %v5878_v26 = vpop.permute.xlu1 %5877  ;;  %v5675_v27 = vunpack.i.h.bf16 %v9885_v55  ;;  %v5749_v29 = vunpack.i.l.bf16 %v8020_v59 }
 0x18a   : > { %v5880_v6 = vunpack.i.h.bf16 %v5878_v26  ;;  %v5879_v15 = vunpack.i.l.bf16 %v5878_v26  ;;  %v5883_v18 = vpop.permute.xlu0 %5882  ;;  %v2090_v35 = vpack.c.bf16 %v2069_v62, %v2068_v25  ;;  %v1974_v33 = vsel %vm1948_vm7, %v8036_v30, %v9884_v41  ;;  %v9890_v25 = vld [vmem:[#allocation57_spill] sm:$0xff]  ;;  %v9892_v26 = vld [vmem:[#allocation14_spill] sm:$0xff] }
 0x18b   : > { %5155 = vmatmul.mubr.msk.bf16.gmra.mxu0 %vm2116_vm11, %v2087_v36  ;;  %v5885_v23 = vunpack.i.h.bf16 %v5883_v18  ;;  %v5884_v2 = vunpack.i.l.bf16 %v5883_v18  ;;  %v5674_v30 = vunpack.i.l.bf16 %v9885_v55  ;;  %v9886_v39 = vunpack.i.l.bf16 %v9877_v48 }
 0x18c   : > { %v2070_v42 = vsel %vm2047_vm10, %v2037_v45, %v5879_v15  ;;  %v2071_v11 = vsel %vm2047_vm10, %v2038_v52, %v5880_v6  ;;  %5162 = vmatprep.mubr.msk.bf16.mxu1 %vm2116_vm11, %v2090_v35  ;;  %v2006_v58 = vsel %vm1981_vm8, %v8190_v57, %v5744_v24  ;;  %v2007_v51 = vsel %vm1981_vm8, %v1974_v33, %v5745_v14  ;;  %v9894_v52 = vld [vmem:[#allocation13_spill] sm:$0xff] }
 0x18d   : > { %v5888_v28 = vpop.permute.xlu1 %5887  ;;  %v2091_v8 = vpack.c.bf16 %v2071_v11, %v2070_v42  ;;  %v1975_v60 = vsel %vm1948_vm7, %v8040_v10, %v9886_v39  ;;  %v5750_v50 = vunpack.i.h.bf16 %v8020_v59  ;;  %v1976_v48 = vsel %vm1948_vm7, %v8044_v47, %v5670_v9 }
 0x18e   : > { %v5893_v21 = vpop.permute.xlu0 %5892  ;;  %v5890_v40 = vunpack.i.h.bf16 %v5888_v28  ;;  %v5889_v17 = vunpack.i.l.bf16 %v5888_v28  ;;  %v5755_v13 = vunpack.i.h.bf16 %v8032_v31  ;;  %v2039_v10 = vsel %vm2014_vm9, %v2006_v58, %v5884_v2 }
 0x18f   : > { %v5895_v49 = vunpack.i.h.bf16 %v5893_v21  ;;  %v5894_v22 = vunpack.i.l.bf16 %v5893_v21  ;;  %5163 = vmatmul.mubr.msk.bf16.gmra.mxu1 %vm2116_vm11, %v2091_v8  ;;  %v2040_v57 = vsel %vm2014_vm9, %v2007_v51, %v5885_v23  ;;  %v2008_v56 = vsel %vm1981_vm8, %v1975_v60, %v5749_v29 }
 0x190   : > { %v5754_v59 = vunpack.i.l.bf16 %v8032_v31  ;;  %v2009_v4 = vsel %vm1981_vm8, %v1976_v48, %v5750_v50  ;;  %v1977_v7 = vsel %vm1948_vm7, %v8049_v53, %v5674_v30  ;;  %v5679_v43 = vunpack.i.l.bf16 %v9887_v19  ;;  %v9889_v53 = vld [vmem:[#allocation21_spill] sm:$0xff] }
 0x191   : > { %v2072_v1 = vsel %vm2047_vm10, %v2039_v10, %v5894_v22  ;;  %v2073_v5 = vsel %vm2047_vm10, %v2040_v57, %v5895_v49  ;;  %v5898_v16 = vpop.permute.xlu1 %5897  ;;  %v2041_v3 = vsel %vm2014_vm9, %v2008_v56, %v5889_v17  ;;  %v2042_v31 = vsel %vm2014_vm9, %v2009_v4, %v5890_v40  ;;  %v2550_v22 = vld [vmem:[#allocation3 + $0x1] sm:$0xff] }
 0x192   : > { %v5900_v0 = vunpack.i.h.bf16 %v5898_v16  ;;  %v5899_v20 = vunpack.i.l.bf16 %v5898_v16  ;;  %v5903_v47 = vpop.permute.xlu0 %5902  ;;  %v2092_v46 = vpack.c.bf16 %v2073_v5, %v2072_v1  ;;  %v1978_v14 = vsel %vm1948_vm7, %v9888_v34, %v5675_v27  ;;  %v2582_v10 = vld [vmem:[#allocation3 + $0x2] sm:$0xff]  ;;  %v8492_v5 = vld [vmem:[%s9666_s3] ss:$0 sm:$0xff] }
 0x193   : > { %v5905_v61 = vunpack.i.h.bf16 %v5903_v47  ;;  %v5904_v44 = vunpack.i.l.bf16 %v5903_v47  ;;  %v5680_v24 = vunpack.i.h.bf16 %v9887_v19  ;;  %v5759_v54 = vunpack.i.l.bf16 %v9889_v53 }
 0x194   : > { %v2074_v38 = vsel %vm2047_vm10, %v2041_v3, %v5899_v20  ;;  %v2075_v12 = vsel %vm2047_vm10, %v2042_v31, %v5900_v0  ;;  %5166 = vmatprep.mubr.msk.bf16.mxu1 %vm2116_vm11, %v2092_v46  ;;  %v9891_v62 = vunpack.i.l.bf16 %v9890_v25  ;;  %v2010_v32 = vsel %vm1981_vm8, %v1977_v7, %v5754_v59  ;;  %v8487_v59 = vld [vmem:[%s9665_s2] ss:$0 sm:$0xff] }
 0x195   : > { %v5908_v37 = vpop.permute.xlu1 %5907  ;;  %v2093_v63 = vpack.c.bf16 %v2075_v12, %v2074_v38  ;;  %v2011_v6 = vsel %vm1981_vm8, %v1978_v14, %v5755_v13  ;;  %v5760_v15 = vunpack.i.h.bf16 %v9889_v53  ;;  %v9893_v45 = vunpack.i.h.bf16 %v9890_v25 }
 0x196   : > { %v1946_v36 = vsel %vm1915_vm6, %v9892_v26, %v9891_v62  ;;  %v5913_v18 = vpop.permute.xlu0 %5912  ;;  %v5910_v35 = vunpack.i.h.bf16 %v5908_v37  ;;  %v5909_v41 = vunpack.i.l.bf16 %v5908_v37  ;;  %v2043_v23 = vsel %vm2014_vm9, %v2010_v32, %v5904_v44 }
 0x197   : > { %v5915_v33 = vunpack.i.h.bf16 %v5913_v18  ;;  %v5914_v9 = vunpack.i.l.bf16 %v5913_v18  ;;  %5167 = vmatmul.mubr.msk.bf16.gmra.mxu1 %vm2116_vm11, %v2093_v63  ;;  %v1947_v42 = vsel %vm1915_vm6, %v9894_v52, %v9893_v45  ;;  %v1979_v11 = vsel %vm1948_vm7, %v1946_v36, %v5679_v43 }
 0x198   : > { %v2044_v2 = vsel %vm2014_vm9, %v2011_v6, %v5905_v61  ;;  %v1980_v55 = vsel %vm1948_vm7, %v1947_v42, %v5680_v24  ;;  %v2012_v27 = vsel %vm1981_vm8, %v1979_v11, %v5759_v54  ;;  %v9895_v49 = vmov 0.0  }
 0x199   : > { %v2076_v30 = vsel %vm2047_vm10, %v2043_v23, %v5914_v9  ;;  %v2077_v29 = vsel %vm2047_vm10, %v2044_v2, %v5915_v33  ;;  %v5918_v28 = vpop.permute.xlu1 %5917  ;;  %v2013_v8 = vsel %vm1981_vm8, %v1980_v55, %v5760_v15  ;;  %v2045_v51 = vsel %vm2014_vm9, %v2012_v27, %v5909_v41  ;;  %2443 = vst.msk [vmem:[#allocation3 + $0x10] sm:$0x3] %vm2442_vm12, %v9895_v49 }
 0x19a   : > { %v5920_v39 = vunpack.i.h.bf16 %v5918_v28  ;;  %v5919_v60 = vunpack.i.l.bf16 %v5918_v28  ;;  %v2094_v58 = vpack.c.bf16 %v2077_v29, %v2076_v30  ;;  %v2046_v50 = vsel %vm2014_vm9, %v2013_v8, %v5910_v35  ;;  %2447 = vst.msk [vmem:[#allocation3 + $0x1a8] sm:$0x3] %vm2442_vm12, %v9895_v49 }
 0x19b   : > { %2467 = vst.msk [vmem:[#allocation3 + $0x11] sm:$0x1] %vm2448_vm13, %v9895_v49  ;;  %2449 = vst.msk [vmem:[#allocation3] sm:$0x1] %vm2448_vm13, %v9895_v49 }
 0x19c   : > { %v2078_v21 = vsel %vm2047_vm10, %v2045_v51, %v5919_v60  ;;  %v2079_v40 = vsel %vm2047_vm10, %v2046_v50, %v5920_v39  ;;  %5170 = vmatprep.mubr.msk.bf16.mxu1 %vm2116_vm11, %v2094_v58  ;;  %2450 = vst.msk [vmem:[#allocation3 + $0x18] sm:$0x1] %vm2448_vm13, %v9895_v49  ;;  %2451 = vst.msk [vmem:[#allocation3 + $0x30] sm:$0x1] %vm2448_vm13, %v9895_v49 }
 0x19d   : > { %v2095_v17 = vpack.c.bf16 %v2079_v40, %v2078_v21  ;;  %2452 = vst.msk [vmem:[#allocation3 + $0x48] sm:$0x1] %vm2448_vm13, %v9895_v49  ;;  %2453 = vst.msk [vmem:[#allocation3 + $0x60] sm:$0x1] %vm2448_vm13, %v9895_v49 }
 0x19e   : > { %2454 = vst.msk [vmem:[#allocation3 + $0x78] sm:$0x1] %vm2448_vm13, %v9895_v49  ;;  %2455 = vst.msk [vmem:[#allocation3 + $0x90] sm:$0x1] %vm2448_vm13, %v9895_v49 }
 0x19f   : > { %5171 = vmatmul.mubr.msk.bf16.gmra.mxu1 %vm2116_vm11, %v2095_v17  ;;  %2456 = vst.msk [vmem:[#allocation3 + $0xa8] sm:$0x1] %vm2448_vm13, %v9895_v49  ;;  %2457 = vst.msk [vmem:[#allocation3 + $0xc0] sm:$0x1] %vm2448_vm13, %v9895_v49 }
 0x1a0   : > { %2458 = vst.msk [vmem:[#allocation3 + $0xd8] sm:$0x1] %vm2448_vm13, %v9895_v49  ;;  %2459 = vst.msk [vmem:[#allocation3 + $0xf0] sm:$0x1] %vm2448_vm13, %v9895_v49  ;;  %v2551_v48 = vld [vmem:[#allocation3 + $0x9] sm:$0xff] }
 0x1a1   : > { %2460 = vst.msk [vmem:[#allocation3 + $0x108] sm:$0x1] %vm2448_vm13, %v9895_v49  ;;  %2461 = vst.msk [vmem:[#allocation3 + $0x120] sm:$0x1] %vm2448_vm13, %v9895_v49  ;;  %v5921_v13 = vpack.i.bf16 %v2551_v48, %v2550_v22 }
 0x1a2   : > { %2462 = vst.msk [vmem:[#allocation3 + $0x138] sm:$0x1] %vm2448_vm13, %v9895_v49  ;;  %2463 = vst.msk [vmem:[#allocation3 + $0x150] sm:$0x1] %vm2448_vm13, %v9895_v49  ;;  %v2583_v57 = vld [vmem:[#allocation3 + $0xa] sm:$0xff] }
 0x1a3   : > { %2464 = vst.msk [vmem:[#allocation3 + $0x168] sm:$0x1] %vm2448_vm13, %v9895_v49  ;;  %2465 = vst.msk [vmem:[#allocation3 + $0x180] sm:$0x1] %vm2448_vm13, %v9895_v49  ;;  %5922 = vrot.lane.b32.xlu0 %v5921_v13, %s6588_s21  ;;  %v5926_v56 = vpack.i.bf16 %v2583_v57, %v2582_v10 }
 0x1a4   : > { %2466 = vst.msk [vmem:[#allocation3 + $0x198] sm:$0x1] %vm2448_vm13, %v9895_v49  ;;  %2468 = vst.msk [vmem:[#allocation3 + $0x29] sm:$0x1] %vm2448_vm13, %v9895_v49 }
 0x1a5   : > { %2469 = vst.msk [vmem:[#allocation3 + $0x41] sm:$0x1] %vm2448_vm13, %v9895_v49  ;;  %2470 = vst.msk [vmem:[#allocation3 + $0x59] sm:$0x1] %vm2448_vm13, %v9895_v49 }
 0x1a6   : > { %2471 = vst.msk [vmem:[#allocation3 + $0x71] sm:$0x1] %vm2448_vm13, %v9895_v49  ;;  %2472 = vst.msk [vmem:[#allocation3 + $0x89] sm:$0x1] %vm2448_vm13, %v9895_v49 }
 0x1a7   : > { %2473 = vst.msk [vmem:[#allocation3 + $0xa1] sm:$0x1] %vm2448_vm13, %v9895_v49  ;;  %2474 = vst.msk [vmem:[#allocation3 + $0xb9] sm:$0x1] %vm2448_vm13, %v9895_v49  ;;  %5927 = vrot.lane.b32.xlu0 %v5926_v56, %s6590_s23 }
 0x1a8   : > { %2475 = vst.msk [vmem:[#allocation3 + $0xd1] sm:$0x1] %vm2448_vm13, %v9895_v49  ;;  %2476 = vst.msk [vmem:[#allocation3 + $0xe9] sm:$0x1] %vm2448_vm13, %v9895_v49 }
 0x1a9   : > { %2477 = vst.msk [vmem:[#allocation3 + $0x101] sm:$0x1] %vm2448_vm13, %v9895_v49  ;;  %2478 = vst.msk [vmem:[#allocation3 + $0x119] sm:$0x1] %vm2448_vm13, %v9895_v49 }
 0x1aa   : > { %2479 = vst.msk [vmem:[#allocation3 + $0x131] sm:$0x1] %vm2448_vm13, %v9895_v49  ;;  %2480 = vst.msk [vmem:[#allocation3 + $0x149] sm:$0x1] %vm2448_vm13, %v9895_v49 }
 0x1ab   : > { %2481 = vst.msk [vmem:[#allocation3 + $0x161] sm:$0x1] %vm2448_vm13, %v9895_v49  ;;  %2482 = vst.msk [vmem:[#allocation3 + $0x179] sm:$0x1] %vm2448_vm13, %v9895_v49 }
 0x1ac   : > { %2483 = vst.msk [vmem:[#allocation3 + $0x191] sm:$0x1] %vm2448_vm13, %v9895_v49  ;;  %2484 = vst.msk [vmem:[#allocation3 + $0x1a9] sm:$0x1] %vm2448_vm13, %v9895_v49 }
 0x233   : > { %v5144_v1 = vpop.f32.mrf.mxu0 }
 0x234   : > { %v2339_v16 = vmul.f32 %v5144_v1, %v8487_v59 }
 0x235   : > { %v2203_v4 = vpop.f32.mrf.mxu0 }
 0x236   : > { %v2378_v0 = vadd.f32 %v8492_v5, %v2339_v16  ;;  %v2337_v20 = vmul.f32 %v8487_v59, %v2203_v4 }
 0x237   : > { %v5145_v47 = vpop.f32.mrf.mxu0 }
 0x238   : > { %v2410_v46 = vmax.f32 %v2378_v0, 0.0  ;;  %v2376_v7 = vadd.f32 %v8492_v5, %v2337_v20  ;;  %v2340_v19 = vmul.f32 %v5145_v47, %v8487_v59 }
 0x239   : > { %v2206_v43 = vpop.f32.mrf.mxu0 }
 0x23a   : > { %2488 = vst.msk [vmem:[#allocation3 + $0x31] sm:$0xff] %vm1849_vm3, %v2410_v46  ;;  %v2408_v3 = vmax.f32 %v2376_v7, 0.0  ;;  %v2379_v31 = vadd.f32 %v8492_v5, %v2340_v19  ;;  %v2338_v38 = vmul.f32 %v8487_v59, %v2206_v43 }
 0x23b   : > { %v5148_v12 = vpop.f32.mrf.mxu0 }
 0x23c   : > { %2486 = vst.msk [vmem:[#allocation3 + $0x19] sm:$0xff] %vm1849_vm3, %v2408_v3  ;;  %v2411_v61 = vmax.f32 %v2379_v31, 0.0  ;;  %v2377_v44 = vadd.f32 %v8492_v5, %v2338_v38  ;;  %v2343_v34 = vmul.f32 %v5148_v12, %v8487_v59 }
 0x23d   : > { %v2219_v14 = vpop.f32.mrf.mxu0 }
 0x23e   : > { %2489 = vst.msk [vmem:[#allocation3 + $0x39] sm:$0xff] %vm1849_vm3, %v2411_v61  ;;  %v2409_v24 = vmax.f32 %v2377_v44, 0.0  ;;  %v2382_v53 = vadd.f32 %v8492_v5, %v2343_v34  ;;  %v2341_v54 = vmul.f32 %v8487_v59, %v2219_v14 }
 0x23f   : > { %v5149_v37 = vpop.f32.mrf.mxu0 }
 0x240   : > { %2487 = vst.msk [vmem:[#allocation3 + $0x21] sm:$0xff] %vm1849_vm3, %v2409_v24  ;;  %v2414_v63 = vmax.f32 %v2382_v53, 0.0  ;;  %v2380_v25 = vadd.f32 %v8492_v5, %v2341_v54  ;;  %v2344_v62 = vmul.f32 %v5149_v37, %v8487_v59 }
 0x241   : > { %v2222_v26 = vpop.f32.mrf.mxu0  ;;  %v2616_v9 = vld [vmem:[#allocation3 + $0x30] sm:$0xff] }
 0x242   : > { %2492 = vst.msk [vmem:[#allocation3 + $0x61] sm:$0xff] %vm1849_vm3, %v2414_v63  ;;  %v2412_v36 = vmax.f32 %v2380_v25, 0.0  ;;  %v2383_v32 = vadd.f32 %v8492_v5, %v2344_v62  ;;  %v2342_v6 = vmul.f32 %v8487_v59, %v2222_v26  ;;  %v2554_v55 = vld [vmem:[#allocation3 + $0x31] sm:$0xff] }
 0x243   : > { %v5152_v15 = vpop.f32.mrf.mxu0 }
 0x244   : > { %2490 = vst.msk [vmem:[#allocation3 + $0x49] sm:$0xff] %vm1849_vm3, %v2412_v36  ;;  %v2415_v18 = vmax.f32 %v2383_v32, 0.0  ;;  %v2381_v35 = vadd.f32 %v8492_v5, %v2342_v6  ;;  %v2347_v41 = vmul.f32 %v5152_v15, %v8487_v59 }
 0x245   : > { %v2235_v33 = vpop.f32.mrf.mxu0  ;;  %v2617_v45 = vld [vmem:[#allocation3 + $0x38] sm:$0xff] }
 0x246   : > { %v2555_v52 = vld [vmem:[#allocation3 + $0x39] sm:$0xff]  ;;  %2493 = vst.msk [vmem:[#allocation3 + $0x69] sm:$0xff] %vm1849_vm3, %v2415_v18  ;;  %v2413_v42 = vmax.f32 %v2381_v35, 0.0  ;;  %v2386_v11 = vadd.f32 %v8492_v5, %v2347_v41  ;;  %v2345_v23 = vmul.f32 %v8487_v59, %v2235_v33  ;;  %v5941_v2 = vpack.i.bf16 %v2617_v45, %v2616_v9 }
 0x247   : > { %v5153_v27 = vpop.f32.mrf.mxu0  ;;  %v5160_v30 = vpop.f32.mrf.mxu1  ;;  %v8520_v29 = vpack.i.bf16 %v2555_v52, %v2554_v55  ;;  %v2586_v58 = vld [vmem:[#allocation3 + $0x32] sm:$0xff]  ;;  %v2587_v51 = vld [vmem:[#allocation3 + $0x3a] sm:$0xff] }
 0x248   : > { %2491 = vst.msk [vmem:[#allocation3 + $0x51] sm:$0xff] %vm1849_vm3, %v2413_v42  ;;  %v2418_v28 = vmax.f32 %v2386_v11, 0.0  ;;  %v2384_v8 = vadd.f32 %v8492_v5, %v2345_v23  ;;  %v2348_v39 = vmul.f32 %v5153_v27, %v8487_v59  ;;  %v2355_v60 = vmul.f32 %v5160_v30, %v8487_v59  ;;  %5942 = vrot.lane.b32.xlu1 %v5941_v2, %s6592_s25 }
 0x249   : > { %5932 = vrot.lane.b32.xlu0 %v8520_v29, %s6588_s21  ;;  %v2238_v50 = vpop.f32.mrf.mxu0  ;;  %v2267_v21 = vpop.f32.mrf.mxu1  ;;  %v8534_v57 = vpack.i.bf16 %v2587_v51, %v2586_v58 }
 0x24a   : > { %2496 = vst.msk [vmem:[#allocation3 + $0x91] sm:$0xff] %vm1849_vm3, %v2418_v28  ;;  %v2416_v40 = vmax.f32 %v2384_v8, 0.0  ;;  %v2387_v17 = vadd.f32 %v8492_v5, %v2348_v39  ;;  %v2394_v49 = vadd.f32 %v8492_v5, %v2355_v60  ;;  %v2346_v22 = vmul.f32 %v8487_v59, %v2238_v50 }
 0x24b   : > { %v2353_v48 = vmul.f32 %v8487_v59, %v2267_v21  ;;  %v5156_v13 = vpop.f32.mrf.mxu0  ;;  %v5161_v10 = vpop.f32.mrf.mxu1 }
 0x24c   : > { %2494 = vst.msk [vmem:[#allocation3 + $0x79] sm:$0xff] %vm1849_vm3, %v2416_v40  ;;  %v2419_v56 = vmax.f32 %v2387_v17, 0.0  ;;  %v2426_v1 = vmax.f32 %v2394_v49, 0.0  ;;  %v2385_v16 = vadd.f32 %v8492_v5, %v2346_v22  ;;  %v2351_v4 = vmul.f32 %v5156_v13, %v8487_v59  ;;  %5947 = vrot.lane.b32.xlu1 %v8520_v29, %s6594_s15 }
 0x24d   : > { %v2392_v0 = vadd.f32 %v8492_v5, %v2353_v48  ;;  %v2356_v20 = vmul.f32 %v5161_v10, %v8487_v59  ;;  %5937 = vrot.lane.b32.xlu0 %v8534_v57, %s6590_s23  ;;  %v2251_v47 = vpop.f32.mrf.mxu0  ;;  %v2270_v46 = vpop.f32.mrf.mxu1 }
 0x24e   : > { %2497 = vst.msk [vmem:[#allocation3 + $0x99] sm:$0xff] %vm1849_vm3, %v2419_v56  ;;  %2504 = vst.msk [vmem:[#allocation3 + $0xf1] sm:$0xff] %vm1849_vm3, %v2426_v1  ;;  %v2417_v7 = vmax.f32 %v2385_v16, 0.0  ;;  %v2390_v19 = vadd.f32 %v8492_v5, %v2351_v4  ;;  %v2349_v43 = vmul.f32 %v8487_v59, %v2251_v47  ;;  %v2354_v3 = vmul.f32 %v8487_v59, %v2270_v46 }
 0x24f   : > { %v2424_v31 = vmax.f32 %v2392_v0, 0.0  ;;  %v2395_v38 = vadd.f32 %v8492_v5, %v2356_v20  ;;  %v5157_v12 = vpop.f32.mrf.mxu0  ;;  %v5164_v61 = vpop.f32.mrf.mxu1  ;;  %v2552_v0 = vld [vmem:[#allocation3 + $0x19] sm:$0xff] }
 0x250   : > { %2495 = vst.msk [vmem:[#allocation3 + $0x81] sm:$0xff] %vm1849_vm3, %v2417_v7  ;;  %v2422_v44 = vmax.f32 %v2390_v19, 0.0  ;;  %v2388_v34 = vadd.f32 %v8492_v5, %v2349_v43  ;;  %v2393_v14 = vadd.f32 %v8492_v5, %v2354_v3  ;;  %v2352_v24 = vmul.f32 %v5157_v12, %v8487_v59  ;;  %5952 = vrot.lane.b32.xlu1 %v8534_v57, %s6595_s20  ;;  %v8603_v3 = vld [vmem:[#allocation3 + $0x20] sm:$0xff] }
 0x251   : > { %2502 = vst.msk [vmem:[#allocation3 + $0xd9] sm:$0xff] %vm1849_vm3, %v2424_v31  ;;  %v2427_v53 = vmax.f32 %v2395_v38, 0.0  ;;  %v2359_v54 = vmul.f32 %v5164_v61, %v8487_v59  ;;  %5957 = vrot.lane.b32.xlu0 %v5941_v2, %s6596_s22  ;;  %v2254_v37 = vpop.f32.mrf.mxu0  ;;  %v2283_v63 = vpop.f32.mrf.mxu1  ;;  %v2584_v31 = vld [vmem:[#allocation3 + $0x1a] sm:$0xff]  ;;  %v2585_v38 = vld [vmem:[#allocation3 + $0x22] sm:$0xff] }
 0x252   : > { %2500 = vst.msk [vmem:[#allocation3 + $0xc1] sm:$0xff] %vm1849_vm3, %v2422_v44  ;;  %v2420_v25 = vmax.f32 %v2388_v34, 0.0  ;;  %v2425_v62 = vmax.f32 %v2393_v14, 0.0  ;;  %v2391_v26 = vadd.f32 %v8492_v5, %v2352_v24  ;;  %v2350_v36 = vmul.f32 %v8487_v59, %v2254_v37  ;;  %v8610_v14 = vld [vmem:[#allocation3 + $0x18] sm:$0xff] }
 0x253   : > { %2505 = vst.msk [vmem:[#allocation3 + $0xf9] sm:$0xff] %vm1849_vm3, %v2427_v53  ;;  %v2398_v32 = vadd.f32 %v8492_v5, %v2359_v54  ;;  %v2357_v6 = vmul.f32 %v8487_v59, %v2283_v63  ;;  %v5165_v15 = vpop.f32.mrf.mxu1  ;;  %v5996_v53 = vpack.i.bf16 %v8603_v3, %v8610_v14  ;;  %v5991_v54 = vpack.i.bf16 %v2585_v38, %v2584_v31  ;;  %v6568_v31 = vld [vmem:[%s9667_s4] sm:$0xff]  }
 0x254   : > { %2498 = vst.msk [vmem:[#allocation3 + $0xa9] sm:$0xff] %vm1849_vm3, %v2420_v25  ;;  %2503 = vst.msk [vmem:[#allocation3 + $0xe1] sm:$0xff] %vm1849_vm3, %v2425_v62  ;;  %v2423_v18 = vmax.f32 %v2391_v26, 0.0  ;;  %v2389_v35 = vadd.f32 %v8492_v5, %v2350_v36  ;;  %v2360_v41 = vmul.f32 %v5165_v15, %v8487_v59  ;;  %v4483_v38 = vld [vmem:[%s9670_s7] sm:$0x3] }
 0x255   : > { %v2430_v33 = vmax.f32 %v2398_v32, 0.0  ;;  %v2396_v9 = vadd.f32 %v8492_v5, %v2357_v6  ;;  %5962 = vrot.lane.b32.xlu0 %v8520_v29, %s6597_s24  ;;  %v2286_v45 = vpop.f32.mrf.mxu1  ;;  %v2632_v28 = vld [vmem:[#allocation3 + $0xf0] sm:$0xff]  ;;  %5259 = vmatprep.subr.msk.bf16.mxu0 %vm2165_vm4, %v4483_v38 }
 0x256   : > { %2501 = vst.msk [vmem:[#allocation3 + $0xc9] sm:$0xff] %vm1849_vm3, %v2423_v18  ;;  %v2421_v52 = vmax.f32 %v2389_v35, 0.0  ;;  %v2399_v42 = vadd.f32 %v8492_v5, %v2360_v41  ;;  %v2358_v11 = vmul.f32 %v8487_v59, %v2286_v45  ;;  %v2570_v51 = vld [vmem:[#allocation3 + $0xf1] sm:$0xff] }
 0x257   : > { %2508 = vst.msk [vmem:[#allocation3 + $0x121] sm:$0xff] %vm1849_vm3, %v2430_v33  ;;  %v2428_v23 = vmax.f32 %v2396_v9, 0.0  ;;  %v5168_v2 = vpop.f32.mrf.mxu1 }
 0x258   : > { %2499 = vst.msk [vmem:[#allocation3 + $0xb1] sm:$0xff] %vm1849_vm3, %v2421_v52  ;;  %v2431_v55 = vmax.f32 %v2399_v42, 0.0  ;;  %v2397_v27 = vadd.f32 %v8492_v5, %v2358_v11  ;;  %v2363_v30 = vmul.f32 %v5168_v2, %v8487_v59  ;;  %v2568_v15 = vld [vmem:[#allocation3 + $0xd9] sm:$0xff]  ;;  %v2621_v42 = vld [vmem:[#allocation3 + $0x68] sm:$0xff] }
 0x259   : > { %2506 = vst.msk [vmem:[#allocation3 + $0x109] sm:$0xff] %vm1849_vm3, %v2428_v23  ;;  %5967 = vrot.lane.b32.xlu0 %v8534_v57, %s6598_s26  ;;  %v2299_v29 = vpop.f32.mrf.mxu1  ;;  %v2553_v57 = vld [vmem:[#allocation3 + $0x21] sm:$0xff] }
 0x25a   : > { %2509 = vst.msk [vmem:[#allocation3 + $0x129] sm:$0xff] %vm1849_vm3, %v2431_v55  ;;  %v2429_v8 = vmax.f32 %v2397_v27, 0.0  ;;  %v2402_v39 = vadd.f32 %v8492_v5, %v2363_v30  ;;  %v2361_v60 = vmul.f32 %v8487_v59, %v2299_v29  ;;  %v2633_v58 = vld [vmem:[#allocation3 + $0xf8] sm:$0xff]  ;;  %v5986_v46 = vpack.i.bf16 %v2553_v57, %v2552_v0  ;;  %v2620_v11 = vld [vmem:[#allocation3 + $0x60] sm:$0xff]  ;;  %v2653_v55 = vld [vmem:[#allocation3 + $0x69] sm:$0xff] }
 0x25b   : > { %v2571_v50 = vld [vmem:[#allocation3 + $0xf9] sm:$0xff]  ;;  %v5169_v21 = vpop.f32.mrf.mxu1  ;;  %v8586_v40 = vpack.i.bf16 %v2633_v58, %v2632_v28  ;;  %v2569_v62 = vld [vmem:[#allocation3 + $0xe1] sm:$0xff]  ;;  %v6036_v2 = vpack.i.bf16 %v2621_v42, %v2620_v11  ;;  %v2685_v28 = vld [vmem:[#allocation3 + $0x6a] sm:$0xff] }
 0x25c   : > { %v8588_v17 = vpack.i.bf16 %v2571_v50, %v2570_v51  ;;  %2507 = vst.msk [vmem:[#allocation3 + $0x111] sm:$0xff] %vm1849_vm3, %v2429_v8  ;;  %v2434_v49 = vmax.f32 %v2402_v39, 0.0  ;;  %v2400_v22 = vadd.f32 %v8492_v5, %v2361_v60  ;;  %v2364_v48 = vmul.f32 %v5169_v21, %v8487_v59  ;;  %v2602_v13 = vld [vmem:[#allocation3 + $0xf2] sm:$0xff]  ;;  %v2603_v10 = vld [vmem:[#allocation3 + $0xfa] sm:$0xff]  ;;  %v2601_v9 = vld [vmem:[#allocation3 + $0xe2] sm:$0xff] }
 0x25d   : > { %5982 = vrot.lane.b32.xlu1 %v8586_v40, %s6592_s25  ;;  %v2302_v56 = vpop.f32.mrf.mxu1  ;;  %v5976_v47 = vpack.i.bf16 %v2603_v10, %v2602_v13  ;;  %v8622_v18 = vpack.i.bf16 %v2569_v62, %v2568_v15  ;;  %v2600_v33 = vld [vmem:[#allocation3 + $0xda] sm:$0xff]  ;;  %v2684_v29 = vld [vmem:[#allocation3 + $0x62] sm:$0xff]  ;;  %v6564_v8 = vld [vmem:[%s9667_s4 + $0x20] ss:$0 sps:$4 sm:$0xff]  }
 0x25e   : > { %5972 = vrot.lane.b32.xlu0 %v8588_v17, %s6588_s21  ;;  %2512 = vst.msk [vmem:[#allocation3 + $0x151] sm:$0xff] %vm1849_vm3, %v2434_v49  ;;  %v2432_v1 = vmax.f32 %v2400_v22, 0.0  ;;  %v2403_v16 = vadd.f32 %v8492_v5, %v2364_v48  ;;  %v2362_v4 = vmul.f32 %v8487_v59, %v2302_v56  ;;  %v8630_v52 = vpack.i.bf16 %v2601_v9, %v2600_v33  ;;  %v2652_v27 = vld [vmem:[#allocation3 + $0x61] sm:$0xff]  ;;  %v2557_v22 = vld [vmem:[#allocation3 + $0x51] sm:$0xff]  ;;  %v2556_v13 = vld [vmem:[#allocation3 + $0x49] sm:$0xff] }
 0x25f   : > { %v5172_v20 = vpop.f32.mrf.mxu1  ;;  %v8641_v30 = vpack.i.bf16 %v2653_v55, %v2652_v27  ;;  %v8650_v39 = vpack.i.bf16 %v2685_v28, %v2684_v29  ;;  %5258 = vmatprep.subr.msk.bf16.mxu1 %vm4192_vm14, %v6564_v8  ;;  %v4194_v58 = vsel %vm4192_vm14, %v6564_v8, 0  ;;  %v8658_v51 = vld [vmem:[#allocation3 + $0x120] sm:$0xff]  ;;  %v6565_v50 = vld [vmem:[%s9667_s4 + $0x18] sm:$0xff]   ;;  %v6071_v56 = vpack.i.bf16 %v2557_v22, %v2556_v13  ;;  %v2589_v0 = vld [vmem:[#allocation3 + $0x52] sm:$0xff] }
 0x260   : > { %2510 = vst.msk [vmem:[#allocation3 + $0x139] sm:$0xff] %vm1849_vm3, %v2432_v1  ;;  %v2435_v7 = vmax.f32 %v2403_v16, 0.0  ;;  %v2401_v19 = vadd.f32 %v8492_v5, %v2362_v4  ;;  %v2367_v43 = vmul.f32 %v5172_v20, %v8487_v59  ;;  %5175 = vmatpush3.bf16.msra.mxu1 %v4194_v58  ;;  %v2574_v48 = vld [vmem:[#allocation3 + $0x121] sm:$0xff]  ;;  %v2588_v1 = vld [vmem:[#allocation3 + $0x4a] sm:$0xff]  ;;  %v6567_v20 = vld [vmem:[%s9667_s4 + $0x8] sm:$0xff]  }
 0x261   : > { %5987 = vrot.lane.b32.xlu1 %v5986_v46, %s6588_s21  ;;  %v2315_v12 = vpop.f32.mrf.mxu1  ;;  %v8652_v60 = vld [vmem:[#allocation3 + $0x128] sm:$0xff]  ;;  %5176 = vmatprep.subr.bf16.mxu1 %v6565_v50  ;;  %v6566_v10 = vld [vmem:[%s9667_s4 + $0x10] sm:$0xff]   ;;  %v8717_v9 = vld [vmem:[#allocation3 + $0x98] sm:$0xff] }
 0x262   : > { %5977 = vrot.lane.b32.xlu0 %v5976_v47, %s6590_s23  ;;  %2513 = vst.msk [vmem:[#allocation3 + $0x159] sm:$0xff] %vm1849_vm3, %v2435_v7  ;;  %v2433_v61 = vmax.f32 %v2401_v19, 0.0  ;;  %v2406_v44 = vadd.f32 %v8492_v5, %v2367_v43  ;;  %v2365_v34 = vmul.f32 %v8487_v59, %v2315_v12  ;;  %v6066_v21 = vpack.i.bf16 %v8652_v60, %v8658_v51  ;;  %v2575_v49 = vld [vmem:[#allocation3 + $0x129] sm:$0xff]  ;;  %v2563_v15 = vld [vmem:[#allocation3 + $0x99] sm:$0xff] }
 0x263   : > { %v5173_v24 = vpop.f32.mrf.mxu1  ;;  %v6056_v57 = vpack.i.bf16 %v2575_v49, %v2574_v48  ;;  %v2606_v16 = vld [vmem:[#allocation3 + $0x122] sm:$0xff]  ;;  %v2607_v4 = vld [vmem:[#allocation3 + $0x12a] sm:$0xff]  ;;  %v4533_v12 = vsel %vm2165_vm4, %v4483_v38, 0  ;;  %v2560_v49 = vld [vmem:[#allocation3 + $0x79] sm:$0xff]  ;;  %vm4058_vm4 = vcmask 523264  }
 0x264   : > { %2511 = vst.msk [vmem:[#allocation3 + $0x141] sm:$0xff] %vm1849_vm3, %v2433_v61  ;;  %v2438_v37 = vmax.f32 %v2406_v44, 0.0  ;;  %v2404_v63 = vadd.f32 %v8492_v5, %v2365_v34  ;;  %v2368_v25 = vmul.f32 %v5173_v24, %v8487_v59  ;;  %5177 = vmatpush3.bf16.msra.mxu1 %v6565_v50  ;;  %v6061_v47 = vpack.i.bf16 %v2607_v4, %v2606_v16  ;;  %v8675_v7 = vld [vmem:[#allocation3 + $0x50] sm:$0xff]  ;;  %v8679_v19 = vld [vmem:[#allocation3 + $0x48] sm:$0xff]  ;;  %v2623_v13 = vld [vmem:[#allocation3 + $0x80] sm:$0xff] }
 0x265   : > { %5992 = vrot.lane.b32.xlu1 %v5991_v54, %s6590_s23  ;;  %v2318_v26 = vpop.f32.mrf.mxu1  ;;  %5178 = vmatprep.subr.bf16.mxu1 %v6566_v10  ;;  %v6081_v43 = vpack.i.bf16 %v8675_v7, %v8679_v19  ;;  %v4435_v61 = vld [vmem:[#allocation2 + $0x19] sm:$0xff]  ;;  %v4436_v44 = vld [vmem:[#allocation2 + $0x21] sm:$0xff]  ;;  %v4437_v34 = vld [vmem:[#allocation2 + $0x31] sm:$0xff] }
 0x266   : > { %5997 = vrot.lane.b32.xlu0 %v5996_v53, %s6592_s25  ;;  %2516 = vst.msk [vmem:[#allocation3 + $0x181] sm:$0xff] %vm1849_vm3, %v2438_v37  ;;  %v2436_v36 = vmax.f32 %v2404_v63, 0.0  ;;  %v2407_v32 = vadd.f32 %v8492_v5, %v2368_v25  ;;  %v2366_v6 = vmul.f32 %v8487_v59, %v2318_v26  ;;  %v2631_v59 = vld [vmem:[#allocation3 + $0xe0] sm:$0xff]  ;;  %5217 = vmatpush3.bf16.msra.mxu0 %v4533_v12  ;;  %v4438_v53 = vld [vmem:[#allocation2 + $0x39] sm:$0xff]  ;;  %v2573_v63 = vld [vmem:[#allocation3 + $0x111] sm:$0xff] }
 0x267   : > { %v4467_v24 = vpack.c.bf16 %v4436_v44, %v4435_v61  ;;  %v8697_v37 = vld [vmem:[#allocation3 + $0x110] sm:$0xff]  ;;  %v8701_v25 = vld [vmem:[#allocation3 + $0x108] sm:$0xff]  ;;  %v8756_v61 = vpop.permute.xlu0 %5922 }
 0x268   : > { %2514 = vst.msk [vmem:[#allocation3 + $0x169] sm:$0xff] %vm1849_vm3, %v2436_v36  ;;  %v2439_v35 = vmax.f32 %v2407_v32, 0.0  ;;  %v2405_v41 = vadd.f32 %v8492_v5, %v2366_v6  ;;  %v2630_v5 = vld [vmem:[#allocation3 + $0xd8] sm:$0xff]  ;;  %5179 = vmatpush3.bf16.msra.mxu1 %v6566_v10  ;;  %v2572_v62 = vld [vmem:[#allocation3 + $0x109] sm:$0xff]  ;;  %v8705_v26 = vpack.i.bf16 %v8697_v37, %v8701_v25 }
 0x269   : > { %6012 = vrot.lane.b32.xlu1 %v8622_v18, %s6588_s21  ;;  %v8636_v23 = vpack.i.bf16 %v2631_v59, %v2630_v5  ;;  %5180 = vmatprep.subr.bf16.mxu1 %v6567_v20  ;;  %v8707_v36 = vpack.i.bf16 %v2573_v63, %v2572_v62  ;;  %v2604_v32 = vld [vmem:[#allocation3 + $0x10a] sm:$0xff]  ;;  %v2605_v6 = vld [vmem:[#allocation3 + $0x112] sm:$0xff]  ;;  %v2595_v59 = vld [vmem:[#allocation3 + $0x9a] sm:$0xff] }
 0x26a   : > { %6002 = vrot.lane.b32.xlu0 %v5986_v46, %s6594_s15  ;;  %2517 = vst.msk [vmem:[#allocation3 + $0x189] sm:$0xff] %vm1849_vm3, %v2439_v35  ;;  %v2437_v45 = vmax.f32 %v2405_v41, 0.0  ;;  %v6076_v46 = vpack.i.bf16 %v2589_v0, %v2588_v1  ;;  %5218 = vmatprep.mubr.msk.bf16.mxu0 %vm361_vm0, %v4467_v24  ;;  %v2562_v35 = vld [vmem:[#allocation3 + $0x91] sm:$0xff]  ;;  %v8713_v41 = vpack.i.bf16 %v2605_v6, %v2604_v32  ;;  %v2579_v55 = vld [vmem:[#allocation3 + $0x159] sm:$0xff]  ;;  %v2598_v44 = vld [vmem:[#allocation3 + $0xc2] sm:$0xff] }
 0x26b   : > { %v8715_v33 = vpack.i.bf16 %v2563_v15, %v2562_v35  ;;  %v8723_v42 = vld [vmem:[#allocation3 + $0x90] sm:$0xff]  ;;  %v2611_v50 = vld [vmem:[#allocation3 + $0x15a] sm:$0xff]  ;;  %v2609_v24 = vld [vmem:[#allocation3 + $0x142] sm:$0xff]  ;;  %v8770_v6 = vpop.permute.xlu0 %5927 }
 0x26c   : > { %2515 = vst.msk [vmem:[#allocation3 + $0x171] sm:$0xff] %vm1849_vm3, %v2437_v45  ;;  %5181 = vmatpush3.bf16.msra.mxu1 %v6567_v20  ;;  %v2594_v45 = vld [vmem:[#allocation3 + $0x92] sm:$0xff]  ;;  %v8727_v5 = vpack.i.bf16 %v8717_v9, %v8723_v42  ;;  %v2592_v10 = vld [vmem:[#allocation3 + $0x7a] sm:$0xff]  ;;  %v2629_v62 = vld [vmem:[#allocation3 + $0xc8] sm:$0xff] }
 0x26d   : > { %6017 = vrot.lane.b32.xlu1 %v8630_v52, %s6590_s23  ;;  %5182 = vmatprep.subr.bf16.mxu1 %v6568_v31  ;;  %v8729_v11 = vpack.i.bf16 %v2595_v59, %v2594_v45  ;;  %v8737_v27 = vld [vmem:[#allocation3 + $0x150] sm:$0xff]  ;;  %v2639_v4 = vld [vmem:[#allocation3 + $0x140] sm:$0xff]  ;;  %v2638_v0 = vld [vmem:[#allocation3 + $0x138] sm:$0xff] }
 0x26e   : > { %6007 = vrot.lane.b32.xlu0 %v5991_v54, %s6595_s20  ;;  %v4468_v54 = vpack.c.bf16 %v4438_v53, %v4437_v34  ;;  %v2578_v29 = vld [vmem:[#allocation3 + $0x151] sm:$0xff]  ;;  %v6186_v20 = vpack.i.bf16 %v2639_v4, %v2638_v0  ;;  %v2608_v34 = vld [vmem:[#allocation3 + $0x13a] sm:$0xff]  ;;  %v2626_v35 = vld [vmem:[#allocation3 + $0xa8] sm:$0xff] }
 0x26f   : > { %v6141_v8 = vpack.i.bf16 %v2579_v55, %v2578_v29  ;;  %v2610_v58 = vld [vmem:[#allocation3 + $0x152] sm:$0xff]  ;;  %v2599_v53 = vld [vmem:[#allocation3 + $0xca] sm:$0xff]  ;;  %v2628_v15 = vld [vmem:[#allocation3 + $0xc0] sm:$0xff] }
 0x270   : > { %5183 = vmatpush3.bf16.msra.mxu1 %v6568_v31  ;;  %5219 = vmatmul.mubr.msk.bf16.vlgmr.msra.gmra.mxu0 %vm361_vm0, %v4468_v54  ;;  %v6146_v22 = vpack.i.bf16 %v2611_v50, %v2610_v58  ;;  %v2566_v31 = vld [vmem:[#allocation3 + $0xc1] sm:$0xff]  ;;  %v8762_v54 = vpack.i.bf16 %v2609_v24, %v2608_v34  ;;  %v8764_v63 = vpack.i.bf16 %v2599_v53, %v2598_v44  ;;  %v2627_v32 = vld [vmem:[#allocation3 + $0xb0] sm:$0xff]  ;;  %v4442_v44 = vld [vmem:[#allocation2 + $0x69] sm:$0xff] }
 0x271   : > { %6037 = vrot.lane.b32.xlu1 %v6036_v2, %s6592_s25  ;;  %v8772_v45 = vpack.i.bf16 %v2629_v62, %v2628_v15  ;;  %v8774_v59 = vpack.i.bf16 %v2627_v32, %v2626_v35  ;;  %v2565_v55 = vld [vmem:[#allocation3 + $0xb1] sm:$0xff]  ;;  %v2564_v29 = vld [vmem:[#allocation3 + $0xa9] sm:$0xff]  ;;  %v5925_v32 = vunpack.i.h.bf16 %v8756_v61  ;;  %v5924_v15 = vunpack.i.l.bf16 %v8756_v61 }
 0x272   : > { %6022 = vrot.lane.b32.xlu0 %v8636_v23, %s6592_s25  ;;  %v2596_v58 = vld [vmem:[#allocation3 + $0xaa] sm:$0xff]  ;;  %v2597_v50 = vld [vmem:[#allocation3 + $0xb2] sm:$0xff] }
 0x273   : > { %v2612_v4 = vld [vmem:[#allocation3 + $0x16a] sm:$0xff]  ;;  %v2613_v0 = vld [vmem:[#allocation3 + $0x172] sm:$0xff] }
 0x275   : > { %6042 = vrot.lane.b32.xlu1 %v8641_v30, %s6594_s15 }
 0x276   : > { %6027 = vrot.lane.b32.xlu0 %v8641_v30, %s6588_s21 }
 0x279   : > { %6047 = vrot.lane.b32.xlu1 %v8650_v39, %s6595_s20 }
 0x27a   : > { %6032 = vrot.lane.b32.xlu0 %v8650_v39, %s6590_s23 }
 0x27d   : > { %6067 = vrot.lane.b32.xlu1 %v6066_v21, %s6592_s25  ;;  %v2561_v21 = vld [vmem:[#allocation3 + $0x81] sm:$0xff] }
 0x27e   : > { %6052 = vrot.lane.b32.xlu0 %v6036_v2, %s6596_s22  ;;  %v8731_v2 = vld [vmem:[#allocation3 + $0x158] sm:$0xff]  ;;  %v6156_v48 = vpack.i.bf16 %v2561_v21, %v2560_v49 }
 0x27f   : > { %v6151_v28 = vpack.i.bf16 %v8731_v2, %v8737_v27 }
 0x281   : > { %6072 = vrot.lane.b32.xlu1 %v6071_v56, %s6588_s21 }
 0x282   : > { %6057 = vrot.lane.b32.xlu0 %v6056_v57, %s6588_s21  ;;  %v2593_v57 = vld [vmem:[#allocation3 + $0x82] sm:$0xff] }
 0x283   : > { %v8745_v16 = vpack.i.bf16 %v2593_v57, %v2592_v10  ;;  %v2581_v10 = vld [vmem:[#allocation3 + $0x171] sm:$0xff] }
 0x285   : > { %6077 = vrot.lane.b32.xlu1 %v6076_v46, %s6590_s23 }
 0x286   : > { %6062 = vrot.lane.b32.xlu0 %v6061_v47, %s6590_s23  ;;  %v2577_v47 = vld [vmem:[#allocation3 + $0x141] sm:$0xff] }
 0x289   : > { %6087 = vrot.lane.b32.xlu1 %v6081_v43, %s6596_s22 }
 0x28a   : > { %6082 = vrot.lane.b32.xlu0 %v6081_v43, %s6592_s25  ;;  %v2576_v43 = vld [vmem:[#allocation3 + $0x139] sm:$0xff] }
 0x28b   : > { %v8752_v38 = vpack.i.bf16 %v2577_v47, %v2576_v43  ;;  %v6241_v47 = vpack.i.bf16 %v2613_v0, %v2612_v4  ;;  %v4441_v43 = vld [vmem:[#allocation2 + $0x61] sm:$0xff] }
 0x28c   : > { %v4470_v34 = vpack.c.bf16 %v4442_v44, %v4441_v43 }
 0x28d   : > { %6092 = vrot.lane.b32.xlu1 %v6071_v56, %s6597_s24 }
 0x28e   : > { %6102 = vrot.lane.b32.xlu0 %v6071_v56, %s6594_s15  ;;  %v2622_v56 = vld [vmem:[#allocation3 + $0x78] sm:$0xff] }
 0x28f   : > { %v6166_v1 = vpack.i.bf16 %v2623_v13, %v2622_v56 }
 0x291   : > { %6097 = vrot.lane.b32.xlu1 %v6076_v46, %s6598_s26 }
 0x292   : > { %6107 = vrot.lane.b32.xlu0 %v6076_v46, %s6595_s20  ;;  %v2567_v46 = vld [vmem:[#allocation3 + $0xc9] sm:$0xff] }
 0x293   : > { %v8754_v12 = vpack.i.bf16 %v2567_v46, %v2566_v31  ;;  %v4439_v46 = vld [vmem:[#allocation2 + $0x49] sm:$0xff] }
 0x295   : > { %6112 = vrot.lane.b32.xlu1 %v8707_v36, %s6588_s21 }
 0x296   : > { %6122 = vrot.lane.b32.xlu0 %v8705_v26, %s6592_s25 }
 0x299   : > { %6117 = vrot.lane.b32.xlu1 %v8713_v41, %s6590_s23 }
 0x29a   : > { %6127 = vrot.lane.b32.xlu0 %v8715_v33, %s6588_s21 }
 0x29d   : > { %6137 = vrot.lane.b32.xlu1 %v8727_v5, %s6592_s25 }
 0x29e   : > { %6132 = vrot.lane.b32.xlu0 %v8729_v11, %s6590_s23 }
 0x2a1   : > { %6152 = vrot.lane.b32.xlu1 %v6151_v28, %s6592_s25 }
 0x2a2   : > { %6142 = vrot.lane.b32.xlu0 %v6141_v8, %s6588_s21  ;;  %v8782_v8 = vpack.i.bf16 %v2565_v55, %v2564_v29  ;;  %v2518_v29 = vld [vmem:[#allocation3] sm:$0xff] }
 0x2a5   : > { %6157 = vrot.lane.b32.xlu1 %v6156_v48, %s6588_s21 }
 0x2a6   : > { %6147 = vrot.lane.b32.xlu0 %v6146_v22, %s6590_s23  ;;  %v8792_v22 = vpack.i.bf16 %v2597_v50, %v2596_v58  ;;  %v2519_v58 = vld [vmem:[#allocation3 + $0x8] sm:$0xff]  ;;  %v5929_v50 = vunpack.i.l.bf16 %v8770_v6 }
 0x2a9   : > { %6162 = vrot.lane.b32.xlu1 %v8745_v16, %s6590_s23 }
 0x2aa   : > { %6167 = vrot.lane.b32.xlu0 %v6166_v1, %s6592_s25 }
 0x2ad   : > { %6172 = vrot.lane.b32.xlu1 %v6166_v1, %s6596_s22 }
 0x2ae   : > { %6187 = vrot.lane.b32.xlu0 %v6186_v20, %s6592_s25 }
 0x2b1   : > { %6177 = vrot.lane.b32.xlu1 %v8752_v38, %s6588_s21 }
 0x2b2   : > { %6192 = vrot.lane.b32.xlu0 %v8754_v12, %s6588_s21 }
 0x2b5   : > { %6182 = vrot.lane.b32.xlu1 %v8762_v54, %s6590_s23 }
 0x2b6   : > { %6197 = vrot.lane.b32.xlu0 %v8764_v63, %s6590_s23 }
 0x2b9   : > { %6202 = vrot.lane.b32.xlu1 %v8772_v45, %s6592_s25 }
 0x2ba   : > { %6217 = vrot.lane.b32.xlu0 %v8774_v59, %s6592_s25  ;;  %v8788_v21 = vpop.permute.xlu1 %5942 }
 0x2bb   : > { %v8780_v28 = vpop.permute.xlu0 %5932 }
 0x2bd   : > { %6207 = vrot.lane.b32.xlu1 %v8782_v8, %s6588_s21 }
 0x2be   : > { %6222 = vrot.lane.b32.xlu0 %v8641_v30, %s6597_s24  ;;  %v8800_v57 = vpop.permute.xlu1 %5947  ;;  %v2580_v30 = vld [vmem:[#allocation3 + $0x169] sm:$0xff] }
 0x2bf   : > { %v8790_v49 = vpop.permute.xlu0 %5937  ;;  %v8806_v1 = vpack.i.bf16 %v2581_v10, %v2580_v30  ;;  %v3831_v10 = vsel %vm1849_vm3, %v2518_v29, %v5924_v15  ;;  %v4445_v15 = vld [vmem:[#allocation2 + $0x91] sm:$0xff] }
 0x2c1   : > { %6212 = vrot.lane.b32.xlu1 %v8792_v22, %s6590_s23 }
 0x2c2   : > { %6232 = vrot.lane.b32.xlu0 %v8650_v39, %s6598_s26  ;;  %v8812_v39 = vpop.permute.xlu1 %5952 }
 0x2c3   : > { %v8798_v13 = vpop.permute.xlu0 %5957 }
 0x2c5   : > { %6227 = vrot.lane.b32.xlu1 %v6156_v48, %s6597_s24 }
 0x2c6   : > { %6252 = vrot.lane.b32.xlu0 %v6156_v48, %s6594_s15  ;;  %v4440_v48 = vld [vmem:[#allocation2 + $0x51] sm:$0xff] }
 0x2c7   : > { %v8804_v56 = vpop.permute.xlu0 %5962  ;;  %v4469_v31 = vpack.c.bf16 %v4440_v48, %v4439_v46  ;;  %v5960_v48 = vunpack.i.h.bf16 %v8798_v13 }
 0x2c9   : > { %6237 = vrot.lane.b32.xlu1 %v8806_v1, %s6588_s21  ;;  %5222 = vmatprep.mubr.msk.bf16.mxu0 %vm361_vm0, %v4469_v31 }
 0x2ca   : > { %6262 = vrot.lane.b32.xlu0 %v8745_v16, %s6595_s20  ;;  %5223 = vmatmul.mubr.msk.bf16.gmra.mxu0 %vm361_vm0, %v4470_v34  ;;  %v4443_v34 = vld [vmem:[#allocation2 + $0x79] sm:$0xff] }
 0x2cb   : > { %v8814_v20 = vpop.permute.xlu0 %5967 }
 0x2cd   : > { %6242 = vrot.lane.b32.xlu1 %v6241_v47, %s6590_s23 }
 0x2ce   : > { %6272 = vrot.lane.b32.xlu0 %v8727_v5, %s6596_s22 }
 0x2cf   : > { %v8820_v24 = vpop.permute.xlu1 %5982 }
 0x2d0   : > { %v8822_v53 = vpop.permute.xlu0 %5972 }
 0x2d1   : > { %6247 = vrot.lane.b32.xlu1 %v8745_v16, %s6598_s26  ;;  %v5930_v16 = vunpack.i.h.bf16 %v8770_v6 }
 0x2d2   : > { %6282 = vrot.lane.b32.xlu0 %v8715_v33, %s6597_s24 }
 0x2d3   : > { %v8831_v5 = vpop.permute.xlu1 %5987 }
 0x2d4   : > { %v8829_v62 = vpop.permute.xlu0 %5977 }
 0x2d5   : > { %6257 = vrot.lane.b32.xlu1 %v8715_v33, %s6594_s15  ;;  %v3832_v33 = vsel %vm1849_vm3, %v2519_v58, %v5925_v32  ;;  %v4444_v32 = vld [vmem:[#allocation2 + $0x81] sm:$0xff] }
 0x2d6   : > { %6292 = vrot.lane.b32.xlu0 %v8729_v11, %s6598_s26  ;;  %v3864_v6 = vsel %vm1915_vm6, %v3832_v33, %v5930_v16  ;;  %v5959_v16 = vunpack.i.l.bf16 %v8798_v13  ;;  %v5964_v13 = vunpack.i.l.bf16 %v8804_v56 }
 0x2d7   : > { %v8839_v55 = vpop.permute.xlu1 %5992 }
 0x2d8   : > { %v5998_v35 = vpop.permute.xlu0 %5997 }
 0x2d9   : > { %6267 = vrot.lane.b32.xlu1 %v8729_v11, %s6595_s20  ;;  %v5999_v61 = vunpack.i.l.bf16 %v5998_v35  ;;  %v6000_v0 = vunpack.i.h.bf16 %v5998_v35  ;;  %v3863_v11 = vsel %vm1915_vm6, %v3831_v10, %v5929_v50  ;;  %v4446_v50 = vld [vmem:[#allocation2 + $0x99] sm:$0xff]  ;;  %v4471_v10 = vpack.c.bf16 %v4444_v32, %v4443_v34 }
 0x2da   : > { %6302 = vrot.lane.b32.xlu0 %v8782_v8, %s6594_s15 }
 0x2db   : > { %v8849_v4 = vpop.permute.xlu1 %6012  ;;  %v3895_v43 = vsel %vm1981_vm8, %v3863_v11, %v5999_v61  ;;  %v3896_v35 = vsel %vm1981_vm8, %v3864_v6, %v6000_v0  ;;  %v4472_v61 = vpack.c.bf16 %v4446_v50, %v4445_v15  ;;  %5226 = vmatprep.mubr.msk.bf16.mxu0 %vm361_vm0, %v4471_v10  ;;  %v4447_v50 = vld [vmem:[#allocation2 + $0xa9] sm:$0xff]  ;;  %v5990_v10 = vunpack.i.h.bf16 %v8831_v5 }
 0x2dc   : > { %v6003_v30 = vpop.permute.xlu0 %6002 }
 0x2dd   : > { %v6004_v47 = vunpack.i.l.bf16 %v6003_v30  ;;  %v6005_v46 = vunpack.i.h.bf16 %v6003_v30  ;;  %6277 = vrot.lane.b32.xlu1 %v8774_v59, %s6596_s22  ;;  %5227 = vmatmul.mubr.msk.bf16.gmra.mxu0 %vm361_vm0, %v4472_v61  ;;  %v4450_v61 = vld [vmem:[#allocation2 + $0xc9] sm:$0xff] }
 0x2de   : > { %6312 = vrot.lane.b32.xlu0 %v8792_v22, %s6595_s20 }
 0x2df   : > { %v8859_v44 = vpop.permute.xlu1 %6017  ;;  %v3927_v59 = vsel %vm2047_vm10, %v3895_v43, %v6004_v47  ;;  %v3928_v33 = vsel %vm2047_vm10, %v3896_v35, %v6005_v46  ;;  %v5965_v47 = vunpack.i.h.bf16 %v8804_v56  ;;  %v5969_v43 = vunpack.i.l.bf16 %v8814_v20 }
 0x2e0   : > { %v6008_v31 = vpop.permute.xlu0 %6007 }
 0x2e1   : > { %v6010_v29 = vunpack.i.h.bf16 %v6008_v31  ;;  %v6009_v58 = vunpack.i.l.bf16 %v6008_v31  ;;  %6287 = vrot.lane.b32.xlu1 %v8782_v8, %s6597_s24  ;;  %v5970_v8 = vunpack.i.h.bf16 %v8814_v20 }
 0x2e2   : > { %6322 = vrot.lane.b32.xlu0 %v8772_v45, %s6596_s22 }
 0x2e3   : > { %v3960_v30 = vsel %vm3959_vm15, %v3927_v59, %v6009_v58  ;;  %v3961_v0 = vsel %vm3959_vm15, %v3928_v33, %v6010_v29  ;;  %v8877_v6 = vpop.permute.xlu1 %6037  ;;  %v4449_v33 = vld [vmem:[#allocation2 + $0xc1] sm:$0xff] }
 0x2e4   : > { %v3993_v46 = vsel %vm3992_vm1, %v3960_v30, %v5959_v16  ;;  %v3994_v11 = vsel %vm3992_vm1, %v3961_v0, %v5960_v48  ;;  %v8875_v45 = vpop.permute.xlu0 %6022  ;;  %v4448_v16 = vld [vmem:[#allocation2 + $0xb1] sm:$0xff] }
 0x2e5   : > { %6297 = vrot.lane.b32.xlu1 %v8792_v22, %s6598_s26  ;;  %v4026_v56 = vsel %vm4025_vm2, %v3993_v46, %v5964_v13  ;;  %v4027_v48 = vsel %vm4025_vm2, %v3994_v11, %v5965_v47  ;;  %v4473_v47 = vpack.c.bf16 %v4448_v16, %v4447_v50  ;;  %v4474_v13 = vpack.c.bf16 %v4450_v61, %v4449_v33  ;;  %v2664_v33 = vld [vmem:[#allocation3 + $0xf1] sm:$0xff] }
 0x2e6   : > { %6332 = vrot.lane.b32.xlu0 %v8754_v12, %s6597_s24  ;;  %v4059_v31 = vsel %vm4058_vm4, %v4026_v56, %v5969_v43  ;;  %v4060_v34 = vsel %vm4058_vm4, %v4027_v48, %v5970_v8  ;;  %v5994_v46 = vunpack.i.l.bf16 %v8839_v55  ;;  %v2791_v56 = vld [vmem:[#allocation3 + $0xf2] sm:$0xff]  ;;  %v2792_v48 = vld [vmem:[#allocation3 + $0xfa] sm:$0xff] }
 0x2e7   : > { %v8891_v32 = vpop.permute.xlu1 %6042  ;;  %v4091_v15 = vpack.c.bf16 %v4060_v34, %v4059_v31  ;;  %5230 = vmatprep.mubr.msk.bf16.mxu0 %vm361_vm0, %v4473_v47  ;;  %v2665_v34 = vld [vmem:[#allocation3 + $0xf9] sm:$0xff]  ;;  %v6391_v16 = vpack.i.bf16 %v2792_v48, %v2791_v56 }
 0x2e8   : > { %v8893_v20 = vpop.permute.xlu0 %6027  ;;  %5231 = vmatmul.mubr.msk.bf16.gmra.mxu0 %vm361_vm0, %v4474_v13 }
 0x2e9   : > { %5184 = vmatprep.mubr.msk.bf16.mxu1 %vm4143_vm5, %v4091_v15  ;;  %6307 = vrot.lane.b32.xlu1 %v8754_v12, %s6594_s15 }
 0x2ea   : > { %6342 = vrot.lane.b32.xlu0 %v8764_v63, %s6598_s26 }
 0x2eb   : > { %v8900_v22 = vpop.permute.xlu1 %6047 }
 0x2ec   : > { %v8902_v35 = vpop.permute.xlu0 %6032 }
 0x2ed   : > { %6317 = vrot.lane.b32.xlu1 %v8764_v63, %s6595_s20  ;;  %v5989_v63 = vunpack.i.l.bf16 %v8831_v5 }
 0x2ee   : > { %6352 = vrot.lane.b32.xlu0 %v8622_v18, %s6594_s15 }
 0x2ef   : > { %v8908_v59 = vpop.permute.xlu1 %6067 }
 0x2f0   : > { %v8910_v29 = vpop.permute.xlu0 %6052 }
 0x2f1   : > { %6327 = vrot.lane.b32.xlu1 %v8636_v23, %s6596_s22  ;;  %v5995_v23 = vunpack.i.h.bf16 %v8839_v55  ;;  %v3834_v55 = vsel %vm1849_vm3, %v8603_v3, %v5990_v10  ;;  %v5945_v3 = vunpack.i.h.bf16 %v8788_v21  ;;  %v6356_v10 = vpack.i.bf16 %v2665_v34, %v2664_v33 }
 0x2f2   : > { %6362 = vrot.lane.b32.xlu0 %v8630_v52, %s6595_s20 }
 0x2f3   : > { %v8916_v58 = vpop.permute.xlu1 %6072 }
 0x2f4   : > { %v6058_v12 = vpop.permute.xlu0 %6057 }
 0x2f5   : > { %v6060_v30 = vunpack.i.h.bf16 %v6058_v12  ;;  %v6059_v0 = vunpack.i.l.bf16 %v6058_v12  ;;  %6337 = vrot.lane.b32.xlu1 %v8622_v18, %s6597_s24  ;;  %v3866_v12 = vsel %vm1915_vm6, %v3834_v55, %v5995_v23 }
 0x2f6   : > { %6372 = vrot.lane.b32.xlu0 %v8586_v40, %s6596_s22  ;;  %v3833_v40 = vsel %vm1849_vm3, %v8610_v14, %v5989_v63  ;;  %v3898_v61 = vsel %vm1981_vm8, %v3866_v12, %v5945_v3 }
 0x2f7   : > { %v8926_v8 = vpop.permute.xlu1 %6077  ;;  %v3856_v18 = vsel %vm1849_vm3, %v8652_v60, %v6060_v30  ;;  %v3855_v31 = vsel %vm1849_vm3, %v8658_v51, %v6059_v0  ;;  %v3865_v15 = vsel %vm1915_vm6, %v3833_v40, %v5994_v46  ;;  %v5944_v60 = vunpack.i.l.bf16 %v8788_v21 }
 0x2f8   : > { %v6063_v11 = vpop.permute.xlu0 %6062  ;;  %v5950_v30 = vunpack.i.h.bf16 %v8800_v57 }
 0x2f9   : > { %v6065_v5 = vunpack.i.h.bf16 %v6063_v11  ;;  %v6064_v43 = vunpack.i.l.bf16 %v6063_v11  ;;  %6347 = vrot.lane.b32.xlu1 %v8630_v52, %s6598_s26  ;;  %v3897_v63 = vsel %vm1981_vm8, %v3865_v15, %v5944_v60  ;;  %v5949_v52 = vunpack.i.l.bf16 %v8800_v57  ;;  %v2732_v15 = vld [vmem:[#allocation3 + $0x128] sm:$0xff] }
 0x2fa   : > { %6382 = vrot.lane.b32.xlu0 %v8588_v17, %s6597_s24  ;;  %v3930_v13 = vsel %vm2047_vm10, %v3898_v61, %v5950_v30  ;;  %v5955_v11 = vunpack.i.h.bf16 %v8812_v39  ;;  %v4451_v30 = vld [vmem:[#allocation2 + $0xd9] sm:$0xff] }
 0x2fb   : > { %v8943_v50 = vsel %vm1915_vm6, %v3855_v31, %v6064_v43  ;;  %v8946_v14 = vsel %vm1915_vm6, %v3856_v18, %v6065_v5  ;;  %v6088_v17 = vpop.permute.xlu1 %6087  ;;  %v3929_v47 = vsel %vm2047_vm10, %v3897_v63, %v5949_v52  ;;  %v5954_v5 = vunpack.i.l.bf16 %v8812_v39  ;;  %v4452_v52 = vld [vmem:[#allocation2 + $0xe1] sm:$0xff] }
 0x2fc   : > { %v8952_v51 = vpop.permute.xlu0 %6082  ;;  %v6090_v23 = vunpack.i.h.bf16 %v6088_v17  ;;  %v6089_v46 = vunpack.i.l.bf16 %v6088_v17  ;;  %v3963_v48 = vsel %vm3959_vm15, %v3930_v13, %v5955_v11  ;;  %v4454_v13 = vld [vmem:[#allocation2 + $0xf9] sm:$0xff]  ;;  %v4475_v11 = vpack.c.bf16 %v4452_v52, %v4451_v30 }
 0x2fd   : > { %6357 = vrot.lane.b32.xlu1 %v6356_v10, %s6594_s15  ;;  %v3962_v57 = vsel %vm3959_vm15, %v3929_v47, %v5954_v5  ;;  %v2764_v47 = vld [vmem:[#allocation3 + $0x129] sm:$0xff] }
 0x2fe   : > { %6392 = vrot.lane.b32.xlu0 %v6391_v16, %s6598_s26  ;;  %v3996_v18 = vsel %vm3992_vm1, %v3963_v48, %v6090_v23  ;;  %v3995_v31 = vsel %vm3992_vm1, %v3962_v57, %v6089_v46  ;;  %5234 = vmatprep.mubr.msk.bf16.mxu0 %vm361_vm0, %v4475_v11 }
 0x2ff   : > { %v6093_v21 = vpop.permute.xlu1 %6092 }
 0x300   : > { %v8960_v0 = vpop.permute.xlu0 %6102  ;;  %v6095_v43 = vunpack.i.h.bf16 %v6093_v21  ;;  %v6094_v56 = vunpack.i.l.bf16 %v6093_v21  ;;  %v4453_v21 = vld [vmem:[#allocation2 + $0xf1] sm:$0xff] }
 0x301   : > { %6367 = vrot.lane.b32.xlu1 %v6391_v16, %s6595_s20  ;;  %v2731_v16 = vld [vmem:[#allocation3 + $0x120] sm:$0xff]  ;;  %v4476_v5 = vpack.c.bf16 %v4454_v13, %v4453_v21 }
 0x302   : > { %6402 = vrot.lane.b32.xlu0 %v8707_v36, %s6594_s15  ;;  %v4028_v12 = vsel %vm4025_vm2, %v3995_v31, %v6094_v56  ;;  %v4029_v3 = vsel %vm4025_vm2, %v3996_v18, %v6095_v43  ;;  %v6421_v61 = vpack.i.bf16 %v2732_v15, %v2731_v16  ;;  %v2795_v18 = vld [vmem:[#allocation3 + $0x122] sm:$0xff]  ;;  %v2796_v31 = vld [vmem:[#allocation3 + $0x12a] sm:$0xff] }
 0x303   : > { %v6098_v55 = vpop.permute.xlu1 %6097  ;;  %5235 = vmatmul.mubr.msk.bf16.gmra.mxu0 %vm361_vm0, %v4476_v5 }
 0x304   : > { %v8971_v40 = vpop.permute.xlu0 %6107  ;;  %v6100_v34 = vunpack.i.h.bf16 %v6098_v55  ;;  %v6099_v39 = vunpack.i.l.bf16 %v6098_v55 }
 0x305   : > { %6377 = vrot.lane.b32.xlu1 %v8705_v26, %s6596_s22  ;;  %v2763_v26 = vld [vmem:[#allocation3 + $0x121] sm:$0xff] }
 0x306   : > { %6412 = vrot.lane.b32.xlu0 %v8713_v41, %s6595_s20  ;;  %v4061_v60 = vsel %vm4058_vm4, %v4028_v12, %v6099_v39  ;;  %v4062_v17 = vsel %vm4058_vm4, %v4029_v3, %v6100_v34  ;;  %v6431_v57 = vpack.i.bf16 %v2764_v47, %v2763_v26  ;;  %v2736_v26 = vld [vmem:[#allocation3 + $0x158] sm:$0xff] }
 0x307   : > { %v4092_v33 = vpack.c.bf16 %v4062_v17, %v4061_v60  ;;  %v6113_v63 = vpop.permute.xlu1 %6112 }
 0x308   : > { %v8983_v10 = vpop.permute.xlu0 %6122  ;;  %v6115_v23 = vunpack.i.h.bf16 %v6113_v63  ;;  %v6114_v46 = vunpack.i.l.bf16 %v6113_v63 }
 0x309   : > { %5185 = vmatmul.mubr.msk.bf16.vlgmr.msra.gmra.mxu1 %vm4143_vm5, %v4092_v33  ;;  %6387 = vrot.lane.b32.xlu1 %v8707_v36, %s6597_s24 }
 0x30a   : > { %6422 = vrot.lane.b32.xlu0 %v6421_v61, %s6596_s22  ;;  %v3854_v34 = vsel %vm1849_vm3, %v8697_v37, %v6115_v23  ;;  %v3853_v39 = vsel %vm1849_vm3, %v8701_v25, %v6114_v46  ;;  %v6441_v37 = vpack.i.bf16 %v2796_v31, %v2795_v18  ;;  %v9027_v23 = vld [vmem:[#allocation3 + $0x138] sm:$0xff] }
 0x30b   : > { %v6118_v43 = vpop.permute.xlu1 %6117  ;;  %v2765_v18 = vld [vmem:[#allocation3 + $0x139] sm:$0xff] }
 0x30c   : > { %v6128_v56 = vpop.permute.xlu0 %6127  ;;  %v6120_v48 = vunpack.i.h.bf16 %v6118_v43  ;;  %v6119_v55 = vunpack.i.l.bf16 %v6118_v43 }
 0x30d   : > { %v6130_v15 = vunpack.i.h.bf16 %v6128_v56  ;;  %v6129_v36 = vunpack.i.l.bf16 %v6128_v56  ;;  %6397 = vrot.lane.b32.xlu1 %v8713_v41, %s6598_s26  ;;  %v2766_v56 = vld [vmem:[#allocation3 + $0x141] sm:$0xff] }
 0x30e   : > { %6432 = vrot.lane.b32.xlu0 %v6431_v57, %s6597_s24  ;;  %v8997_v12 = vsel %vm1915_vm6, %v3853_v39, %v6119_v55  ;;  %v9000_v3 = vsel %vm1915_vm6, %v3854_v34, %v6120_v48  ;;  %v2735_v55 = vld [vmem:[#allocation3 + $0x150] sm:$0xff]  ;;  %v4456_v39 = vld [vmem:[#allocation2 + $0x111] sm:$0xff] }
 0x30f   : > { %v9004_v60 = vpop.permute.xlu1 %6137  ;;  %v3843_v25 = vsel %vm1849_vm3, %v8723_v42, %v6129_v36  ;;  %v3844_v63 = vsel %vm1849_vm3, %v8717_v9, %v6130_v15  ;;  %v9022_v42 = vld [vmem:[#allocation3 + $0x140] sm:$0xff]  ;;  %v6471_v34 = vpack.i.bf16 %v2736_v26, %v2735_v55  ;;  %v4457_v15 = vld [vmem:[#allocation2 + $0x121] sm:$0xff] }
 0x310   : > { %v6133_v17 = vpop.permute.xlu0 %6132  ;;  %v6426_v5 = vpack.i.bf16 %v9022_v42, %v9027_v23  ;;  %v2768_v36 = vld [vmem:[#allocation3 + $0x159] sm:$0xff] }
 0x311   : > { %v6135_v16 = vunpack.i.h.bf16 %v6133_v17  ;;  %v6134_v33 = vunpack.i.l.bf16 %v6133_v17  ;;  %6407 = vrot.lane.b32.xlu1 %v6431_v57, %s6594_s15  ;;  %v4458_v17 = vld [vmem:[#allocation2 + $0x129] sm:$0xff] }
 0x312   : > { %6442 = vrot.lane.b32.xlu0 %v6441_v37, %s6598_s26  ;;  %v2800_v26 = vld [vmem:[#allocation3 + $0x15a] sm:$0xff] }
 0x313   : > { %v9012_v61 = vsel %vm1915_vm6, %v3843_v25, %v6134_v33  ;;  %v9015_v30 = vsel %vm1915_vm6, %v3844_v63, %v6135_v16  ;;  %v9018_v41 = vpop.permute.xlu1 %6152  ;;  %v2798_v16 = vld [vmem:[#allocation3 + $0x142] sm:$0xff]  ;;  %v4478_v25 = vpack.c.bf16 %v4458_v17, %v4457_v15  ;;  %v2767_v63 = vld [vmem:[#allocation3 + $0x151] sm:$0xff] }
 0x314   : > { %v6143_v52 = vpop.permute.xlu0 %6142 }
 0x315   : > { %v6145_v21 = vunpack.i.h.bf16 %v6143_v52  ;;  %v6144_v47 = vunpack.i.l.bf16 %v6143_v52  ;;  %6417 = vrot.lane.b32.xlu1 %v6441_v37, %s6595_s20  ;;  %v2797_v37 = vld [vmem:[#allocation3 + $0x13a] sm:$0xff] }
 0x316   : > { %6452 = vrot.lane.b32.xlu0 %v8752_v38, %s6594_s15 }
 0x317   : > { %v9025_v13 = vpop.permute.xlu1 %6157  ;;  %v3860_v43 = vsel %vm1849_vm3, %v8731_v2, %v6145_v21  ;;  %v3859_v38 = vsel %vm1849_vm3, %v8737_v27, %v6144_v47  ;;  %v4455_v27 = vld [vmem:[#allocation2 + $0x109] sm:$0xff]  ;;  %v6481_v47 = vpack.i.bf16 %v2768_v36, %v2767_v63  ;;  %v6155_v63 = vunpack.i.h.bf16 %v9018_v41 }
 0x318   : > { %v6148_v9 = vpop.permute.xlu0 %6147  ;;  %v4477_v33 = vpack.c.bf16 %v4456_v39, %v4455_v27  ;;  %v9066_v27 = vld [vmem:[#allocation3 + $0x168] sm:$0xff] }
 0x319   : > { %v6150_v46 = vunpack.i.h.bf16 %v6148_v9  ;;  %v6149_v11 = vunpack.i.l.bf16 %v6148_v9  ;;  %6427 = vrot.lane.b32.xlu1 %v6426_v5, %s6596_s22  ;;  %v2799_v5 = vld [vmem:[#allocation3 + $0x152] sm:$0xff] }
 0x31a   : > { %6462 = vrot.lane.b32.xlu0 %v8762_v54, %s6595_s20  ;;  %v6436_v54 = vpack.i.bf16 %v2766_v56, %v2765_v18  ;;  %5238 = vmatprep.mubr.msk.bf16.mxu0 %vm361_vm0, %v4477_v33  ;;  %v6085_v33 = vunpack.i.h.bf16 %v8952_v51 }
 0x31b   : > { %v9038_v57 = vsel %vm1915_vm6, %v3859_v38, %v6149_v11  ;;  %v9041_v48 = vsel %vm1915_vm6, %v3860_v43, %v6150_v46  ;;  %v9046_v2 = vpop.permute.xlu1 %6162  ;;  %v6446_v11 = vpack.i.bf16 %v2798_v16, %v2797_v37  ;;  %5239 = vmatmul.mubr.msk.bf16.gmra.mxu0 %vm361_vm0, %v4478_v25  ;;  %v9055_v43 = vld [vmem:[#allocation3 + $0x170] sm:$0xff]  ;;  %v5940_v37 = vunpack.i.h.bf16 %v8790_v49 }
 0x31c   : > { %9896 = vst [vmem:[#allocation22_spill] sm:$0xff] %v9038_v57  ;;  %9897 = vst [vmem:[#allocation23_spill] sm:$0xff] %v9041_v48  ;;  %v9044_v31 = vpop.permute.xlu0 %6167  ;;  %v6501_v39 = vpack.i.bf16 %v9055_v43, %v9066_v27  ;;  %v5939_v16 = vunpack.i.l.bf16 %v8790_v49  ;;  %v6084_v25 = vunpack.i.l.bf16 %v8952_v51 }
 0x31d   : > { %6437 = vrot.lane.b32.xlu1 %v6436_v54, %s6597_s24 }
 0x31e   : > { %6472 = vrot.lane.b32.xlu0 %v6471_v34, %s6596_s22  ;;  %v6491_v34 = vpack.i.bf16 %v2800_v26, %v2799_v5  ;;  %v2535_v5 = vld [vmem:[#allocation3 + $0xc8] sm:$0xff] }
 0x31f   : > { %v9050_v21 = vpop.permute.xlu1 %6172 }
 0x320   : > { %v6188_v52 = vpop.permute.xlu0 %6187 }
 0x321   : > { %v6190_v9 = vunpack.i.h.bf16 %v6188_v52  ;;  %v6189_v46 = vunpack.i.l.bf16 %v6188_v52  ;;  %6447 = vrot.lane.b32.xlu1 %v6446_v11, %s6598_s26  ;;  %v6154_v52 = vunpack.i.l.bf16 %v9018_v41  ;;  %v2534_v11 = vld [vmem:[#allocation3 + $0xc0] sm:$0xff] }
 0x322   : > { %6482 = vrot.lane.b32.xlu0 %v6481_v47, %s6597_s24 }
 0x323   : > { %v9059_v38 = vsel %vm1981_vm8, %v8946_v14, %v6190_v9  ;;  %v9063_v56 = vsel %vm1981_vm8, %v8943_v50, %v6189_v46  ;;  %v6178_v55 = vpop.permute.xlu1 %6177  ;;  %v5935_v14 = vunpack.i.h.bf16 %v8780_v28  ;;  %v5934_v50 = vunpack.i.l.bf16 %v8780_v28 }
 0x324   : > { %v6193_v18 = vpop.permute.xlu0 %6192  ;;  %v6180_v15 = vunpack.i.h.bf16 %v6178_v55  ;;  %v6179_v54 = vunpack.i.l.bf16 %v6178_v55 }
 0x325   : > { %v6195_v36 = vunpack.i.h.bf16 %v6193_v18  ;;  %v6194_v17 = vunpack.i.l.bf16 %v6193_v18  ;;  %6457 = vrot.lane.b32.xlu1 %v6481_v47, %s6594_s15 }
 0x326   : > { %6492 = vrot.lane.b32.xlu0 %v6491_v34, %s6598_s26  ;;  %v3858_v49 = vsel %vm1849_vm3, %v9022_v42, %v6180_v15  ;;  %v3857_v47 = vsel %vm1849_vm3, %v9027_v23, %v6179_v54  ;;  %v6105_v42 = vunpack.i.h.bf16 %v8960_v0  ;;  %v6104_v23 = vunpack.i.l.bf16 %v8960_v0 }
 0x327   : > { %v6183_v9 = vpop.permute.xlu1 %6182  ;;  %v3847_v51 = vsel %vm1849_vm3, %v2534_v11, %v6194_v17  ;;  %v3848_v57 = vsel %vm1849_vm3, %v2535_v5, %v6195_v36  ;;  %v2706_v36 = vld [vmem:[#allocation3 + $0x16a] sm:$0xff]  ;;  %v2707_v17 = vld [vmem:[#allocation3 + $0x172] sm:$0xff]  ;;  %v6110_v0 = vunpack.i.h.bf16 %v8971_v40 }
 0x328   : > { %v6198_v46 = vpop.permute.xlu0 %6197  ;;  %v6185_v26 = vunpack.i.h.bf16 %v6183_v9  ;;  %v6184_v28 = vunpack.i.l.bf16 %v6183_v9  ;;  %v2770_v11 = vld [vmem:[#allocation3 + $0x171] sm:$0xff] }
 0x329   : > { %v6200_v55 = vunpack.i.h.bf16 %v6198_v46  ;;  %v6199_v18 = vunpack.i.l.bf16 %v6198_v46  ;;  %6467 = vrot.lane.b32.xlu1 %v6491_v34, %s6595_s20 }
 0x32a   : > { %6502 = vrot.lane.b32.xlu0 %v6501_v39, %s6592_s25  ;;  %v3889_v41 = vsel %vm1915_vm6, %v3857_v47, %v6184_v28  ;;  %v3890_v48 = vsel %vm1915_vm6, %v3858_v49, %v6185_v26  ;;  %v6570_v28 = vld [vmem:[#allocation3 + $0x38] sm:$0xff] }
 0x32b   : > { %v9090_v9 = vsel %vm1915_vm6, %v3847_v51, %v6199_v18  ;;  %v9093_v46 = vsel %vm1915_vm6, %v3848_v57, %v6200_v55  ;;  %v9098_v15 = vpop.permute.xlu1 %6202  ;;  %v9103_v5 = vsel %vm1981_vm8, %v3889_v41, %v6154_v52  ;;  %v9106_v26 = vsel %vm1981_vm8, %v3890_v48, %v6155_v63  ;;  %v6569_v57 = vld [vmem:[#allocation3 + $0x30] sm:$0xff] }
 0x32c   : > { %v9100_v54 = vpop.permute.xlu0 %6217  ;;  %v3835_v34 = vsel %vm1849_vm3, %v6569_v57, %v5934_v50  ;;  %v3836_v55 = vsel %vm1849_vm3, %v6570_v28, %v5935_v14  ;;  %v6109_v18 = vunpack.i.l.bf16 %v8971_v40  ;;  %v2769_v52 = vld [vmem:[#allocation3 + $0x169] sm:$0xff]  ;;  %v6521_v50 = vpack.i.bf16 %v2707_v17, %v2706_v36 }
 0x32d   : > { %v3867_v49 = vsel %vm1915_vm6, %v3835_v34, %v5939_v16  ;;  %v3868_v47 = vsel %vm1915_vm6, %v3836_v55, %v5940_v37  ;;  %6477 = vrot.lane.b32.xlu1 %v6501_v39, %s6596_s22  ;;  %v6486_v14 = vpack.i.bf16 %v2770_v11, %v2769_v52  ;;  %v6075_v51 = vunpack.i.h.bf16 %v8916_v58  ;;  %v4460_v34 = vld [vmem:[#allocation2 + $0x141] sm:$0xff]  ;;  %v2740_v11 = vld [vmem:[#allocation3 + $0x188] sm:$0xff]  ;;  %v2739_v52 = vld [vmem:[#allocation3 + $0x180] sm:$0xff] }
 0x32e   : > { %6512 = vrot.lane.b32.xlu0 %v8806_v1, %s6594_s15  ;;  %v3900_v48 = vsel %vm1981_vm8, %v3868_v47, %v6085_v33  ;;  %v3899_v63 = vsel %vm1981_vm8, %v3867_v49, %v6084_v25  ;;  %v6074_v40 = vunpack.i.l.bf16 %v8916_v58  ;;  %v4459_v1 = vld [vmem:[#allocation2 + $0x139] sm:$0xff]  ;;  %v4461_v33 = vld [vmem:[#allocation2 + $0x151] sm:$0xff]  ;;  %v6080_v25 = vunpack.i.h.bf16 %v8926_v8 }
 0x32f   : > { %v3931_v16 = vsel %vm2047_vm10, %v3899_v63, %v6104_v23  ;;  %v3932_v37 = vsel %vm2047_vm10, %v3900_v48, %v6105_v42  ;;  %v9123_v57 = vpop.permute.xlu1 %6207  ;;  %v6079_v39 = vunpack.i.l.bf16 %v8926_v8  ;;  %v4462_v58 = vld [vmem:[#allocation2 + $0x159] sm:$0xff]  ;;  %v4479_v42 = vpack.c.bf16 %v4460_v34, %v4459_v1 }
 0x330   : > { %v6223_v41 = vpop.permute.xlu0 %6222  ;;  %v3964_v36 = vsel %vm3959_vm15, %v3931_v16, %v6109_v18  ;;  %v3965_v17 = vsel %vm3959_vm15, %v3932_v37, %v6110_v0  ;;  %v4480_v55 = vpack.c.bf16 %v4462_v58, %v4461_v33  ;;  %v6055_v49 = vunpack.i.h.bf16 %v8910_v29 }
 0x331   : > { %v6225_v28 = vunpack.i.h.bf16 %v6223_v41  ;;  %v6224_v23 = vunpack.i.l.bf16 %v6223_v41  ;;  %v6054_v47 = vunpack.i.l.bf16 %v8910_v29  ;;  %6487 = vrot.lane.b32.xlu1 %v6486_v14, %s6597_s24  ;;  %v3837_v8 = vsel %vm1849_vm3, %v8679_v19, %v6074_v40  ;;  %5242 = vmatprep.mubr.msk.bf16.mxu0 %vm361_vm0, %v4479_v42  ;;  %v2772_v14 = vld [vmem:[#allocation3 + $0x189] sm:$0xff] }
 0x332   : > { %6522 = vrot.lane.b32.xlu0 %v6521_v50, %s6595_s20  ;;  %v3838_v0 = vsel %vm1849_vm3, %v8675_v7, %v6075_v51  ;;  %v6531_v63 = vpack.i.bf16 %v2740_v11, %v2739_v52  ;;  %v3998_v37 = vsel %vm3992_vm1, %v3965_v17, %v6055_v49  ;;  %5243 = vmatmul.mubr.msk.bf16.gmra.mxu0 %vm361_vm0, %v4480_v55  ;;  %v6040_v1 = vunpack.i.h.bf16 %v8877_v6  ;;  %v2771_v17 = vld [vmem:[#allocation3 + $0x181] sm:$0xff] }
 0x333   : > { %v9137_v48 = vpop.permute.xlu1 %6212  ;;  %v3997_v16 = vsel %vm3992_vm1, %v3964_v36, %v6054_v47  ;;  %v3869_v19 = vsel %vm1915_vm6, %v3837_v8, %v6079_v39  ;;  %v3870_v40 = vsel %vm1915_vm6, %v3838_v0, %v6080_v25  ;;  %v4031_v7 = vsel %vm4025_vm2, %v3998_v37, %v6225_v28  ;;  %v2803_v28 = vld [vmem:[#allocation3 + $0x182] sm:$0xff]  ;;  %v9169_v0 = vld [vmem:[#allocation3 + $0x199] sm:$0xff] }
 0x334   : > { %v6233_v18 = vpop.permute.xlu0 %6232  ;;  %v4030_v51 = vsel %vm4025_vm2, %v3997_v16, %v6224_v23  ;;  %v6039_v34 = vunpack.i.l.bf16 %v8877_v6  ;;  %v6541_v58 = vpack.i.bf16 %v2772_v14, %v2771_v17  ;;  %v2804_v23 = vld [vmem:[#allocation3 + $0x18a] sm:$0xff]  ;;  %v3902_v55 = vsel %vm1981_vm8, %v3870_v40, %v6040_v1  ;;  %v9159_v6 = vld [vmem:[#allocation3 + $0x198] sm:$0xff]  ;;  %v9167_v8 = vld [vmem:[#allocation3 + $0x1a0] sm:$0xff] }
 0x335   : > { %v6235_v29 = vunpack.i.h.bf16 %v6233_v18  ;;  %v6234_v41 = vunpack.i.l.bf16 %v6233_v18  ;;  %6497 = vrot.lane.b32.xlu1 %v6521_v50, %s6598_s26  ;;  %v6045_v49 = vunpack.i.h.bf16 %v8891_v32  ;;  %v6044_v47 = vunpack.i.l.bf16 %v8891_v32  ;;  %v9171_v18 = vld [vmem:[#allocation3 + $0x1a1] sm:$0xff] }
 0x336   : > { %6532 = vrot.lane.b32.xlu0 %v6531_v63, %s6596_s22  ;;  %v3901_v42 = vsel %vm1981_vm8, %v3869_v19, %v6039_v34  ;;  %v6030_v50 = vunpack.i.h.bf16 %v8893_v20  ;;  %v6029_v52 = vunpack.i.l.bf16 %v8893_v20  ;;  %v6035_v16 = vunpack.i.h.bf16 %v8902_v35  ;;  %v6571_v1 = vld [vmem:[#allocation3 + $0x60] sm:$0xff]  ;;  %v6572_v34 = vld [vmem:[#allocation3 + $0x68] sm:$0xff] }
 0x337   : > { %v4063_v33 = vsel %vm4058_vm4, %v4030_v51, %v6234_v41  ;;  %v4064_v36 = vsel %vm4058_vm4, %v4031_v7, %v6235_v29  ;;  %v9155_v25 = vpop.permute.xlu1 %6227  ;;  %v6034_v37 = vunpack.i.l.bf16 %v8902_v35  ;;  %v6551_v32 = vpack.i.bf16 %v2804_v23, %v2803_v28 }
 0x338   : > { %v4093_v39 = vpack.c.bf16 %v4064_v36, %v4063_v33  ;;  %v9153_v11 = vpop.permute.xlu0 %6252  ;;  %v6170_v29 = vunpack.i.h.bf16 %v9044_v31  ;;  %v6169_v20 = vunpack.i.l.bf16 %v9044_v31  ;;  %v3933_v41 = vsel %vm2047_vm10, %v3901_v42, %v6044_v47 }
 0x339   : > { %6507 = vrot.lane.b32.xlu1 %v6531_v63, %s6592_s25  ;;  %v3934_v14 = vsel %vm2047_vm10, %v3902_v55, %v6045_v49  ;;  %v6050_v7 = vunpack.i.h.bf16 %v8900_v22  ;;  %v6049_v51 = vunpack.i.l.bf16 %v8900_v22  ;;  %v6536_v35 = vpack.i.bf16 %v9167_v8, %v9159_v6  ;;  %v4464_v8 = vld [vmem:[#allocation2 + $0x171] sm:$0xff] }
 0x33a   : > { %6542 = vrot.lane.b32.xlu0 %v6541_v58, %s6597_s24  ;;  %5188 = vmatprep.mubr.msk.bf16.mxu1 %vm4143_vm5, %v4093_v39  ;;  %v6546_v63 = vpack.i.bf16 %v9171_v18, %v9169_v0  ;;  %v3839_v31 = vsel %vm1849_vm3, %v6571_v1, %v6029_v52  ;;  %v3840_v33 = vsel %vm1849_vm3, %v6572_v34, %v6030_v50  ;;  %v6175_v6 = vunpack.i.h.bf16 %v9050_v21  ;;  %v4463_v52 = vld [vmem:[#allocation2 + $0x169] sm:$0xff] }
 0x33b   : > { %v6238_v40 = vpop.permute.xlu1 %6237  ;;  %v3871_v39 = vsel %vm1915_vm6, %v3839_v31, %v6034_v37  ;;  %v3872_v22 = vsel %vm1915_vm6, %v3840_v33, %v6035_v16  ;;  %v3966_v28 = vsel %vm3959_vm15, %v3933_v41, %v6049_v51  ;;  %v3967_v23 = vsel %vm3959_vm15, %v3934_v14, %v6050_v7  ;;  %v4465_v37 = vld [vmem:[#allocation2 + $0x181] sm:$0xff] }
 0x33c   : > { %v9180_v19 = vpop.permute.xlu0 %6262  ;;  %v6240_v36 = vunpack.i.h.bf16 %v6238_v40  ;;  %v6239_v17 = vunpack.i.l.bf16 %v6238_v40  ;;  %v3904_v42 = vsel %vm1981_vm8, %v3872_v22, %v6170_v29  ;;  %v3903_v55 = vsel %vm1981_vm8, %v3871_v39, %v6169_v20  ;;  %v6573_v18 = vld [vmem:[#allocation3 + $0x78] sm:$0xff] }
 0x33d   : > { %6517 = vrot.lane.b32.xlu1 %v6541_v58, %s6594_s15  ;;  %v6174_v49 = vunpack.i.l.bf16 %v9050_v21  ;;  %v6230_v16 = vunpack.i.h.bf16 %v9155_v25  ;;  %v6229_v41 = vunpack.i.l.bf16 %v9155_v25  ;;  %v4466_v58 = vld [vmem:[#allocation2 + $0x189] sm:$0xff]  ;;  %v4481_v7 = vpack.c.bf16 %v4464_v8, %v4463_v52 }
 0x33e   : > { %6552 = vrot.lane.b32.xlu0 %v6551_v32, %s6598_s26  ;;  %v3862_v29 = vsel %vm1849_vm3, %v9055_v43, %v6240_v36  ;;  %v3861_v20 = vsel %vm1849_vm3, %v9066_v27, %v6239_v17  ;;  %v4482_v21 = vpack.c.bf16 %v4466_v58, %v4465_v37  ;;  %v6255_v51 = vunpack.i.h.bf16 %v9153_v11  ;;  %v2806_v58 = vld [vmem:[#allocation3 + $0x1a2] sm:$0xff] }
 0x33f   : > { %v6243_v50 = vpop.permute.xlu1 %6242  ;;  %v6254_v1 = vunpack.i.l.bf16 %v9153_v11  ;;  %v4000_v34 = vsel %vm3992_vm1, %v3967_v23, %v6175_v6  ;;  %v3999_v43 = vsel %vm3992_vm1, %v3966_v28, %v6174_v49  ;;  %v6265_v27 = vunpack.i.h.bf16 %v9180_v19  ;;  %5246 = vmatprep.mubr.msk.bf16.mxu0 %vm361_vm0, %v4481_v7 }
 0x340   : > { %v6273_v47 = vpop.permute.xlu0 %6272  ;;  %v6245_v14 = vunpack.i.h.bf16 %v6243_v50  ;;  %v6244_v40 = vunpack.i.l.bf16 %v6243_v50  ;;  %v6264_v33 = vunpack.i.l.bf16 %v9180_v19  ;;  %5247 = vmatmul.mubr.msk.bf16.gmra.mxu0 %vm361_vm0, %v4482_v21  ;;  %v4032_v23 = vsel %vm4025_vm2, %v3999_v43, %v6229_v41  ;;  %v2805_v41 = vld [vmem:[#allocation3 + $0x19a] sm:$0xff] }
 0x341   : > { %6527 = vrot.lane.b32.xlu1 %v6551_v32, %s6595_s20  ;;  %v6275_v11 = vunpack.i.h.bf16 %v6273_v47  ;;  %v6274_v39 = vunpack.i.l.bf16 %v6273_v47  ;;  %v4033_v32 = vsel %vm4025_vm2, %v4000_v34, %v6230_v16  ;;  %v3936_v49 = vsel %vm2047_vm10, %v3904_v42, %v6255_v51 }
 0x342   : > { %v9209_v31 = vsel %vm1915_vm6, %v3861_v20, %v6244_v40  ;;  %v9212_v25 = vsel %vm1915_vm6, %v3862_v29, %v6245_v14  ;;  %v3935_v19 = vsel %vm2047_vm10, %v3903_v55, %v6254_v1  ;;  %v3969_v37 = vsel %vm3959_vm15, %v3936_v49, %v6265_v27 }
 0x343   : > { %v6248_v17 = vpop.permute.xlu1 %6247  ;;  %v3968_v47 = vsel %vm3959_vm15, %v3935_v19, %v6264_v33  ;;  %v4002_v42 = vsel %vm3992_vm1, %v3969_v37, %v6275_v11  ;;  %v6556_v1 = vpack.i.bf16 %v2806_v58, %v2805_v41  ;;  %v6160_v33 = vunpack.i.h.bf16 %v9025_v13 }
 0x344   : > { %v6283_v36 = vpop.permute.xlu0 %6282  ;;  %v6250_v22 = vunpack.i.h.bf16 %v6248_v17  ;;  %v6249_v50 = vunpack.i.l.bf16 %v6248_v17  ;;  %v4001_v29 = vsel %vm3992_vm1, %v3968_v47, %v6274_v39  ;;  %v6165_v17 = vunpack.i.h.bf16 %v9046_v2  ;;  %v2529_v39 = vld [vmem:[#allocation3 + $0x80] sm:$0xff] }
 0x345   : > { %v6285_v6 = vunpack.i.h.bf16 %v6283_v36  ;;  %v6284_v28 = vunpack.i.l.bf16 %v6283_v36  ;;  %6537 = vrot.lane.b32.xlu1 %v6536_v35, %s6596_s22  ;;  %v6159_v36 = vunpack.i.l.bf16 %v9025_v13  ;;  %v6164_v11 = vunpack.i.l.bf16 %v9046_v2 }
 0x346   : > { %v4065_v52 = vsel %vm4058_vm4, %v4032_v23, %v6249_v50  ;;  %v4066_v8 = vsel %vm4058_vm4, %v4033_v32, %v6250_v22  ;;  %v3842_v50 = vsel %vm1849_vm3, %v2529_v39, %v6160_v33  ;;  %v6220_v32 = vunpack.i.h.bf16 %v9100_v54 }
 0x347   : > { %v4094_v14 = vpack.c.bf16 %v4066_v8, %v4065_v52  ;;  %v6258_v40 = vpop.permute.xlu1 %6257  ;;  %v4034_v7 = vsel %vm4025_vm2, %v4001_v29, %v6284_v28  ;;  %v4035_v21 = vsel %vm4025_vm2, %v4002_v42, %v6285_v6  ;;  %v6219_v13 = vunpack.i.l.bf16 %v9100_v54 }
 0x348   : > { %v6293_v16 = vpop.permute.xlu0 %6292  ;;  %v3874_v2 = vsel %vm1915_vm6, %v3842_v50, %v6165_v17  ;;  %v6260_v6 = vunpack.i.h.bf16 %v6258_v40  ;;  %v6259_v28 = vunpack.i.l.bf16 %v6258_v40  ;;  %v6140_v49 = vunpack.i.h.bf16 %v9004_v60 }
 0x349   : > { %v6295_v55 = vunpack.i.h.bf16 %v6293_v16  ;;  %v6294_v20 = vunpack.i.l.bf16 %v6293_v16  ;;  %5189 = vmatmul.mubr.msk.bf16.gmra.mxu1 %vm4143_vm5, %v4094_v14  ;;  %6547 = vrot.lane.b32.xlu1 %v6546_v63, %s6597_s24  ;;  %v3841_v63 = vsel %vm1849_vm3, %v6573_v18, %v6159_v36  ;;  %v6139_v19 = vunpack.i.l.bf16 %v9004_v60 }
 0x34a   : > { %v3873_v23 = vsel %vm1915_vm6, %v3841_v63, %v6164_v11  ;;  %v3908_v41 = vsel %vm1981_vm8, %v9015_v30, %v6220_v32  ;;  %v3907_v54 = vsel %vm1981_vm8, %v9012_v61, %v6219_v13  ;;  %v3906_v40 = vsel %vm1981_vm8, %v3874_v2, %v6140_v49 }
 0x34b   : > { %v4067_v35 = vsel %vm4058_vm4, %v4034_v7, %v6294_v20  ;;  %v4068_v51 = vsel %vm4058_vm4, %v4035_v21, %v6295_v55  ;;  %v6268_v27 = vpop.permute.xlu1 %6267  ;;  %v3905_v58 = vsel %vm1981_vm8, %v3873_v23, %v6139_v19  ;;  %v3938_v29 = vsel %vm2047_vm10, %v3906_v40, %v6260_v6 }
 0x34c   : > { %v4095_v34 = vpack.c.bf16 %v4068_v51, %v4067_v35  ;;  %v6303_v43 = vpop.permute.xlu0 %6302  ;;  %v6270_v52 = vunpack.i.h.bf16 %v6268_v27  ;;  %v6269_v8 = vunpack.i.l.bf16 %v6268_v27  ;;  %v3937_v60 = vsel %vm2047_vm10, %v3905_v58, %v6259_v28 }
 0x34d   : > { %6557 = vrot.lane.b32.xlu1 %v6556_v1, %s6598_s26  ;;  %v6305_v20 = vunpack.i.h.bf16 %v6303_v43  ;;  %v6304_v7 = vunpack.i.l.bf16 %v6303_v43  ;;  %v6210_v40 = vunpack.i.h.bf16 %v9123_v57 }
 0x34e   : > { %5192 = vmatprep.mubr.msk.bf16.mxu1 %vm4143_vm5, %v4095_v34  ;;  %v3970_v21 = vsel %vm3959_vm15, %v3937_v60, %v6269_v8  ;;  %v3971_v35 = vsel %vm3959_vm15, %v3938_v29, %v6270_v52  ;;  %v6214_v29 = vunpack.i.l.bf16 %v9137_v48 }
 0x34f   : > { %v6278_v0 = vpop.permute.xlu1 %6277  ;;  %v3939_v63 = vsel %vm2047_vm10, %v3907_v54, %v6304_v7 }
 0x350   : > { %v6313_v22 = vpop.permute.xlu0 %6312  ;;  %v6280_v47 = vunpack.i.h.bf16 %v6278_v0  ;;  %v6279_v37 = vunpack.i.l.bf16 %v6278_v0 }
 0x351   : > { %v6315_v30 = vunpack.i.h.bf16 %v6313_v22  ;;  %v6314_v51 = vunpack.i.l.bf16 %v6313_v22  ;;  %v3940_v22 = vsel %vm2047_vm10, %v3908_v41, %v6305_v20  ;;  %v6209_v41 = vunpack.i.l.bf16 %v9123_v57  ;;  %v2533_v20 = vld [vmem:[#allocation3 + $0xb0] sm:$0xff] }
 0x352   : > { %v4003_v61 = vsel %vm3992_vm1, %v3970_v21, %v6279_v37  ;;  %v4004_v1 = vsel %vm3992_vm1, %v3971_v35, %v6280_v47  ;;  %v3846_v35 = vsel %vm1849_vm3, %v2533_v20, %v6210_v40 }
 0x353   : > { %v6288_v16 = vpop.permute.xlu1 %6287  ;;  %v3972_v13 = vsel %vm3959_vm15, %v3939_v63, %v6314_v51  ;;  %v3973_v23 = vsel %vm3959_vm15, %v3940_v22, %v6315_v30 }
 0x354   : > { %v6323_v14 = vpop.permute.xlu0 %6322  ;;  %v6290_v42 = vunpack.i.h.bf16 %v6288_v16  ;;  %v6289_v55 = vunpack.i.l.bf16 %v6288_v16 }
 0x355   : > { %v6325_v33 = vunpack.i.h.bf16 %v6323_v14  ;;  %v6324_v36 = vunpack.i.l.bf16 %v6323_v14 }
 0x356   : > { %v4036_v39 = vsel %vm4025_vm2, %v4003_v61, %v6289_v55  ;;  %v4037_v43 = vsel %vm4025_vm2, %v4004_v1, %v6290_v42  ;;  %v6215_v42 = vunpack.i.h.bf16 %v9137_v48  ;;  %v2532_v55 = vld [vmem:[#allocation3 + $0xa8] sm:$0xff]  ;;  %v6204_v61 = vunpack.i.l.bf16 %v9098_v15 }
 0x357   : > { %v6298_v27 = vpop.permute.xlu1 %6297  ;;  %v4005_v28 = vsel %vm3992_vm1, %v3972_v13, %v6324_v36  ;;  %v4006_v49 = vsel %vm3992_vm1, %v3973_v23, %v6325_v33  ;;  %v3845_v7 = vsel %vm1849_vm3, %v2532_v55, %v6209_v41  ;;  %v6025_v48 = vunpack.i.h.bf16 %v8875_v45 }
 0x358   : > { %v6333_v34 = vpop.permute.xlu0 %6332  ;;  %v6300_v17 = vunpack.i.h.bf16 %v6298_v27  ;;  %v6299_v11 = vunpack.i.l.bf16 %v6298_v27  ;;  %v3877_v30 = vsel %vm1915_vm6, %v3845_v7, %v6214_v29  ;;  %v3878_v57 = vsel %vm1915_vm6, %v3846_v35, %v6215_v42 }
 0x359   : > { %v6335_v0 = vunpack.i.h.bf16 %v6333_v34  ;;  %v6334_v18 = vunpack.i.l.bf16 %v6333_v34  ;;  %v6205_v27 = vunpack.i.h.bf16 %v9098_v15  ;;  %v6024_v33 = vunpack.i.l.bf16 %v8875_v45 }
 0x35a   : > { %v4069_v50 = vsel %vm4058_vm4, %v4036_v39, %v6299_v11  ;;  %v4070_v32 = vsel %vm4058_vm4, %v4037_v43, %v6300_v17  ;;  %v3909_v36 = vsel %vm1981_vm8, %v3877_v30, %v6204_v61  ;;  %v3912_v45 = vsel %vm1981_vm8, %v9093_v46, %v6025_v48 }
 0x35b   : > { %v4096_v2 = vpack.c.bf16 %v4070_v32, %v4069_v50  ;;  %v6308_v8 = vpop.permute.xlu1 %6307  ;;  %v4038_v47 = vsel %vm4025_vm2, %v4005_v28, %v6334_v18  ;;  %v4039_v37 = vsel %vm4025_vm2, %v4006_v49, %v6335_v0  ;;  %v3910_v43 = vsel %vm1981_vm8, %v3878_v57, %v6205_v27 }
 0x35c   : > { %v6343_v6 = vpop.permute.xlu0 %6342  ;;  %v6310_v1 = vunpack.i.h.bf16 %v6308_v8  ;;  %v6309_v34 = vunpack.i.l.bf16 %v6308_v8  ;;  %v3911_v15 = vsel %vm1981_vm8, %v9090_v9, %v6024_v33 }
 0x35d   : > { %v6345_v19 = vunpack.i.h.bf16 %v6343_v6  ;;  %v6344_v52 = vunpack.i.l.bf16 %v6343_v6  ;;  %5193 = vmatmul.mubr.msk.bf16.gmra.mxu1 %vm4143_vm5, %v4096_v2 }
 0x35e   : > { %v3941_v50 = vsel %vm2047_vm10, %v3909_v36, %v6309_v34  ;;  %v3942_v32 = vsel %vm2047_vm10, %v3910_v43, %v6310_v1  ;;  %v6015_v36 = vunpack.i.h.bf16 %v8849_v4  ;;  %v5974_v43 = vunpack.i.l.bf16 %v8822_v53 }
 0x35f   : > { %v4071_v14 = vsel %vm4058_vm4, %v4038_v47, %v6344_v52  ;;  %v4072_v16 = vsel %vm4058_vm4, %v4039_v37, %v6345_v19  ;;  %v6318_v60 = vpop.permute.xlu1 %6317 }
 0x360   : > { %v4097_v54 = vpack.c.bf16 %v4072_v16, %v4071_v14  ;;  %v6353_v58 = vpop.permute.xlu0 %6352  ;;  %v6320_v17 = vunpack.i.h.bf16 %v6318_v60  ;;  %v6319_v11 = vunpack.i.l.bf16 %v6318_v60 }
 0x361   : > { %v6354_v0 = vunpack.i.l.bf16 %v6353_v58  ;;  %v6355_v13 = vunpack.i.h.bf16 %v6353_v58 }
 0x362   : > { %5196 = vmatprep.mubr.msk.bf16.mxu1 %vm4143_vm5, %v4097_v54  ;;  %v3974_v28 = vsel %vm3959_vm15, %v3941_v50, %v6319_v11  ;;  %v3975_v49 = vsel %vm3959_vm15, %v3942_v32, %v6320_v17  ;;  %v6014_v17 = vunpack.i.l.bf16 %v8849_v4  ;;  %v5979_v50 = vunpack.i.l.bf16 %v8829_v62 }
 0x363   : > { %v6328_v51 = vpop.permute.xlu1 %6327  ;;  %v3943_v47 = vsel %vm2047_vm10, %v3911_v15, %v6354_v0  ;;  %v3944_v40 = vsel %vm2047_vm10, %v3912_v45, %v6355_v13  ;;  %v6020_v0 = vunpack.i.h.bf16 %v8859_v44  ;;  %v5980_v32 = vunpack.i.h.bf16 %v8829_v62  ;;  %v6574_v15 = vld [vmem:[#allocation3 + $0xe0] sm:$0xff]  ;;  %v6575_v45 = vld [vmem:[#allocation3 + $0xd8] sm:$0xff] }
 0x364   : > { %v6363_v21 = vpop.permute.xlu0 %6362  ;;  %v6330_v18 = vunpack.i.h.bf16 %v6328_v51  ;;  %v6329_v63 = vunpack.i.l.bf16 %v6328_v51  ;;  %v3850_v4 = vsel %vm1849_vm3, %v6574_v15, %v6015_v36  ;;  %v3849_v13 = vsel %vm1849_vm3, %v6575_v45, %v6014_v17 }
 0x365   : > { %v6364_v23 = vunpack.i.l.bf16 %v6363_v21  ;;  %v6365_v19 = vunpack.i.h.bf16 %v6363_v21  ;;  %v6124_v62 = vunpack.i.l.bf16 %v8983_v10 }
 0x366   : > { %v4007_v37 = vsel %vm3992_vm1, %v3974_v28, %v6329_v63  ;;  %v4008_v9 = vsel %vm3992_vm1, %v3975_v49, %v6330_v18  ;;  %v6019_v18 = vunpack.i.l.bf16 %v8859_v44 }
 0x367   : > { %v6338_v22 = vpop.permute.xlu1 %6337  ;;  %v3976_v29 = vsel %vm3959_vm15, %v3943_v47, %v6364_v23  ;;  %v3977_v55 = vsel %vm3959_vm15, %v3944_v40, %v6365_v19  ;;  %v6125_v19 = vunpack.i.h.bf16 %v8983_v10  ;;  %v5985_v47 = vunpack.i.h.bf16 %v8820_v24 }
 0x368   : > { %v6373_v39 = vpop.permute.xlu0 %6372  ;;  %v6340_v2 = vunpack.i.h.bf16 %v6338_v22  ;;  %v6339_v6 = vunpack.i.l.bf16 %v6338_v22  ;;  %v5975_v22 = vunpack.i.h.bf16 %v8822_v53  ;;  %v3881_v28 = vsel %vm1915_vm6, %v3849_v13, %v6019_v18 }
 0x369   : > { %v6374_v52 = vunpack.i.l.bf16 %v6373_v39  ;;  %v6375_v14 = vunpack.i.h.bf16 %v6373_v39  ;;  %v3882_v53 = vsel %vm1915_vm6, %v3850_v4, %v6020_v0 }
 0x36a   : > { %v4040_v60 = vsel %vm4025_vm2, %v4007_v37, %v6339_v6  ;;  %v4041_v42 = vsel %vm4025_vm2, %v4008_v9, %v6340_v2  ;;  %v5984_v2 = vunpack.i.l.bf16 %v8820_v24  ;;  %v6576_v6 = vld [vmem:[#allocation3 + $0xf0] sm:$0xff]  ;;  %v6577_v37 = vld [vmem:[#allocation3 + $0xf8] sm:$0xff]  ;;  %v3914_v40 = vsel %vm1981_vm8, %v3882_v53, %v5985_v47 }
 0x36b   : > { %v6348_v16 = vpop.permute.xlu1 %6347  ;;  %v4009_v20 = vsel %vm3992_vm1, %v3976_v29, %v6374_v52  ;;  %v4010_v30 = vsel %vm3992_vm1, %v3977_v55, %v6375_v14  ;;  %v3851_v44 = vsel %vm1849_vm3, %v6576_v6, %v5974_v43  ;;  %v3852_v9 = vsel %vm1849_vm3, %v6577_v37, %v5975_v22 }
 0x36c   : > { %v6383_v8 = vpop.permute.xlu0 %6382  ;;  %v6350_v54 = vunpack.i.h.bf16 %v6348_v16  ;;  %v6349_v58 = vunpack.i.l.bf16 %v6348_v16  ;;  %v3883_v14 = vsel %vm1915_vm6, %v3851_v44, %v5979_v50  ;;  %v3884_v16 = vsel %vm1915_vm6, %v3852_v9, %v5980_v32 }
 0x36d   : > { %v6385_v46 = vunpack.i.h.bf16 %v6383_v8  ;;  %v6384_v41 = vunpack.i.l.bf16 %v6383_v8  ;;  %v3916_v24 = vsel %vm1981_vm8, %v3884_v16, %v6125_v19  ;;  %v3915_v55 = vsel %vm1981_vm8, %v3883_v14, %v6124_v62 }
 0x36e   : > { %v4073_v7 = vsel %vm4058_vm4, %v4040_v60, %v6349_v58  ;;  %v4074_v21 = vsel %vm4058_vm4, %v4041_v42, %v6350_v54  ;;  %v6069_v16 = vunpack.i.l.bf16 %v8908_v59 }
 0x36f   : > { %v4098_v51 = vpack.c.bf16 %v4074_v21, %v4073_v7  ;;  %v6358_v1 = vpop.permute.xlu1 %6357  ;;  %v4042_v34 = vsel %vm4025_vm2, %v4009_v20, %v6384_v41  ;;  %v4043_v48 = vsel %vm4025_vm2, %v4010_v30, %v6385_v46  ;;  %v3913_v46 = vsel %vm1981_vm8, %v3881_v28, %v5984_v2 }
 0x370   : > { %v6393_v35 = vpop.permute.xlu0 %6392  ;;  %v6360_v52 = vunpack.i.h.bf16 %v6358_v1  ;;  %v6359_v8 = vunpack.i.l.bf16 %v6358_v1 }
 0x371   : > { %v6395_v61 = vunpack.i.h.bf16 %v6393_v35  ;;  %v6394_v57 = vunpack.i.l.bf16 %v6393_v35  ;;  %5197 = vmatmul.mubr.msk.bf16.gmra.mxu1 %vm4143_vm5, %v4098_v51 }
 0x372   : > { %v3946_v20 = vsel %vm2047_vm10, %v3914_v40, %v6360_v52  ;;  %v3945_v7 = vsel %vm2047_vm10, %v3913_v46, %v6359_v8 }
 0x373   : > { %v4075_v27 = vsel %vm4058_vm4, %v4042_v34, %v6394_v57  ;;  %v4076_v33 = vsel %vm4058_vm4, %v4043_v48, %v6395_v61  ;;  %v6368_v63 = vpop.permute.xlu1 %6367 }
 0x374   : > { %v4099_v11 = vpack.c.bf16 %v4076_v33, %v4075_v27  ;;  %v6403_v39 = vpop.permute.xlu0 %6402  ;;  %v6370_v41 = vunpack.i.h.bf16 %v6368_v63  ;;  %v6369_v54 = vunpack.i.l.bf16 %v6368_v63 }
 0x375   : > { %v6404_v29 = vunpack.i.l.bf16 %v6403_v39  ;;  %v6405_v21 = vunpack.i.h.bf16 %v6403_v39 }
 0x376   : > { %5200 = vmatprep.mubr.msk.bf16.mxu1 %vm4143_vm5, %v4099_v11  ;;  %v3978_v61 = vsel %vm3959_vm15, %v3945_v7, %v6369_v54  ;;  %v3979_v57 = vsel %vm3959_vm15, %v3946_v20, %v6370_v41  ;;  %v6070_v54 = vunpack.i.h.bf16 %v8908_v59 }
 0x377   : > { %v6378_v49 = vpop.permute.xlu1 %6377  ;;  %v3947_v27 = vsel %vm2047_vm10, %v3915_v55, %v6404_v29  ;;  %v3948_v63 = vsel %vm2047_vm10, %v3916_v24, %v6405_v21 }
 0x378   : > { %v6413_v23 = vpop.permute.xlu0 %6412  ;;  %v6380_v10 = vunpack.i.h.bf16 %v6378_v49  ;;  %v6379_v60 = vunpack.i.l.bf16 %v6378_v49 }
 0x379   : > { %v6414_v35 = vunpack.i.l.bf16 %v6413_v23  ;;  %v6415_v1 = vunpack.i.h.bf16 %v6413_v23 }
 0x37a   : > { %v4011_v33 = vsel %vm3992_vm1, %v3978_v61, %v6379_v60  ;;  %v4012_v36 = vsel %vm3992_vm1, %v3979_v57, %v6380_v10  ;;  %v3918_v60 = vsel %vm1981_vm8, %v9000_v3, %v6070_v54 }
 0x37b   : > { %v6388_v42 = vpop.permute.xlu1 %6387  ;;  %v3980_v22 = vsel %vm3959_vm15, %v3947_v27, %v6414_v35  ;;  %v3981_v15 = vsel %vm3959_vm15, %v3948_v63, %v6415_v1 }
 0x37c   : > { %v6423_v58 = vpop.permute.xlu0 %6422  ;;  %v6390_v30 = vunpack.i.h.bf16 %v6388_v42  ;;  %v6389_v51 = vunpack.i.l.bf16 %v6388_v42 }
 0x37d   : > { %v6424_v34 = vunpack.i.l.bf16 %v6423_v58  ;;  %v6425_v17 = vunpack.i.h.bf16 %v6423_v58  ;;  %v3917_v58 = vsel %vm1981_vm8, %v8997_v12, %v6069_v16 }
 0x37e   : > { %v4044_v50 = vsel %vm4025_vm2, %v4011_v33, %v6389_v51  ;;  %v4045_v32 = vsel %vm4025_vm2, %v4012_v36, %v6390_v30 }
 0x37f   : > { %v6398_v11 = vpop.permute.xlu1 %6397  ;;  %v4013_v4 = vsel %vm3992_vm1, %v3980_v22, %v6424_v34  ;;  %v4014_v2 = vsel %vm3992_vm1, %v3981_v15, %v6425_v17 }
 0x380   : > { %v6433_v48 = vpop.permute.xlu0 %6432  ;;  %v6400_v0 = vunpack.i.h.bf16 %v6398_v11  ;;  %v6399_v18 = vunpack.i.l.bf16 %v6398_v11 }
 0x381   : > { %v6435_v43 = vunpack.i.h.bf16 %v6433_v48  ;;  %v6434_v39 = vunpack.i.l.bf16 %v6433_v48 }
 0x382   : > { %v4077_v45 = vsel %vm4058_vm4, %v4044_v50, %v6399_v18  ;;  %v4078_v13 = vsel %vm4058_vm4, %v4045_v32, %v6400_v0 }
 0x383   : > { %v4100_v6 = vpack.c.bf16 %v4078_v13, %v4077_v45  ;;  %v6408_v53 = vpop.permute.xlu1 %6407  ;;  %v4046_v49 = vsel %vm4025_vm2, %v4013_v4, %v6434_v39  ;;  %v4047_v19 = vsel %vm4025_vm2, %v4014_v2, %v6435_v43 }
 0x384   : > { %v6443_v23 = vpop.permute.xlu0 %6442  ;;  %v6410_v46 = vunpack.i.h.bf16 %v6408_v53  ;;  %v6409_v41 = vunpack.i.l.bf16 %v6408_v53 }
 0x385   : > { %v6445_v44 = vunpack.i.h.bf16 %v6443_v23  ;;  %v6444_v28 = vunpack.i.l.bf16 %v6443_v23  ;;  %5201 = vmatmul.mubr.msk.bf16.gmra.mxu1 %vm4143_vm5, %v4100_v6 }
 0x386   : > { %v3950_v7 = vsel %vm2047_vm10, %v3918_v60, %v6410_v46  ;;  %v3949_v21 = vsel %vm2047_vm10, %v3917_v58, %v6409_v41 }
 0x387   : > { %v4079_v62 = vsel %vm4058_vm4, %v4046_v49, %v6444_v28  ;;  %v4080_v52 = vsel %vm4058_vm4, %v4047_v19, %v6445_v44  ;;  %v6418_v37 = vpop.permute.xlu1 %6417 }
 0x388   : > { %v4101_v8 = vpack.c.bf16 %v4080_v52, %v4079_v62  ;;  %v6453_v47 = vpop.permute.xlu0 %6452  ;;  %v6420_v40 = vunpack.i.h.bf16 %v6418_v37  ;;  %v6419_v29 = vunpack.i.l.bf16 %v6418_v37 }
 0x389   : > { %v6454_v42 = vunpack.i.l.bf16 %v6453_v47  ;;  %v6455_v35 = vunpack.i.h.bf16 %v6453_v47 }
 0x38a   : > { %5204 = vmatprep.mubr.msk.bf16.mxu1 %vm4143_vm5, %v4101_v8  ;;  %v3982_v12 = vsel %vm3959_vm15, %v3949_v21, %v6419_v29  ;;  %v3983_v61 = vsel %vm3959_vm15, %v3950_v7, %v6420_v40 }
 0x38b   : > { %v6428_v14 = vpop.permute.xlu1 %6427  ;;  %v3951_v3 = vsel %vm2047_vm10, %v9063_v56, %v6454_v42  ;;  %v3952_v0 = vsel %vm2047_vm10, %v9059_v38, %v6455_v35 }
 0x38c   : > { %v6463_v9 = vpop.permute.xlu0 %6462  ;;  %v6430_v24 = vunpack.i.h.bf16 %v6428_v14  ;;  %v6429_v55 = vunpack.i.l.bf16 %v6428_v14 }
 0x38d   : > { %v6464_v30 = vunpack.i.l.bf16 %v6463_v9  ;;  %v6465_v57 = vunpack.i.h.bf16 %v6463_v9 }
 0x38e   : > { %v4015_v48 = vsel %vm3992_vm1, %v3982_v12, %v6429_v55  ;;  %v4016_v27 = vsel %vm3992_vm1, %v3983_v61, %v6430_v24 }
 0x38f   : > { %v6438_v20 = vpop.permute.xlu1 %6437  ;;  %v3984_v18 = vsel %vm3959_vm15, %v3951_v3, %v6464_v30  ;;  %v3985_v56 = vsel %vm3959_vm15, %v3952_v0, %v6465_v57 }
 0x390   : > { %v6473_v10 = vpop.permute.xlu0 %6472  ;;  %v6440_v59 = vunpack.i.h.bf16 %v6438_v20  ;;  %v6439_v51 = vunpack.i.l.bf16 %v6438_v20 }
 0x391   : > { %v6474_v1 = vunpack.i.l.bf16 %v6473_v10  ;;  %v6475_v33 = vunpack.i.h.bf16 %v6473_v10 }
 0x392   : > { %v4048_v63 = vsel %vm4025_vm2, %v4015_v48, %v6439_v51  ;;  %v4049_v22 = vsel %vm4025_vm2, %v4016_v27, %v6440_v59 }
 0x393   : > { %v6448_v36 = vpop.permute.xlu1 %6447  ;;  %v4017_v50 = vsel %vm3992_vm1, %v3984_v18, %v6474_v1  ;;  %v4018_v45 = vsel %vm3992_vm1, %v3985_v56, %v6475_v33 }
 0x394   : > { %v6483_v34 = vpop.permute.xlu0 %6482  ;;  %v6450_v43 = vunpack.i.h.bf16 %v6448_v36  ;;  %v6449_v39 = vunpack.i.l.bf16 %v6448_v36 }
 0x395   : > { %v6485_v17 = vunpack.i.h.bf16 %v6483_v34  ;;  %v6484_v11 = vunpack.i.l.bf16 %v6483_v34 }
 0x396   : > { %v4081_v32 = vsel %vm4058_vm4, %v4048_v63, %v6449_v39  ;;  %v4082_v15 = vsel %vm4058_vm4, %v4049_v22, %v6450_v43  ;;  %v9899_v43 = vld [vmem:[#allocation22_spill] sm:$0xff] }
 0x397   : > { %v4102_v13 = vpack.c.bf16 %v4082_v15, %v4081_v32  ;;  %v6458_v2 = vpop.permute.xlu1 %6457  ;;  %v4050_v6 = vsel %vm4025_vm2, %v4017_v50, %v6484_v11  ;;  %v4051_v44 = vsel %vm4025_vm2, %v4018_v45, %v6485_v17  ;;  %v9898_v17 = vld [vmem:[#allocation23_spill] sm:$0xff] }
 0x398   : > { %v6493_v4 = vpop.permute.xlu0 %6492  ;;  %v6460_v47 = vunpack.i.h.bf16 %v6458_v2  ;;  %v6459_v37 = vunpack.i.l.bf16 %v6458_v2 }
 0x399   : > { %v6495_v23 = vunpack.i.h.bf16 %v6493_v4  ;;  %v6494_v38 = vunpack.i.l.bf16 %v6493_v4  ;;  %5205 = vmatmul.mubr.msk.bf16.gmra.mxu1 %vm4143_vm5, %v4102_v13 }
 0x39a   : > { %v3954_v29 = vsel %vm2047_vm10, %v9106_v26, %v6460_v47  ;;  %v3953_v10 = vsel %vm2047_vm10, %v9103_v5, %v6459_v37 }
 0x39b   : > { %v4083_v28 = vsel %vm4058_vm4, %v4050_v6, %v6494_v38  ;;  %v4084_v53 = vsel %vm4058_vm4, %v4051_v44, %v6495_v23  ;;  %v6468_v62 = vpop.permute.xlu1 %6467 }
 0x39c   : > { %v4103_v49 = vpack.c.bf16 %v4084_v53, %v4083_v28  ;;  %v6503_v19 = vpop.permute.xlu0 %6502  ;;  %v6470_v14 = vunpack.i.h.bf16 %v6468_v62  ;;  %v6469_v16 = vunpack.i.l.bf16 %v6468_v62 }
 0x39d   : > { %v6505_v42 = vunpack.i.h.bf16 %v6503_v19  ;;  %v6504_v24 = vunpack.i.l.bf16 %v6503_v19 }
 0x39e   : > { %5208 = vmatprep.mubr.msk.bf16.mxu1 %vm4143_vm5, %v4103_v49  ;;  %v3986_v55 = vsel %vm3959_vm15, %v3953_v10, %v6469_v16  ;;  %v3987_v20 = vsel %vm3959_vm15, %v3954_v29, %v6470_v14  ;;  %v5220_v14 = vpop.f32.mrf.mxu0 }
 0x39f   : > { %v6478_v8 = vpop.permute.xlu1 %6477  ;;  %v3924_v11 = vsel %vm1981_vm8, %v9898_v17, %v6505_v42  ;;  %v3923_v39 = vsel %vm1981_vm8, %v9899_v43, %v6504_v24 }
 0x3a0   : > { %v6513_v52 = vpop.permute.xlu0 %6512  ;;  %v6480_v41 = vunpack.i.h.bf16 %v6478_v8  ;;  %v6479_v54 = vunpack.i.l.bf16 %v6478_v8 }
 0x3a1   : > { %v6515_v51 = vunpack.i.h.bf16 %v6513_v52  ;;  %v6514_v12 = vunpack.i.l.bf16 %v6513_v52 }
 0x3a2   : > { %v4019_v21 = vsel %vm3992_vm1, %v3986_v55, %v6479_v54  ;;  %v4020_v35 = vsel %vm3992_vm1, %v3987_v20, %v6480_v41  ;;  %v4569_v55 = vpop.f32.mrf.mxu0 }
 0x3a3   : > { %v6488_v46 = vpop.permute.xlu1 %6487  ;;  %v3955_v63 = vsel %vm2047_vm10, %v3923_v39, %v6514_v12  ;;  %v3956_v22 = vsel %vm2047_vm10, %v3924_v11, %v6515_v51  ;;  %v9444_v51 = vld [vmem:[%s9671_s8] ss:$0 sm:$0xff] }
 0x3a4   : > { %v6523_v9 = vpop.permute.xlu0 %6522  ;;  %v6490_v58 = vunpack.i.h.bf16 %v6488_v46  ;;  %v6489_v40 = vunpack.i.l.bf16 %v6488_v46 }
 0x3a5   : > { %v6525_v61 = vunpack.i.h.bf16 %v6523_v9  ;;  %v6524_v57 = vunpack.i.l.bf16 %v6523_v9 }
 0x3a6   : > { %v4052_v26 = vsel %vm4025_vm2, %v4019_v21, %v6489_v40  ;;  %v4053_v5 = vsel %vm4025_vm2, %v4020_v35, %v6490_v58 }
 0x3a7   : > { %v6498_v7 = vpop.permute.xlu1 %6497  ;;  %v3988_v56 = vsel %vm3959_vm15, %v3955_v63, %v6524_v57  ;;  %v3989_v50 = vsel %vm3959_vm15, %v3956_v22, %v6525_v61  ;;  %v9451_v61 = vld [vmem:[%s9668_s5] ss:$0 sm:$0xff] }
 0x3a8   : > { %v6533_v60 = vpop.permute.xlu0 %6532  ;;  %v6500_v30 = vunpack.i.h.bf16 %v6498_v7  ;;  %v6499_v59 = vunpack.i.l.bf16 %v6498_v7  ;;  %v9456_v57 = vld [vmem:[%s9672_s9] ss:$0 sm:$0xff] }
 0x3a9   : > { %v6535_v48 = vunpack.i.h.bf16 %v6533_v60  ;;  %v6534_v27 = vunpack.i.l.bf16 %v6533_v60 }
 0x3aa   : > { %v4085_v1 = vsel %vm4058_vm4, %v4052_v26, %v6499_v59  ;;  %v4086_v34 = vsel %vm4058_vm4, %v4053_v5, %v6500_v30  ;;  %v5221_v26 = vpop.f32.mrf.mxu0  ;;  %v4705_v5 = vmul.f32 %v5220_v14, %v9444_v51 }
 0x3ab   : > { %v4104_v33 = vpack.c.bf16 %v4086_v34, %v4085_v1  ;;  %v6508_v36 = vpop.permute.xlu1 %6507  ;;  %v4021_v15 = vsel %vm3992_vm1, %v3988_v56, %v6534_v27  ;;  %v4022_v4 = vsel %vm3992_vm1, %v3989_v50, %v6535_v48  ;;  %v4703_v1 = vmul.f32 %v9444_v51, %v4569_v55  ;;  %v9462_v48 = vld [vmem:[%s9669_s6] ss:$0 sm:$0xff] }
 0x3ac   : > { %v6543_v3 = vpop.permute.xlu0 %6542  ;;  %v6510_v19 = vunpack.i.h.bf16 %v6508_v36  ;;  %v6509_v62 = vunpack.i.l.bf16 %v6508_v36  ;;  %v4572_v34 = vpop.f32.mrf.mxu0  ;;  %v4706_v36 = vmul.f32 %v5221_v26, %v9444_v51 }
 0x3ad   : > { %v6545_v0 = vunpack.i.h.bf16 %v6543_v3  ;;  %v6544_v18 = vunpack.i.l.bf16 %v6543_v3  ;;  %5209 = vmatmul.mubr.msk.bf16.gmra.mxu1 %vm4143_vm5, %v4104_v33  ;;  %v4744_v33 = vadd.f32 %v9456_v57, %v4705_v5  ;;  %v4704_v11 = vmul.f32 %v9444_v51, %v4572_v34 }
 0x3ae   : > { %v3925_v41 = vsel %vm1981_vm8, %v9209_v31, %v6509_v62  ;;  %v3926_v54 = vsel %vm1981_vm8, %v9212_v25, %v6510_v19  ;;  %v4745_v50 = vadd.f32 %v9456_v57, %v4706_v36 }
 0x3af   : > { %v6518_v23 = vpop.permute.xlu1 %6517  ;;  %v4054_v38 = vsel %vm4025_vm2, %v4021_v15, %v6544_v18  ;;  %v4055_v2 = vsel %vm4025_vm2, %v4022_v4, %v6545_v0  ;;  %v4742_v0 = vadd.f32 %v9456_v57, %v4703_v1  ;;  %v4743_v15 = vadd.f32 %v9456_v57, %v4704_v11 }
 0x3b0   : > { %v6553_v32 = vpop.permute.xlu0 %6552  ;;  %v6520_v52 = vunpack.i.h.bf16 %v6518_v23  ;;  %v6519_v8 = vunpack.i.l.bf16 %v6518_v23 }
 0x3b1   : > { %v6555_v45 = vunpack.i.h.bf16 %v6553_v32  ;;  %v6554_v13 = vunpack.i.l.bf16 %v6553_v32 }
 0x3b2   : > { %v3957_v29 = vsel %vm2047_vm10, %v3925_v41, %v6519_v8  ;;  %v3958_v10 = vsel %vm2047_vm10, %v3926_v54, %v6520_v52 }
 0x3b3   : > { %v4087_v6 = vsel %vm4058_vm4, %v4054_v38, %v6554_v13  ;;  %v4088_v44 = vsel %vm4058_vm4, %v4055_v2, %v6555_v45  ;;  %v6528_v53 = vpop.permute.xlu1 %6527 }
 0x3b4   : > { %v4105_v28 = vpack.c.bf16 %v4088_v44, %v4087_v6  ;;  %v6530_v47 = vunpack.i.h.bf16 %v6528_v53  ;;  %v6529_v37 = vunpack.i.l.bf16 %v6528_v53 }
 0x3b6   : > { %5212 = vmatprep.mubr.msk.bf16.mxu1 %vm4143_vm5, %v4105_v28  ;;  %v3990_v60 = vsel %vm3959_vm15, %v3957_v29, %v6529_v37  ;;  %v3991_v42 = vsel %vm3959_vm15, %v3958_v10, %v6530_v47 }
 0x3b7   : > { %v6538_v49 = vpop.permute.xlu1 %6537 }
 0x3b8   : > { %v6540_v16 = vunpack.i.h.bf16 %v6538_v49  ;;  %v6539_v46 = vunpack.i.l.bf16 %v6538_v49  ;;  %v5224_v49 = vpop.f32.mrf.mxu0 }
 0x3b9   : > { %v4709_v52 = vmul.f32 %v5224_v49, %v9444_v51 }
 0x3ba   : > { %v4023_v20 = vsel %vm3992_vm1, %v3990_v60, %v6539_v46  ;;  %v4024_v7 = vsel %vm3992_vm1, %v3991_v42, %v6540_v16  ;;  %v4585_v19 = vpop.f32.mrf.mxu0 }
 0x3bb   : > { %v6548_v9 = vpop.permute.xlu1 %6547  ;;  %v4707_v8 = vmul.f32 %v9444_v51, %v4585_v19  ;;  %v4748_v14 = vadd.f32 %v9456_v57, %v4709_v52 }
 0x3bc   : > { %v6550_v58 = vunpack.i.h.bf16 %v6548_v9  ;;  %v6549_v40 = vunpack.i.l.bf16 %v6548_v9  ;;  %v5225_v62 = vpop.f32.mrf.mxu0 }
 0x3bd   : > { %v4710_v16 = vmul.f32 %v5225_v62, %v9444_v51 }
 0x3be   : > { %v4056_v25 = vsel %vm4025_vm2, %v4023_v20, %v6549_v40  ;;  %v4057_v35 = vsel %vm4025_vm2, %v4024_v7, %v6550_v58  ;;  %v4588_v47 = vpop.f32.mrf.mxu0  ;;  %v4746_v40 = vadd.f32 %v9456_v57, %v4707_v8 }
 0x3bf   : > { %v6558_v24 = vpop.permute.xlu1 %6557  ;;  %v4708_v41 = vmul.f32 %v9444_v51, %v4588_v47 }
 0x3c0   : > { %v6560_v31 = vunpack.i.h.bf16 %v6558_v24  ;;  %v6559_v21 = vunpack.i.l.bf16 %v6558_v24  ;;  %v4749_v24 = vadd.f32 %v9456_v57, %v4710_v16 }
 0x3c1   : > { %v4747_v20 = vadd.f32 %v9456_v57, %v4708_v41 }
 0x3c2   : > { %v4089_v30 = vsel %vm4058_vm4, %v4056_v25, %v6559_v21  ;;  %v4090_v59 = vsel %vm4058_vm4, %v4057_v35, %v6560_v31  ;;  %v5228_v35 = vpop.f32.mrf.mxu0 }
 0x3c3   : > { %v4106_v12 = vpack.c.bf16 %v4090_v59, %v4089_v30 }
 0x3c4   : > { %v4601_v1 = vpop.f32.mrf.mxu0 }
 0x3c5   : > { %5213 = vmatmul.mubr.msk.bf16.gmra.mxu1 %vm4143_vm5, %v4106_v12 }
 0x3c9   : > { %v5186_v3 = vpop.f32.mrf.mxu1 }
 0x3ca   : > { %v4366_v27 = vmul.f32 %v5186_v3, %v9451_v61  ;;  %v5229_v3 = vpop.f32.mrf.mxu0 }
 0x3cb   : > { %v4230_v17 = vpop.f32.mrf.mxu1 }
 0x3cc   : > { %v4405_v43 = vadd.f32 %v9462_v48, %v4366_v27  ;;  %v4364_v39 = vmul.f32 %v9451_v61, %v4230_v17  ;;  %v4713_v27 = vmul.f32 %v5228_v35, %v9444_v51  ;;  %v4604_v36 = vpop.f32.mrf.mxu0 }
 0x3cd   : > { %v5187_v18 = vpop.f32.mrf.mxu1 }
 0x3ce   : > { %v4776_v63 = vadd.f32 %v4744_v33, %v4405_v43  ;;  %v4403_v22 = vadd.f32 %v9462_v48, %v4364_v39  ;;  %v4367_v56 = vmul.f32 %v5187_v18, %v9451_v61  ;;  %v4711_v33 = vmul.f32 %v9444_v51, %v4601_v1 }
 0x3cf   : > { %v4233_v32 = vpop.f32.mrf.mxu1  ;;  %v4752_v43 = vadd.f32 %v9456_v57, %v4713_v27  ;;  %v4714_v39 = vmul.f32 %v5229_v3, %v9444_v51  ;;  %v4712_v18 = vmul.f32 %v9444_v51, %v4604_v36 }
 0x3d0   : > { %v4808_v4 = vmax.f32 %v4776_v63, 0.0  ;;  %v4774_v45 = vadd.f32 %v4742_v0, %v4403_v22  ;;  %v4406_v13 = vadd.f32 %v9462_v48, %v4367_v56  ;;  %v4365_v23 = vmul.f32 %v9451_v61, %v4233_v32 }
 0x3d1   : > { %v4750_v56 = vadd.f32 %v9456_v57, %v4711_v33 }
 0x3d2   : > { %4840 = vst.msk [vmem:[%s9478_s12 + $0x10] sm:$0xff] %vm1849_vm3, %v4808_v4  ;;  %v4806_v38 = vmax.f32 %v4774_v45, 0.0  ;;  %v4777_v2 = vadd.f32 %v4745_v50, %v4406_v13  ;;  %v4404_v6 = vadd.f32 %v9462_v48, %v4365_v23  ;;  %v4753_v45 = vadd.f32 %v9456_v57, %v4714_v39 }
 0x3d3   : > { %v4751_v23 = vadd.f32 %v9456_v57, %v4712_v18 }
 0x3d4   : > { %4838 = vst.msk [vmem:[%s9478_s12] sm:$0xff] %vm1849_vm3, %v4806_v38  ;;  %v4809_v44 = vmax.f32 %v4777_v2, 0.0  ;;  %v4775_v28 = vadd.f32 %v4743_v15, %v4404_v6 }
 0x3d6   : > { %4841 = vst.msk [vmem:[%s9478_s12 + $0x18] sm:$0xff] %vm1849_vm3, %v4809_v44  ;;  %v4807_v53 = vmax.f32 %v4775_v28, 0.0  ;;  %v5232_v28 = vpop.f32.mrf.mxu0 }
 0x3d8   : > { %4839 = vst.msk [vmem:[%s9478_s12 + $0x8] sm:$0xff] %vm1849_vm3, %v4807_v53  ;;  %v4617_v8 = vpop.f32.mrf.mxu0 }
 0x409   : > { %v5190_v37 = vpop.f32.mrf.mxu1 }
 0x40a   : > { %v4370_v9 = vmul.f32 %v5190_v37, %v9451_v61  ;;  %v5233_v37 = vpop.f32.mrf.mxu0 }
 0x40b   : > { %v4246_v46 = vpop.f32.mrf.mxu1 }
 0x40c   : > { %v4409_v54 = vadd.f32 %v9462_v48, %v4370_v9  ;;  %v4368_v58 = vmul.f32 %v9451_v61, %v4246_v46  ;;  %v4717_v9 = vmul.f32 %v5232_v28, %v9444_v51  ;;  %v4620_v16 = vpop.f32.mrf.mxu0 }
 0x40d   : > { %v5191_v29 = vpop.f32.mrf.mxu1 }
 0x40e   : > { %v4780_v10 = vadd.f32 %v4748_v14, %v4409_v54  ;;  %v4407_v60 = vadd.f32 %v9462_v48, %v4368_v58  ;;  %v4371_v42 = vmul.f32 %v5191_v29, %v9451_v61  ;;  %v4715_v14 = vmul.f32 %v9444_v51, %v4617_v8 }
 0x40f   : > { %v4249_v55 = vpop.f32.mrf.mxu1  ;;  %v4756_v54 = vadd.f32 %v9456_v57, %v4717_v9  ;;  %v4718_v58 = vmul.f32 %v5233_v37, %v9444_v51  ;;  %v4716_v29 = vmul.f32 %v9444_v51, %v4620_v16 }
 0x410   : > { %v4812_v7 = vmax.f32 %v4780_v10, 0.0  ;;  %v4778_v31 = vadd.f32 %v4746_v40, %v4407_v60  ;;  %v4410_v21 = vadd.f32 %v9462_v48, %v4371_v42  ;;  %v4369_v25 = vmul.f32 %v9451_v61, %v4249_v55 }
 0x411   : > { %v4754_v42 = vadd.f32 %v9456_v57, %v4715_v14 }
 0x412   : > { %4844 = vst.msk [vmem:[%s9478_s12 + $0x30] sm:$0xff] %vm1849_vm3, %v4812_v7  ;;  %v4810_v30 = vmax.f32 %v4778_v31, 0.0  ;;  %v4781_v59 = vadd.f32 %v4749_v24, %v4410_v21  ;;  %v4408_v12 = vadd.f32 %v9462_v48, %v4369_v25  ;;  %v4757_v31 = vadd.f32 %v9456_v57, %v4718_v58 }
 0x413   : > { %v4755_v25 = vadd.f32 %v9456_v57, %v4716_v29 }
 0x414   : > { %4842 = vst.msk [vmem:[%s9478_s12 + $0x20] sm:$0xff] %vm1849_vm3, %v4810_v30  ;;  %v4813_v26 = vmax.f32 %v4781_v59, 0.0  ;;  %v4779_v5 = vadd.f32 %v4747_v20, %v4408_v12 }
 0x416   : > { %4845 = vst.msk [vmem:[%s9478_s12 + $0x38] sm:$0xff] %vm1849_vm3, %v4813_v26  ;;  %v4811_v34 = vmax.f32 %v4779_v5, 0.0  ;;  %v5236_v26 = vpop.f32.mrf.mxu0 }
 0x418   : > { %4843 = vst.msk [vmem:[%s9478_s12 + $0x28] sm:$0xff] %vm1849_vm3, %v4811_v34  ;;  %v4633_v33 = vpop.f32.mrf.mxu0 }
 0x41d   : > { %v5194_v17 = vpop.f32.mrf.mxu1 }
 0x41e   : > { %v4374_v11 = vmul.f32 %v5194_v17, %v9451_v61  ;;  %v5237_v17 = vpop.f32.mrf.mxu0 }
 0x41f   : > { %v4262_v0 = vpop.f32.mrf.mxu1 }
 0x420   : > { %v4413_v63 = vadd.f32 %v9462_v48, %v4374_v11  ;;  %v4372_v22 = vmul.f32 %v9451_v61, %v4262_v0  ;;  %v4721_v11 = vmul.f32 %v5236_v26, %v9444_v51  ;;  %v4636_v39 = vpop.f32.mrf.mxu0 }
 0x421   : > { %v5195_v50 = vpop.f32.mrf.mxu1 }
 0x422   : > { %v4784_v32 = vadd.f32 %v4752_v43, %v4413_v63  ;;  %v4411_v15 = vadd.f32 %v9462_v48, %v4372_v22  ;;  %v4375_v4 = vmul.f32 %v5195_v50, %v9451_v61  ;;  %v4719_v43 = vmul.f32 %v9444_v51, %v4633_v33 }
 0x423   : > { %v4265_v13 = vpop.f32.mrf.mxu1  ;;  %v4760_v63 = vadd.f32 %v9456_v57, %v4721_v11  ;;  %v4722_v22 = vmul.f32 %v5237_v17, %v9444_v51  ;;  %v4720_v50 = vmul.f32 %v9444_v51, %v4636_v39 }
 0x424   : > { %v4816_v38 = vmax.f32 %v4784_v32, 0.0  ;;  %v4782_v2 = vadd.f32 %v4750_v56, %v4411_v15  ;;  %v4414_v6 = vadd.f32 %v9462_v48, %v4375_v4  ;;  %v4373_v44 = vmul.f32 %v9451_v61, %v4265_v13 }
 0x425   : > { %v4758_v4 = vadd.f32 %v9456_v57, %v4719_v43 }
 0x426   : > { %4848 = vst.msk [vmem:[%s9478_s12 + $0x50] sm:$0xff] %vm1849_vm3, %v4816_v38  ;;  %v4814_v53 = vmax.f32 %v4782_v2, 0.0  ;;  %v4785_v49 = vadd.f32 %v4753_v45, %v4414_v6  ;;  %v4412_v19 = vadd.f32 %v9462_v48, %v4373_v44  ;;  %v4761_v2 = vadd.f32 %v9456_v57, %v4722_v22 }
 0x427   : > { %v4759_v44 = vadd.f32 %v9456_v57, %v4720_v50 }
 0x428   : > { %4846 = vst.msk [vmem:[%s9478_s12 + $0x40] sm:$0xff] %vm1849_vm3, %v4814_v53  ;;  %v4817_v62 = vmax.f32 %v4785_v49, 0.0  ;;  %v4783_v52 = vadd.f32 %v4751_v23, %v4412_v19 }
 0x42a   : > { %4849 = vst.msk [vmem:[%s9478_s12 + $0x58] sm:$0xff] %vm1849_vm3, %v4817_v62  ;;  %v4815_v47 = vmax.f32 %v4783_v52, 0.0  ;;  %v5240_v62 = vpop.f32.mrf.mxu0 }
 0x42c   : > { %4847 = vst.msk [vmem:[%s9478_s12 + $0x48] sm:$0xff] %vm1849_vm3, %v4815_v47  ;;  %v4649_v14 = vpop.f32.mrf.mxu0 }
 0x431   : > { %v5198_v46 = vpop.f32.mrf.mxu1 }
 0x432   : > { %v4378_v41 = vmul.f32 %v5198_v46, %v9451_v61  ;;  %v5241_v46 = vpop.f32.mrf.mxu0 }
 0x433   : > { %v4278_v40 = vpop.f32.mrf.mxu1 }
 0x434   : > { %v4417_v10 = vadd.f32 %v9462_v48, %v4378_v41  ;;  %v4376_v60 = vmul.f32 %v9451_v61, %v4278_v40  ;;  %v4725_v41 = vmul.f32 %v5240_v62, %v9444_v51  ;;  %v4652_v58 = vpop.f32.mrf.mxu0 }
 0x435   : > { %v5199_v24 = vpop.f32.mrf.mxu1 }
 0x436   : > { %v4788_v55 = vadd.f32 %v4756_v54, %v4417_v10  ;;  %v4415_v20 = vadd.f32 %v9462_v48, %v4376_v60  ;;  %v4379_v7 = vmul.f32 %v5199_v24, %v9451_v61  ;;  %v4723_v54 = vmul.f32 %v9444_v51, %v4649_v14 }
 0x437   : > { %v4281_v21 = vpop.f32.mrf.mxu1  ;;  %v4764_v10 = vadd.f32 %v9456_v57, %v4725_v41  ;;  %v4726_v60 = vmul.f32 %v5241_v46, %v9444_v51  ;;  %v4724_v24 = vmul.f32 %v9444_v51, %v4652_v58 }
 0x438   : > { %v4820_v35 = vmax.f32 %v4788_v55, 0.0  ;;  %v4786_v30 = vadd.f32 %v4754_v42, %v4415_v20  ;;  %v4418_v59 = vadd.f32 %v9462_v48, %v4379_v7  ;;  %v4377_v12 = vmul.f32 %v9451_v61, %v4281_v21 }
 0x439   : > { %v4762_v7 = vadd.f32 %v9456_v57, %v4723_v54 }
 0x43a   : > { %4852 = vst.msk [vmem:[%s9478_s12 + $0x70] sm:$0xff] %vm1849_vm3, %v4820_v35  ;;  %v4818_v5 = vmax.f32 %v4786_v30, 0.0  ;;  %v4789_v1 = vadd.f32 %v4757_v31, %v4418_v59  ;;  %v4416_v34 = vadd.f32 %v9462_v48, %v4377_v12  ;;  %v4765_v30 = vadd.f32 %v9456_v57, %v4726_v60 }
 0x43b   : > { %v4763_v12 = vadd.f32 %v9456_v57, %v4724_v24 }
 0x43c   : > { %4850 = vst.msk [vmem:[%s9478_s12 + $0x60] sm:$0xff] %vm1849_vm3, %v4818_v5  ;;  %v4821_v3 = vmax.f32 %v4789_v1, 0.0  ;;  %v4787_v27 = vadd.f32 %v4755_v25, %v4416_v34 }
 0x43e   : > { %4853 = vst.msk [vmem:[%s9478_s12 + $0x78] sm:$0xff] %vm1849_vm3, %v4821_v3  ;;  %v4819_v36 = vmax.f32 %v4787_v27, 0.0  ;;  %v5244_v3 = vpop.f32.mrf.mxu0 }
 0x440   : > { %4851 = vst.msk [vmem:[%s9478_s12 + $0x68] sm:$0xff] %vm1849_vm3, %v4819_v36  ;;  %v4665_v43 = vpop.f32.mrf.mxu0 }
 0x445   : > { %v5202_v0 = vpop.f32.mrf.mxu1 }
 0x446   : > { %v4382_v18 = vmul.f32 %v5202_v0, %v9451_v61  ;;  %v5245_v0 = vpop.f32.mrf.mxu0 }
 0x447   : > { %v4294_v56 = vpop.f32.mrf.mxu1 }
 0x448   : > { %v4421_v32 = vadd.f32 %v9462_v48, %v4382_v18  ;;  %v4380_v15 = vmul.f32 %v9451_v61, %v4294_v56  ;;  %v4729_v18 = vmul.f32 %v5244_v3, %v9444_v51  ;;  %v4668_v22 = vpop.f32.mrf.mxu0 }
 0x449   : > { %v5203_v45 = vpop.f32.mrf.mxu1 }
 0x44a   : > { %v4792_v13 = vadd.f32 %v4760_v63, %v4421_v32  ;;  %v4419_v23 = vadd.f32 %v9462_v48, %v4380_v15  ;;  %v4383_v38 = vmul.f32 %v5203_v45, %v9451_v61  ;;  %v4727_v63 = vmul.f32 %v9444_v51, %v4665_v43  ;;  %v5248_v54 = vpop.f32.mrf.mxu0 }
 0x44b   : > { %v4297_v6 = vpop.f32.mrf.mxu1  ;;  %v4768_v32 = vadd.f32 %v9456_v57, %v4729_v18  ;;  %v4730_v15 = vmul.f32 %v5245_v0, %v9444_v51  ;;  %v4728_v45 = vmul.f32 %v9444_v51, %v4668_v22 }
 0x44c   : > { %v4824_v28 = vmax.f32 %v4792_v13, 0.0  ;;  %v4790_v53 = vadd.f32 %v4758_v4, %v4419_v23  ;;  %v4422_v49 = vadd.f32 %v9462_v48, %v4383_v38  ;;  %v4381_v19 = vmul.f32 %v9451_v61, %v4297_v6  ;;  %v4681_v58 = vpop.f32.mrf.mxu0 }
 0x44d   : > { %v4766_v38 = vadd.f32 %v9456_v57, %v4727_v63 }
 0x44e   : > { %4856 = vst.msk [vmem:[%s9478_s12 + $0x90] sm:$0xff] %vm1849_vm3, %v4824_v28  ;;  %v4822_v52 = vmax.f32 %v4790_v53, 0.0  ;;  %v4793_v8 = vadd.f32 %v4761_v2, %v4422_v49  ;;  %v4420_v47 = vadd.f32 %v9462_v48, %v4381_v19  ;;  %v4769_v53 = vadd.f32 %v9456_v57, %v4730_v15 }
 0x44f   : > { %v4767_v19 = vadd.f32 %v9456_v57, %v4728_v45 }
 0x450   : > { %4854 = vst.msk [vmem:[%s9478_s12 + $0x80] sm:$0xff] %vm1849_vm3, %v4822_v52  ;;  %v4825_v37 = vmax.f32 %v4793_v8, 0.0  ;;  %v4791_v9 = vadd.f32 %v4759_v44, %v4420_v47 }
 0x452   : > { %4857 = vst.msk [vmem:[%s9478_s12 + $0x98] sm:$0xff] %vm1849_vm3, %v4825_v37  ;;  %v4823_v16 = vmax.f32 %v4791_v9, 0.0 }
 0x454   : > { %4855 = vst.msk [vmem:[%s9478_s12 + $0x88] sm:$0xff] %vm1849_vm3, %v4823_v16 }
 0x459   : > { %v5206_v40 = vpop.f32.mrf.mxu1 }
 0x45a   : > { %v4386_v29 = vmul.f32 %v5206_v40, %v9451_v61  ;;  %v4733_v40 = vmul.f32 %v5248_v54, %v9444_v51 }
 0x45b   : > { %v4310_v42 = vpop.f32.mrf.mxu1 }
 0x45c   : > { %v4425_v55 = vadd.f32 %v9462_v48, %v4386_v29  ;;  %v4384_v20 = vmul.f32 %v9451_v61, %v4310_v42  ;;  %v5249_v29 = vpop.f32.mrf.mxu0  ;;  %v4772_v42 = vadd.f32 %v9456_v57, %v4733_v40 }
 0x45d   : > { %v5207_v31 = vpop.f32.mrf.mxu1 }
 0x45e   : > { %v4796_v21 = vadd.f32 %v4764_v10, %v4425_v55  ;;  %v4423_v25 = vadd.f32 %v9462_v48, %v4384_v20  ;;  %v4387_v35 = vmul.f32 %v5207_v31, %v9451_v61  ;;  %v4731_v10 = vmul.f32 %v9444_v51, %v4681_v58  ;;  %v4684_v20 = vpop.f32.mrf.mxu0 }
 0x45f   : > { %v4313_v59 = vpop.f32.mrf.mxu1  ;;  %v4734_v55 = vmul.f32 %v5249_v29, %v9444_v51 }
 0x460   : > { %v4828_v26 = vmax.f32 %v4796_v21, 0.0  ;;  %v4794_v5 = vadd.f32 %v4762_v7, %v4423_v25  ;;  %v4426_v1 = vadd.f32 %v9462_v48, %v4387_v35  ;;  %v4385_v34 = vmul.f32 %v9451_v61, %v4313_v59 }
 0x461   : > { %v4770_v25 = vadd.f32 %v9456_v57, %v4731_v10  ;;  %v4732_v59 = vmul.f32 %v9444_v51, %v4684_v20 }
 0x462   : > { %4860 = vst.msk [vmem:[%s9478_s12 + $0xb0] sm:$0xff] %vm1849_vm3, %v4828_v26  ;;  %v4826_v27 = vmax.f32 %v4794_v5, 0.0  ;;  %v4797_v33 = vadd.f32 %v4765_v30, %v4426_v1  ;;  %v4424_v36 = vadd.f32 %v9462_v48, %v4385_v34  ;;  %v4773_v5 = vadd.f32 %v9456_v57, %v4734_v55 }
 0x464   : > { %4858 = vst.msk [vmem:[%s9478_s12 + $0xa0] sm:$0xff] %vm1849_vm3, %v4826_v27  ;;  %v4829_v17 = vmax.f32 %v4797_v33, 0.0  ;;  %v4795_v11 = vadd.f32 %v4763_v12, %v4424_v36  ;;  %v4771_v36 = vadd.f32 %v9456_v57, %v4732_v59 }
 0x466   : > { %4861 = vst.msk [vmem:[%s9478_s12 + $0xb8] sm:$0xff] %vm1849_vm3, %v4829_v17  ;;  %v4827_v39 = vmax.f32 %v4795_v11, 0.0 }
 0x468   : > { %4859 = vst.msk [vmem:[%s9478_s12 + $0xa8] sm:$0xff] %vm1849_vm3, %v4827_v39 }
 0x46d   : > { %v5210_v56 = vpop.f32.mrf.mxu1 }
 0x46e   : > { %v4390_v50 = vmul.f32 %v5210_v56, %v9451_v61 }
 0x46f   : > { %v4326_v4 = vpop.f32.mrf.mxu1 }
 0x470   : > { %v4429_v13 = vadd.f32 %v9462_v48, %v4390_v50  ;;  %v4388_v23 = vmul.f32 %v9451_v61, %v4326_v4 }
 0x471   : > { %v5211_v2 = vpop.f32.mrf.mxu1 }
 0x472   : > { %v4800_v6 = vadd.f32 %v4768_v32, %v4429_v13  ;;  %v4427_v44 = vadd.f32 %v9462_v48, %v4388_v23  ;;  %v4391_v28 = vmul.f32 %v5211_v2, %v9451_v61 }
 0x473   : > { %v4329_v49 = vpop.f32.mrf.mxu1 }
 0x474   : > { %v4832_v62 = vmax.f32 %v4800_v6, 0.0  ;;  %v4798_v52 = vadd.f32 %v4766_v38, %v4427_v44  ;;  %v4430_v8 = vadd.f32 %v9462_v48, %v4391_v28  ;;  %v4389_v47 = vmul.f32 %v9451_v61, %v4329_v49 }
 0x476   : > { %4864 = vst.msk [vmem:[%s9478_s12 + $0xd0] sm:$0xff] %vm1849_vm3, %v4832_v62  ;;  %v4830_v37 = vmax.f32 %v4798_v52, 0.0  ;;  %v4801_v9 = vadd.f32 %v4769_v53, %v4430_v8  ;;  %v4428_v14 = vadd.f32 %v9462_v48, %v4389_v47 }
 0x478   : > { %4862 = vst.msk [vmem:[%s9478_s12 + $0xc0] sm:$0xff] %vm1849_vm3, %v4830_v37  ;;  %v4833_v16 = vmax.f32 %v4801_v9, 0.0  ;;  %v4799_v46 = vadd.f32 %v4767_v19, %v4428_v14 }
 0x47a   : > { %4865 = vst.msk [vmem:[%s9478_s12 + $0xd8] sm:$0xff] %vm1849_vm3, %v4833_v16  ;;  %v4831_v41 = vmax.f32 %v4799_v46, 0.0 }
 0x47c   : > { %4863 = vst.msk [vmem:[%s9478_s12 + $0xc8] sm:$0xff] %vm1849_vm3, %v4831_v41 }
 0x485   : > { %v5214_v60 = vpop.f32.mrf.mxu1 }
 0x486   : > { %v4394_v24 = vmul.f32 %v5214_v60, %v9451_v61 }
 0x487   : > { %v4342_v7 = vpop.f32.mrf.mxu1 }
 0x488   : > { %v4433_v31 = vadd.f32 %v9462_v48, %v4394_v24  ;;  %v4392_v21 = vmul.f32 %v9451_v61, %v4342_v7 }
 0x489   : > { %v5215_v35 = vpop.f32.mrf.mxu1 }
 0x48a   : > { %v4804_v30 = vadd.f32 %v4772_v42, %v4433_v31  ;;  %v4431_v12 = vadd.f32 %v9462_v48, %v4392_v21  ;;  %v4395_v26 = vmul.f32 %v5215_v35, %v9451_v61 }
 0x48b   : > { %v4345_v1 = vpop.f32.mrf.mxu1 }
 0x48c   : > { %v4836_v34 = vmax.f32 %v4804_v30, 0.0  ;;  %v4802_v3 = vadd.f32 %v4770_v25, %v4431_v12  ;;  %v4434_v27 = vadd.f32 %v9462_v48, %v4395_v26  ;;  %v4393_v33 = vmul.f32 %v9451_v61, %v4345_v1 }
 0x48e   : > { %4868 = vst.msk [vmem:[%s9478_s12 + $0xf0] sm:$0xff] %vm1849_vm3, %v4836_v34  ;;  %v4834_v51 = vmax.f32 %v4802_v3, 0.0  ;;  %v4805_v17 = vadd.f32 %v4773_v5, %v4434_v27  ;;  %v4432_v11 = vadd.f32 %v9462_v48, %v4393_v33 }
 0x490   : > { %4866 = vst.msk [vmem:[%s9478_s12 + $0xe0] sm:$0xff] %vm1849_vm3, %v4834_v51  ;;  %v4837_v43 = vmax.f32 %v4805_v17, 0.0  ;;  %v4803_v39 = vadd.f32 %v4771_v36, %v4432_v11 }
 0x492   : > { %4869 = vst.msk [vmem:[%s9478_s12 + $0xf8] sm:$0xff] %vm1849_vm3, %v4837_v43  ;;  %v4835_v0 = vmax.f32 %v4803_v39, 0.0 }
 0x494   : > { %4867 = vst.msk [vmem:[%s9478_s12 + $0xe8] sm:$0xff] %vm1849_vm3, %v4835_v0 }
 0x495 PF: > { %s20_s13 = sadd.s32 1, %s6584_s13  }
 0x496   : > { %p17_p4 = scmp.ge.s32.totalorder %s20_s13, 4  }
 0x498   :  { %19 = sbr.rel (!%p17_p4) target bundleno = 1 (0x1), region = 96 }

</bundles_post_ra>
